<compile_context>
chip_gen: v7x
topology: tpu7x:2x2x1
jax: 0.10.0
libtpu: 0.0.40
codegen_flags: <defaults>
</compile_context>

<pallas_src>
import functools

import jax
import jax.numpy as jnp
from jax.experimental import pallas as pl
from jax.experimental.pallas import tpu as pltpu


def _basic_block_kernel(x_ref, w1_ref, w2_ref, b1_ref, b2_ref, mask_ref,
                        o_ref, mid_ref, *, H, W):
    """Fused BasicBlock forward for one image in flat padded-row layout.

    x_ref    : (1, (H+3)*(W+2), Cp) bf16  zero-padded input, rows flattened
    w1_ref   : (9, Cp, Cp)          bf16  conv1 weights (BN1 scale folded), tap-major
    w2_ref   : (9, Cp, Cp)          bf16  conv2 weights (BN2 scale folded)
    b1_ref   : (1, Cp)              f32   folded BN1 bias
    b2_ref   : (1, Cp)              f32   folded BN2 bias
    mask_ref : (H*(W+2), 1)         f32   1.0 on valid columns, 0.0 on halo columns
    o_ref    : (1, H*(W+2), Cp)     bf16  output band (halo cols = garbage, dropped)
    mid_ref  : ((H+3)*(W+2), Cp)    bf16  zero-padded intermediate activation
    """
    Wp = W + 2
    S = H * Wp                      # flat band length (one row of Wp per output row)
    Cp = mid_ref.shape[1]
    S_in = (H + 3) * Wp

    # Zero only the flat head/tail halo rows the band store below does not
    # cover; everything else is overwritten every step, so no cross-step
    # scratch persistence is assumed (safe with a "parallel" grid axis).
    mid_ref[0:Wp + 1, :] = jnp.zeros((Wp + 1, Cp), mid_ref.dtype)
    tail = (H + 1) * Wp + 1
    mid_ref[tail:S_in, :] = jnp.zeros((S_in - tail, Cp), mid_ref.dtype)

    mask = mask_ref[...]            # (S, 1) f32

    def conv3x3_acc(load_slab, w_ref):
        """Nine shifted flat slabs accumulated on the MXU (K = Cp each)."""
        acc = None
        center = None
        for k in range(9):
            dy, dx = divmod(k, 3)
            lhs = load_slab(dy * Wp + dx)            # (S, Cp) bf16, contiguous view
            if k == 4:
                center = lhs                          # reuse as residual / no reload
            part = jnp.dot(lhs, w_ref[k], preferred_element_type=jnp.float32)
            acc = part if acc is None else acc + part
        return acc, center

    # ---- conv1 + folded bn1 + relu -----------------------------------------
    acc1, x_center = conv3x3_acc(lambda s: x_ref[0, s:s + S, :], w1_ref)
    out1 = jnp.maximum(acc1 + b1_ref[...], 0.0) * mask   # mask keeps halo cols zero
    mid_ref[Wp + 1:Wp + 1 + S, :] = out1.astype(mid_ref.dtype)

    # ---- conv2 + folded bn2 + residual + relu -------------------------------
    acc2, _ = conv3x3_acc(lambda s: mid_ref[s:s + S, :], w2_ref)
    res = x_center.astype(jnp.float32)                    # conv1 center tap == identity
    o_ref[0] = jnp.maximum(acc2 + b2_ref[...] + res, 0.0).astype(o_ref.dtype)


def basic_block_forward(x_nchw, w1, w2, bn1_params, bn2_params, eps=1e-5):
    """x_nchw: (N, C, H, W) f32.  w1/w2: (Cout, Cin, 3, 3) torch OIHW layout."""
    N, Cin, H, W = x_nchw.shape
    Cout = w1.shape[0]
    assert Cin == Cout, "downsample=None requires inplanes == planes"
    C = Cin
    LANE = 128
    Cp = ((C + LANE - 1) // LANE) * LANE       # lane-dense channel padding
    Wp = W + 2
    S_in = (H + 3) * Wp                        # 1 top halo, 2 bottom halo rows
    S = H * Wp                                 # output band length

    def fold_bn(gamma, beta, mean, var):
        scale = (gamma / jnp.sqrt(var + eps)).astype(jnp.float32)
        bias = (beta - mean * scale).astype(jnp.float32)
        return scale, bias

    s1, b1 = fold_bn(*bn1_params)
    s2, b2 = fold_bn(*bn2_params)

    def pack_weights(w, scale):
        # OIHW -> (ky, kx, ci, co), fold BN scale per output channel,
        # zero-pad channels to Cp, tap-major (9, Cp, Cp), bf16.
        wk = jnp.transpose(w, (2, 3, 1, 0)).astype(jnp.float32) * scale[None, None, None, :]
        wk = jnp.pad(wk, ((0, 0), (0, 0), (0, Cp - C), (0, Cp - C)))
        return wk.reshape(9, Cp, Cp).astype(jnp.bfloat16)

    w1k = pack_weights(w1, s1)
    w2k = pack_weights(w2, s2)
    b1p = jnp.pad(b1, (0, Cp - C)).reshape(1, Cp)
    b2p = jnp.pad(b2, (0, Cp - C)).reshape(1, Cp)

    # NCHW -> NHWC, zero halo (1 top / 2 bottom rows, 1 left/right col), pad
    # channels, flatten spatial rows so each 3x3 tap is a contiguous flat slab.
    x = jnp.transpose(x_nchw, (0, 2, 3, 1))
    xp = jnp.pad(x, ((0, 0), (1, 2), (1, 1), (0, Cp - C))).astype(jnp.bfloat16)
    xf = xp.reshape(N, S_in, Cp)

    # 1.0 for the W valid columns of every (W+2)-wide flat row, 0.0 for halos.
    mask = (jnp.arange(S) % Wp < W).astype(jnp.float32).reshape(S, 1)

    kernel = functools.partial(_basic_block_kernel, H=H, W=W)

    out_flat = pl.pallas_call(
        kernel,
        out_shape=jax.ShapeDtypeStruct((N, S, Cp), jnp.bfloat16),
        grid_spec=pltpu.PrefetchScalarGridSpec(
            num_scalar_prefetch=0,
            grid=(N,),
            in_specs=[
                pl.BlockSpec((1, S_in, Cp), lambda n: (n, 0, 0)),
                pl.BlockSpec((9, Cp, Cp), lambda n: (0, 0, 0)),
                pl.BlockSpec((9, Cp, Cp), lambda n: (0, 0, 0)),
                pl.BlockSpec((1, Cp), lambda n: (0, 0)),
                pl.BlockSpec((1, Cp), lambda n: (0, 0)),
                pl.BlockSpec((S, 1), lambda n: (0, 0)),
            ],
            out_specs=pl.BlockSpec((1, S, Cp), lambda n: (n, 0, 0)),
            scratch_shapes=[
                pltpu.VMEM((S_in, Cp), jnp.bfloat16),   # flat padded intermediate
            ],
        ),
        compiler_params=pltpu.CompilerParams(
            dimension_semantics=("parallel",),
            vmem_limit_bytes=64 * 1024 * 1024,
        ),
    )(xf, w1k, w2k, b1p, b2p, mask)

    # Drop halo columns + channel padding, back to NCHW, original dtype.
    out = out_flat.reshape(N, H, Wp, Cp)[:, :, :W, :C].astype(x_nchw.dtype)
    return jnp.transpose(out, (0, 3, 1, 2))


def _reference_forward(x, w1, w2, bn1_params, bn2_params, eps=1e-5):
    def conv(x, w):
        return jax.lax.conv_general_dilated(
            x, w, window_strides=(1, 1), padding=((1, 1), (1, 1)),
            dimension_numbers=('NCHW', 'OIHW', 'NCHW'))

    def bn(x, gamma, beta, mean, var):
        sh = (1, -1, 1, 1)
        return (x - mean.reshape(sh)) / jnp.sqrt(var.reshape(sh) + eps) * \
            gamma.reshape(sh) + beta.reshape(sh)

    out = jax.nn.relu(bn(conv(x, w1), *bn1_params))
    out = bn(conv(out, w2), *bn2_params) + x
    return jax.nn.relu(out)


if __name__ == "__main__":
    key = jax.random.PRNGKey(0)
    ks = jax.random.split(key, 12)

    N, C, H, W = 2, 4, 16, 16   # inplanes = planes = 4, stride = 1
    x = jax.random.normal(ks[0], (N, C, H, W), dtype=jnp.float32)

    # Deterministic synthetic parameters (torch shapes).
    w1 = jax.random.normal(ks[1], (C, C, 3, 3), dtype=jnp.float32) * 0.1
    w2 = jax.random.normal(ks[2], (C, C, 3, 3), dtype=jnp.float32) * 0.1
    bn1 = (jax.random.uniform(ks[3], (C,), minval=0.5, maxval=1.5),   # gamma
           jax.random.normal(ks[4], (C,)) * 0.1,                      # beta
           jax.random.normal(ks[5], (C,)) * 0.1,                      # running_mean
           jax.random.uniform(ks[6], (C,), minval=0.5, maxval=1.5))   # running_var
    bn2 = (jax.random.uniform(ks[7], (C,), minval=0.5, maxval=1.5),
           jax.random.normal(ks[8], (C,)) * 0.1,
           jax.random.normal(ks[9], (C,)) * 0.1,
           jax.random.uniform(ks[10], (C,), minval=0.5, maxval=1.5))

    out = jax.block_until_ready(basic_block_forward(x, w1, w2, bn1, bn2))
    ref = jax.block_until_ready(_reference_forward(x, w1, w2, bn1, bn2))

    assert out.shape == (N, C, H, W)
    # bf16 matmul inputs / bf16 activations (f32 accumulation) -> loose tolerance.
    max_err = jnp.max(jnp.abs(out - ref))
    assert jnp.allclose(out, ref, atol=5e-2, rtol=5e-2), f"max abs err {max_err}"

    print("KERNEL_OK")
</pallas_src>

<mosaic_0001>
module attributes {stable_mosaic.version = 11 : i64} {
  func.func @_basic_block_kernel(%arg0: i32, %arg1: memref<1x342x128xbf16, #tpu.memory_space<vmem>>, %arg2: memref<9x128x128xbf16, #tpu.memory_space<vmem>>, %arg3: memref<9x128x128xbf16, #tpu.memory_space<vmem>>, %arg4: memref<1x128xf32, #tpu.memory_space<vmem>>, %arg5: memref<1x128xf32, #tpu.memory_space<vmem>>, %arg6: memref<288x1xf32, #tpu.memory_space<vmem>>, %arg7: memref<1x288x128xbf16, #tpu.memory_space<vmem>>, %arg8: memref<342x128xbf16, #tpu.memory_space<vmem>>) attributes {dimension_semantics = [#tpu.dimension_semantics<parallel>], iteration_bounds = array<i64: 2>, scalar_prefetch = 0 : i64, scratch_operands = 1 : i64, tpu.core_type = #tpu.core_type<tc>, window_params = [{transform_indices = @transform_0, window_bounds = array<i64: 1, 342, 128>}, {pipeline_mode = #tpu.pipeline_mode<synchronous>, transform_indices = @transform_1, window_bounds = array<i64: 9, 128, 128>}, {pipeline_mode = #tpu.pipeline_mode<synchronous>, transform_indices = @transform_2, window_bounds = array<i64: 9, 128, 128>}, {pipeline_mode = #tpu.pipeline_mode<synchronous>, transform_indices = @transform_3, window_bounds = array<i64: 1, 128>}, {pipeline_mode = #tpu.pipeline_mode<synchronous>, transform_indices = @transform_4, window_bounds = array<i64: 1, 128>}, {pipeline_mode = #tpu.pipeline_mode<synchronous>, transform_indices = @transform_5, window_bounds = array<i64: 288, 1>}, {transform_indices = @transform_6, window_bounds = array<i64: 1, 288, 128>}]} {
    %cst = arith.constant 0.000000e+00 : bf16
    %0 = vector.broadcast %cst : bf16 to vector<19x128xbf16>
    %c0 = arith.constant 0 : index
    %c0_0 = arith.constant 0 : index
    %1 = vector.load %arg8[%c0, %c0_0] : memref<342x128xbf16, #tpu.memory_space<vmem>>, vector<19x128xbf16>
    tpu.vector_store %arg8[%c0, %c0_0], %0 {strides = array<i32>} : memref<342x128xbf16, #tpu.memory_space<vmem>>, vector<19x128xbf16>,
    %cst_1 = arith.constant 0.000000e+00 : bf16
    %2 = vector.broadcast %cst_1 : bf16 to vector<35x128xbf16>
    %c307 = arith.constant 307 : index
    %c0_2 = arith.constant 0 : index
    %3 = vector.load %arg8[%c307, %c0_2] : memref<342x128xbf16, #tpu.memory_space<vmem>>, vector<35x128xbf16>
    tpu.vector_store %arg8[%c307, %c0_2], %2 {strides = array<i32>} : memref<342x128xbf16, #tpu.memory_space<vmem>>, vector<35x128xbf16>,
    %c0_3 = arith.constant 0 : index
    %c0_4 = arith.constant 0 : index
    %4 = vector.load %arg6[%c0_3, %c0_4] : memref<288x1xf32, #tpu.memory_space<vmem>>, vector<288x1xf32>
    %c0_5 = arith.constant 0 : index
    %c0_6 = arith.constant 0 : index
    %c0_7 = arith.constant 0 : index
    %5 = vector.load %arg1[%c0_5, %c0_6, %c0_7] : memref<1x342x128xbf16, #tpu.memory_space<vmem>>, vector<1x288x128xbf16>
    %6 = vector.shape_cast %5 : vector<1x288x128xbf16> to vector<288x128xbf16>
    %c0_8 = arith.constant 0 : index
    %c0_9 = arith.constant 0 : index
    %c0_10 = arith.constant 0 : index
    %7 = vector.load %arg2[%c0_8, %c0_9, %c0_10] : memref<9x128x128xbf16, #tpu.memory_space<vmem>>, vector<1x128x128xbf16>
    %8 = vector.shape_cast %7 : vector<1x128x128xbf16> to vector<128x128xbf16>
    %cst_11 = arith.constant dense<0.000000e+00> : vector<288x128xf32>
    %9 = tpu.matmul %6, %8, %cst_11 {dimension_numbers = #tpu.dot_dimension_numbers<[1], [0], [0], [1], [0, 0, 1, 1], [], []>} : vector<288x128xbf16>, vector<128x128xbf16>, vector<288x128xf32> -> vector<288x128xf32>
    %c0_12 = arith.constant 0 : index
    %c1 = arith.constant 1 : index
    %c0_13 = arith.constant 0 : index
    %10 = vector.load %arg1[%c0_12, %c1, %c0_13] : memref<1x342x128xbf16, #tpu.memory_space<vmem>>, vector<1x288x128xbf16>
    %11 = vector.shape_cast %10 : vector<1x288x128xbf16> to vector<288x128xbf16>
    %c1_14 = arith.constant 1 : index
    %c0_15 = arith.constant 0 : index
    %c0_16 = arith.constant 0 : index
    %12 = vector.load %arg2[%c1_14, %c0_15, %c0_16] : memref<9x128x128xbf16, #tpu.memory_space<vmem>>, vector<1x128x128xbf16>
    %13 = vector.shape_cast %12 : vector<1x128x128xbf16> to vector<128x128xbf16>
    %cst_17 = arith.constant dense<0.000000e+00> : vector<288x128xf32>
    %14 = tpu.matmul %11, %13, %cst_17 {dimension_numbers = #tpu.dot_dimension_numbers<[1], [0], [0], [1], [0, 0, 1, 1], [], []>} : vector<288x128xbf16>, vector<128x128xbf16>, vector<288x128xf32> -> vector<288x128xf32>
    %15 = arith.addf %9, %14 : vector<288x128xf32>
    %c0_18 = arith.constant 0 : index
    %c2 = arith.constant 2 : index
    %c0_19 = arith.constant 0 : index
    %16 = vector.load %arg1[%c0_18, %c2, %c0_19] : memref<1x342x128xbf16, #tpu.memory_space<vmem>>, vector<1x288x128xbf16>
    %17 = vector.shape_cast %16 : vector<1x288x128xbf16> to vector<288x128xbf16>
    %c2_20 = arith.constant 2 : index
    %c0_21 = arith.constant 0 : index
    %c0_22 = arith.constant 0 : index
    %18 = vector.load %arg2[%c2_20, %c0_21, %c0_22] : memref<9x128x128xbf16, #tpu.memory_space<vmem>>, vector<1x128x128xbf16>
    %19 = vector.shape_cast %18 : vector<1x128x128xbf16> to vector<128x128xbf16>
    %cst_23 = arith.constant dense<0.000000e+00> : vector<288x128xf32>
    %20 = tpu.matmul %17, %19, %cst_23 {dimension_numbers = #tpu.dot_dimension_numbers<[1], [0], [0], [1], [0, 0, 1, 1], [], []>} : vector<288x128xbf16>, vector<128x128xbf16>, vector<288x128xf32> -> vector<288x128xf32>
    %21 = arith.addf %15, %20 : vector<288x128xf32>
    %c0_24 = arith.constant 0 : index
    %c18 = arith.constant 18 : index
    %c0_25 = arith.constant 0 : index
    %22 = vector.load %arg1[%c0_24, %c18, %c0_25] : memref<1x342x128xbf16, #tpu.memory_space<vmem>>, vector<1x288x128xbf16>
    %23 = vector.shape_cast %22 : vector<1x288x128xbf16> to vector<288x128xbf16>
    %c3 = arith.constant 3 : index
    %c0_26 = arith.constant 0 : index
    %c0_27 = arith.constant 0 : index
    %24 = vector.load %arg2[%c3, %c0_26, %c0_27] : memref<9x128x128xbf16, #tpu.memory_space<vmem>>, vector<1x128x128xbf16>
    %25 = vector.shape_cast %24 : vector<1x128x128xbf16> to vector<128x128xbf16>
    %cst_28 = arith.constant dense<0.000000e+00> : vector<288x128xf32>
    %26 = tpu.matmul %23, %25, %cst_28 {dimension_numbers = #tpu.dot_dimension_numbers<[1], [0], [0], [1], [0, 0, 1, 1], [], []>} : vector<288x128xbf16>, vector<128x128xbf16>, vector<288x128xf32> -> vector<288x128xf32>
    %27 = arith.addf %21, %26 : vector<288x128xf32>
    %c0_29 = arith.constant 0 : index
    %c19 = arith.constant 19 : index
    %c0_30 = arith.constant 0 : index
    %28 = vector.load %arg1[%c0_29, %c19, %c0_30] : memref<1x342x128xbf16, #tpu.memory_space<vmem>>, vector<1x288x128xbf16>
    %29 = vector.shape_cast %28 : vector<1x288x128xbf16> to vector<288x128xbf16>
    %c4 = arith.constant 4 : index
    %c0_31 = arith.constant 0 : index
    %c0_32 = arith.constant 0 : index
    %30 = vector.load %arg2[%c4, %c0_31, %c0_32] : memref<9x128x128xbf16, #tpu.memory_space<vmem>>, vector<1x128x128xbf16>
    %31 = vector.shape_cast %30 : vector<1x128x128xbf16> to vector<128x128xbf16>
    %cst_33 = arith.constant dense<0.000000e+00> : vector<288x128xf32>
    %32 = tpu.matmul %29, %31, %cst_33 {dimension_numbers = #tpu.dot_dimension_numbers<[1], [0], [0], [1], [0, 0, 1, 1], [], []>} : vector<288x128xbf16>, vector<128x128xbf16>, vector<288x128xf32> -> vector<288x128xf32>
    %33 = arith.addf %27, %32 : vector<288x128xf32>
    %c0_34 = arith.constant 0 : index
    %c20 = arith.constant 20 : index
    %c0_35 = arith.constant 0 : index
    %34 = vector.load %arg1[%c0_34, %c20, %c0_35] : memref<1x342x128xbf16, #tpu.memory_space<vmem>>, vector<1x288x128xbf16>
    %35 = vector.shape_cast %34 : vector<1x288x128xbf16> to vector<288x128xbf16>
    %c5 = arith.constant 5 : index
    %c0_36 = arith.constant 0 : index
    %c0_37 = arith.constant 0 : index
    %36 = vector.load %arg2[%c5, %c0_36, %c0_37] : memref<9x128x128xbf16, #tpu.memory_space<vmem>>, vector<1x128x128xbf16>
    %37 = vector.shape_cast %36 : vector<1x128x128xbf16> to vector<128x128xbf16>
    %cst_38 = arith.constant dense<0.000000e+00> : vector<288x128xf32>
    %38 = tpu.matmul %35, %37, %cst_38 {dimension_numbers = #tpu.dot_dimension_numbers<[1], [0], [0], [1], [0, 0, 1, 1], [], []>} : vector<288x128xbf16>, vector<128x128xbf16>, vector<288x128xf32> -> vector<288x128xf32>
    %39 = arith.addf %33, %38 : vector<288x128xf32>
    %c0_39 = arith.constant 0 : index
    %c36 = arith.constant 36 : index
    %c0_40 = arith.constant 0 : index
    %40 = vector.load %arg1[%c0_39, %c36, %c0_40] : memref<1x342x128xbf16, #tpu.memory_space<vmem>>, vector<1x288x128xbf16>
    %41 = vector.shape_cast %40 : vector<1x288x128xbf16> to vector<288x128xbf16>
    %c6 = arith.constant 6 : index
    %c0_41 = arith.constant 0 : index
    %c0_42 = arith.constant 0 : index
    %42 = vector.load %arg2[%c6, %c0_41, %c0_42] : memref<9x128x128xbf16, #tpu.memory_space<vmem>>, vector<1x128x128xbf16>
    %43 = vector.shape_cast %42 : vector<1x128x128xbf16> to vector<128x128xbf16>
    %cst_43 = arith.constant dense<0.000000e+00> : vector<288x128xf32>
    %44 = tpu.matmul %41, %43, %cst_43 {dimension_numbers = #tpu.dot_dimension_numbers<[1], [0], [0], [1], [0, 0, 1, 1], [], []>} : vector<288x128xbf16>, vector<128x128xbf16>, vector<288x128xf32> -> vector<288x128xf32>
    %45 = arith.addf %39, %44 : vector<288x128xf32>
    %c0_44 = arith.constant 0 : index
    %c37 = arith.constant 37 : index
    %c0_45 = arith.constant 0 : index
    %46 = vector.load %arg1[%c0_44, %c37, %c0_45] : memref<1x342x128xbf16, #tpu.memory_space<vmem>>, vector<1x288x128xbf16>
    %47 = vector.shape_cast %46 : vector<1x288x128xbf16> to vector<288x128xbf16>
    %c7 = arith.constant 7 : index
    %c0_46 = arith.constant 0 : index
    %c0_47 = arith.constant 0 : index
    %48 = vector.load %arg2[%c7, %c0_46, %c0_47] : memref<9x128x128xbf16, #tpu.memory_space<vmem>>, vector<1x128x128xbf16>
    %49 = vector.shape_cast %48 : vector<1x128x128xbf16> to vector<128x128xbf16>
    %cst_48 = arith.constant dense<0.000000e+00> : vector<288x128xf32>
    %50 = tpu.matmul %47, %49, %cst_48 {dimension_numbers = #tpu.dot_dimension_numbers<[1], [0], [0], [1], [0, 0, 1, 1], [], []>} : vector<288x128xbf16>, vector<128x128xbf16>, vector<288x128xf32> -> vector<288x128xf32>
    %51 = arith.addf %45, %50 : vector<288x128xf32>
    %c0_49 = arith.constant 0 : index
    %c38 = arith.constant 38 : index
    %c0_50 = arith.constant 0 : index
    %52 = vector.load %arg1[%c0_49, %c38, %c0_50] : memref<1x342x128xbf16, #tpu.memory_space<vmem>>, vector<1x288x128xbf16>
    %53 = vector.shape_cast %52 : vector<1x288x128xbf16> to vector<288x128xbf16>
    %c8 = arith.constant 8 : index
    %c0_51 = arith.constant 0 : index
    %c0_52 = arith.constant 0 : index
    %54 = vector.load %arg2[%c8, %c0_51, %c0_52] : memref<9x128x128xbf16, #tpu.memory_space<vmem>>, vector<1x128x128xbf16>
    %55 = vector.shape_cast %54 : vector<1x128x128xbf16> to vector<128x128xbf16>
    %cst_53 = arith.constant dense<0.000000e+00> : vector<288x128xf32>
    %56 = tpu.matmul %53, %55, %cst_53 {dimension_numbers = #tpu.dot_dimension_numbers<[1], [0], [0], [1], [0, 0, 1, 1], [], []>} : vector<288x128xbf16>, vector<128x128xbf16>, vector<288x128xf32> -> vector<288x128xf32>
    %57 = arith.addf %51, %56 : vector<288x128xf32>
    %c0_54 = arith.constant 0 : index
    %c0_55 = arith.constant 0 : index
    %58 = vector.load %arg4[%c0_54, %c0_55] : memref<1x128xf32, #tpu.memory_space<vmem>>, vector<1x128xf32>
    %59 = vector.broadcast %58 : vector<1x128xf32> to vector<288x128xf32>
    %60 = arith.addf %57, %59 : vector<288x128xf32>
    %cst_56 = arith.constant 0.000000e+00 : f32
    %61 = vector.broadcast %cst_56 : f32 to vector<288x128xf32>
    %62 = arith.maximumf %60, %61 : vector<288x128xf32>
    %63 = vector.broadcast %4 : vector<288x1xf32> to vector<288x128xf32>
    %64 = arith.mulf %62, %63 : vector<288x128xf32>
    %65 = arith.truncf %64 : vector<288x128xf32> to vector<288x128xbf16>
    %c19_57 = arith.constant 19 : index
    %c0_58 = arith.constant 0 : index
    %66 = vector.load %arg8[%c19_57, %c0_58] : memref<342x128xbf16, #tpu.memory_space<vmem>>, vector<288x128xbf16>
    tpu.vector_store %arg8[%c19_57, %c0_58], %65 {strides = array<i32>} : memref<342x128xbf16, #tpu.memory_space<vmem>>, vector<288x128xbf16>,
    %c0_59 = arith.constant 0 : index
    %c0_60 = arith.constant 0 : index
    %67 = vector.load %arg8[%c0_59, %c0_60] : memref<342x128xbf16, #tpu.memory_space<vmem>>, vector<288x128xbf16>
    %c0_61 = arith.constant 0 : index
    %c0_62 = arith.constant 0 : index
    %c0_63 = arith.constant 0 : index
    %68 = vector.load %arg3[%c0_61, %c0_62, %c0_63] : memref<9x128x128xbf16, #tpu.memory_space<vmem>>, vector<1x128x128xbf16>
    %69 = vector.shape_cast %68 : vector<1x128x128xbf16> to vector<128x128xbf16>
    %cst_64 = arith.constant dense<0.000000e+00> : vector<288x128xf32>
    %70 = tpu.matmul %67, %69, %cst_64 {dimension_numbers = #tpu.dot_dimension_numbers<[1], [0], [0], [1], [0, 0, 1, 1], [], []>} : vector<288x128xbf16>, vector<128x128xbf16>, vector<288x128xf32> -> vector<288x128xf32>
    %c1_65 = arith.constant 1 : index
    %c0_66 = arith.constant 0 : index
    %71 = vector.load %arg8[%c1_65, %c0_66] : memref<342x128xbf16, #tpu.memory_space<vmem>>, vector<288x128xbf16>
    %c1_67 = arith.constant 1 : index
    %c0_68 = arith.constant 0 : index
    %c0_69 = arith.constant 0 : index
    %72 = vector.load %arg3[%c1_67, %c0_68, %c0_69] : memref<9x128x128xbf16, #tpu.memory_space<vmem>>, vector<1x128x128xbf16>
    %73 = vector.shape_cast %72 : vector<1x128x128xbf16> to vector<128x128xbf16>
    %cst_70 = arith.constant dense<0.000000e+00> : vector<288x128xf32>
    %74 = tpu.matmul %71, %73, %cst_70 {dimension_numbers = #tpu.dot_dimension_numbers<[1], [0], [0], [1], [0, 0, 1, 1], [], []>} : vector<288x128xbf16>, vector<128x128xbf16>, vector<288x128xf32> -> vector<288x128xf32>
    %75 = arith.addf %70, %74 : vector<288x128xf32>
    %c2_71 = arith.constant 2 : index
    %c0_72 = arith.constant 0 : index
    %76 = vector.load %arg8[%c2_71, %c0_72] : memref<342x128xbf16, #tpu.memory_space<vmem>>, vector<288x128xbf16>
    %c2_73 = arith.constant 2 : index
    %c0_74 = arith.constant 0 : index
    %c0_75 = arith.constant 0 : index
    %77 = vector.load %arg3[%c2_73, %c0_74, %c0_75] : memref<9x128x128xbf16, #tpu.memory_space<vmem>>, vector<1x128x128xbf16>
    %78 = vector.shape_cast %77 : vector<1x128x128xbf16> to vector<128x128xbf16>
    %cst_76 = arith.constant dense<0.000000e+00> : vector<288x128xf32>
    %79 = tpu.matmul %76, %78, %cst_76 {dimension_numbers = #tpu.dot_dimension_numbers<[1], [0], [0], [1], [0, 0, 1, 1], [], []>} : vector<288x128xbf16>, vector<128x128xbf16>, vector<288x128xf32> -> vector<288x128xf32>
    %80 = arith.addf %75, %79 : vector<288x128xf32>
    %c18_77 = arith.constant 18 : index
    %c0_78 = arith.constant 0 : index
    %81 = vector.load %arg8[%c18_77, %c0_78] : memref<342x128xbf16, #tpu.memory_space<vmem>>, vector<288x128xbf16>
    %c3_79 = arith.constant 3 : index
    %c0_80 = arith.constant 0 : index
    %c0_81 = arith.constant 0 : index
    %82 = vector.load %arg3[%c3_79, %c0_80, %c0_81] : memref<9x128x128xbf16, #tpu.memory_space<vmem>>, vector<1x128x128xbf16>
    %83 = vector.shape_cast %82 : vector<1x128x128xbf16> to vector<128x128xbf16>
    %cst_82 = arith.constant dense<0.000000e+00> : vector<288x128xf32>
    %84 = tpu.matmul %81, %83, %cst_82 {dimension_numbers = #tpu.dot_dimension_numbers<[1], [0], [0], [1], [0, 0, 1, 1], [], []>} : vector<288x128xbf16>, vector<128x128xbf16>, vector<288x128xf32> -> vector<288x128xf32>
    %85 = arith.addf %80, %84 : vector<288x128xf32>
    %c19_83 = arith.constant 19 : index
    %c0_84 = arith.constant 0 : index
    %86 = vector.load %arg8[%c19_83, %c0_84] : memref<342x128xbf16, #tpu.memory_space<vmem>>, vector<288x128xbf16>
    %c4_85 = arith.constant 4 : index
    %c0_86 = arith.constant 0 : index
    %c0_87 = arith.constant 0 : index
    %87 = vector.load %arg3[%c4_85, %c0_86, %c0_87] : memref<9x128x128xbf16, #tpu.memory_space<vmem>>, vector<1x128x128xbf16>
    %88 = vector.shape_cast %87 : vector<1x128x128xbf16> to vector<128x128xbf16>
    %cst_88 = arith.constant dense<0.000000e+00> : vector<288x128xf32>
    %89 = tpu.matmul %86, %88, %cst_88 {dimension_numbers = #tpu.dot_dimension_numbers<[1], [0], [0], [1], [0, 0, 1, 1], [], []>} : vector<288x128xbf16>, vector<128x128xbf16>, vector<288x128xf32> -> vector<288x128xf32>
    %90 = arith.addf %85, %89 : vector<288x128xf32>
    %c20_89 = arith.constant 20 : index
    %c0_90 = arith.constant 0 : index
    %91 = vector.load %arg8[%c20_89, %c0_90] : memref<342x128xbf16, #tpu.memory_space<vmem>>, vector<288x128xbf16>
    %c5_91 = arith.constant 5 : index
    %c0_92 = arith.constant 0 : index
    %c0_93 = arith.constant 0 : index
    %92 = vector.load %arg3[%c5_91, %c0_92, %c0_93] : memref<9x128x128xbf16, #tpu.memory_space<vmem>>, vector<1x128x128xbf16>
    %93 = vector.shape_cast %92 : vector<1x128x128xbf16> to vector<128x128xbf16>
    %cst_94 = arith.constant dense<0.000000e+00> : vector<288x128xf32>
    %94 = tpu.matmul %91, %93, %cst_94 {dimension_numbers = #tpu.dot_dimension_numbers<[1], [0], [0], [1], [0, 0, 1, 1], [], []>} : vector<288x128xbf16>, vector<128x128xbf16>, vector<288x128xf32> -> vector<288x128xf32>
    %95 = arith.addf %90, %94 : vector<288x128xf32>
    %c36_95 = arith.constant 36 : index
    %c0_96 = arith.constant 0 : index
    %96 = vector.load %arg8[%c36_95, %c0_96] : memref<342x128xbf16, #tpu.memory_space<vmem>>, vector<288x128xbf16>
    %c6_97 = arith.constant 6 : index
    %c0_98 = arith.constant 0 : index
    %c0_99 = arith.constant 0 : index
    %97 = vector.load %arg3[%c6_97, %c0_98, %c0_99] : memref<9x128x128xbf16, #tpu.memory_space<vmem>>, vector<1x128x128xbf16>
    %98 = vector.shape_cast %97 : vector<1x128x128xbf16> to vector<128x128xbf16>
    %cst_100 = arith.constant dense<0.000000e+00> : vector<288x128xf32>
    %99 = tpu.matmul %96, %98, %cst_100 {dimension_numbers = #tpu.dot_dimension_numbers<[1], [0], [0], [1], [0, 0, 1, 1], [], []>} : vector<288x128xbf16>, vector<128x128xbf16>, vector<288x128xf32> -> vector<288x128xf32>
    %100 = arith.addf %95, %99 : vector<288x128xf32>
    %c37_101 = arith.constant 37 : index
    %c0_102 = arith.constant 0 : index
    %101 = vector.load %arg8[%c37_101, %c0_102] : memref<342x128xbf16, #tpu.memory_space<vmem>>, vector<288x128xbf16>
    %c7_103 = arith.constant 7 : index
    %c0_104 = arith.constant 0 : index
    %c0_105 = arith.constant 0 : index
    %102 = vector.load %arg3[%c7_103, %c0_104, %c0_105] : memref<9x128x128xbf16, #tpu.memory_space<vmem>>, vector<1x128x128xbf16>
    %103 = vector.shape_cast %102 : vector<1x128x128xbf16> to vector<128x128xbf16>
    %cst_106 = arith.constant dense<0.000000e+00> : vector<288x128xf32>
    %104 = tpu.matmul %101, %103, %cst_106 {dimension_numbers = #tpu.dot_dimension_numbers<[1], [0], [0], [1], [0, 0, 1, 1], [], []>} : vector<288x128xbf16>, vector<128x128xbf16>, vector<288x128xf32> -> vector<288x128xf32>
    %105 = arith.addf %100, %104 : vector<288x128xf32>
    %c38_107 = arith.constant 38 : index
    %c0_108 = arith.constant 0 : index
    %106 = vector.load %arg8[%c38_107, %c0_108] : memref<342x128xbf16, #tpu.memory_space<vmem>>, vector<288x128xbf16>
    %c8_109 = arith.constant 8 : index
    %c0_110 = arith.constant 0 : index
    %c0_111 = arith.constant 0 : index
    %107 = vector.load %arg3[%c8_109, %c0_110, %c0_111] : memref<9x128x128xbf16, #tpu.memory_space<vmem>>, vector<1x128x128xbf16>
    %108 = vector.shape_cast %107 : vector<1x128x128xbf16> to vector<128x128xbf16>
    %cst_112 = arith.constant dense<0.000000e+00> : vector<288x128xf32>
    %109 = tpu.matmul %106, %108, %cst_112 {dimension_numbers = #tpu.dot_dimension_numbers<[1], [0], [0], [1], [0, 0, 1, 1], [], []>} : vector<288x128xbf16>, vector<128x128xbf16>, vector<288x128xf32> -> vector<288x128xf32>
    %110 = arith.addf %105, %109 : vector<288x128xf32>
    %111 = arith.extf %29 : vector<288x128xbf16> to vector<288x128xf32>
    %c0_113 = arith.constant 0 : index
    %c0_114 = arith.constant 0 : index
    %112 = vector.load %arg5[%c0_113, %c0_114] : memref<1x128xf32, #tpu.memory_space<vmem>>, vector<1x128xf32>
    %113 = vector.broadcast %112 : vector<1x128xf32> to vector<288x128xf32>
    %114 = arith.addf %110, %113 : vector<288x128xf32>
    %115 = arith.addf %114, %111 : vector<288x128xf32>
    %cst_115 = arith.constant 0.000000e+00 : f32
    %116 = vector.broadcast %cst_115 : f32 to vector<288x128xf32>
    %117 = arith.maximumf %115, %116 : vector<288x128xf32>
    %118 = arith.truncf %117 : vector<288x128xf32> to vector<288x128xbf16>
    %c0_116 = arith.constant 0 : index
    %c0_117 = arith.constant 0 : index
    %c0_118 = arith.constant 0 : index
    %119 = vector.load %arg7[%c0_116, %c0_117, %c0_118] : memref<1x288x128xbf16, #tpu.memory_space<vmem>>, vector<1x288x128xbf16>
    %120 = vector.shape_cast %119 : vector<1x288x128xbf16> to vector<288x128xbf16>
    %121 = vector.shape_cast %118 : vector<288x128xbf16> to vector<1x288x128xbf16>
    tpu.vector_store %arg7[%c0_116, %c0_117, %c0_118], %121 {strides = array<i32>} : memref<1x288x128xbf16, #tpu.memory_space<vmem>>, vector<1x288x128xbf16>,
    return
  }
  func.func @transform_0(%arg0: i32) -> (i32, i32, i32) {
    %c0_i32 = arith.constant 0 : i32
    %c0_i32_0 = arith.constant 0 : i32
    %c0_i32_1 = arith.constant 0 : i32
    return %arg0, %c0_i32, %c0_i32_0 : i32, i32, i32
  }
  func.func @transform_1(%arg0: i32) -> (i32, i32, i32) {
    %c0_i32 = arith.constant 0 : i32
    %c0_i32_0 = arith.constant 0 : i32
    %c0_i32_1 = arith.constant 0 : i32
    %c0_i32_2 = arith.constant 0 : i32
    return %c0_i32, %c0_i32_0, %c0_i32_1 : i32, i32, i32
  }
  func.func @transform_2(%arg0: i32) -> (i32, i32, i32) {
    %c0_i32 = arith.constant 0 : i32
    %c0_i32_0 = arith.constant 0 : i32
    %c0_i32_1 = arith.constant 0 : i32
    %c0_i32_2 = arith.constant 0 : i32
    return %c0_i32, %c0_i32_0, %c0_i32_1 : i32, i32, i32
  }
  func.func @transform_3(%arg0: i32) -> (i32, i32) {
    %c0_i32 = arith.constant 0 : i32
    %c0_i32_0 = arith.constant 0 : i32
    %c0_i32_1 = arith.constant 0 : i32
    return %c0_i32, %c0_i32_0 : i32, i32
  }
  func.func @transform_4(%arg0: i32) -> (i32, i32) {
    %c0_i32 = arith.constant 0 : i32
    %c0_i32_0 = arith.constant 0 : i32
    %c0_i32_1 = arith.constant 0 : i32
    return %c0_i32, %c0_i32_0 : i32, i32
  }
  func.func @transform_5(%arg0: i32) -> (i32, i32) {
    %c0_i32 = arith.constant 0 : i32
    %c0_i32_0 = arith.constant 0 : i32
    %c0_i32_1 = arith.constant 0 : i32
    return %c0_i32, %c0_i32_0 : i32, i32
  }
  func.func @transform_6(%arg0: i32) -> (i32, i32, i32) {
    %c0_i32 = arith.constant 0 : i32
    %c0_i32_0 = arith.constant 0 : i32
    %c0_i32_1 = arith.constant 0 : i32
    return %arg0, %c0_i32, %c0_i32_0 : i32, i32, i32
  }
}

</mosaic_0001>

<bundles_post_ra>
// kernel: tpu_custom_call.1
= control target key start
LH: loop header
LB: loop body
LE: loop exit
PB: predicated region body
PF: predicated region fallthrough
CT: control target
= control target key end

     0   :  { %11 = vsyncpa [#allocation4], 0  ;;  %s14442_s0 = inlined_call_operand.hbm [shape: bf16[2,342,128], index: 0, kind: input, shape index: {}]   ;;  %s14443_s1 = inlined_call_operand.hbm [shape: bf16[9,128,128], index: 1, kind: input, shape index: {}]   ;;  %s14444_s2 = inlined_call_operand.hbm [shape: bf16[9,128,128], index: 2, kind: input, shape index: {}]   ;;  %s14445_s3 = inlined_call_operand.hbm [shape: f32[1,128], index: 3, kind: input, shape index: {}]   ;;  %s14446_s4 = inlined_call_operand.hbm [shape: f32[1,128], index: 4, kind: input, shape index: {}]   ;;  %s14447_s5 = inlined_call_operand.hbm [shape: f32[288,1], index: 5, kind: input, shape index: {}]   ;;  %s14448_s6 = inlined_call_operand.hbm [shape: bf16[2,288,128], index: 6, kind: output, shape index: {}]  }
   0x1   :  { %13 = vsyncpa [#allocation4 + $0x1], 0 }
   0x2   :  { %14 = vsyncpa [#allocation7], 0 }
   0x3   :  { %15 = vsyncpa [#allocation10], 0 }
   0x4   :  { %16 = vsyncpa [#allocation13], 0 }
   0x5   :  { %17 = vsyncpa [#allocation5], 0 }
   0x6   :  { %19 = vsyncpa [#allocation5 + $0x1], 0  ;;  %s12460_s21 = smov 0   ;;  %s12462_s22 = smov 0  }
   0x7   :  { %s12464_s23 = smov 0   ;;  %s12466_s24 = smov 0  }
   0x8 LB: > { %s12411_s25 = smov [#allocation6]   ;;  %s12481_s27 = sadd.s32 4294967295, %s12409_s24   ;;  %s12409_s24 = sphi %s12466_s24, %s14622_s24   ;;  %s12405_s23 = sphi %s12464_s23, %s14621_s23   ;;  %s12401_s22 = sphi %s12462_s22, %s14620_s22   ;;  %s12397_s21 = sphi %s12460_s21, %s14619_s21  }
   0x9   : > { %s199_s26 = sshll.u32 %s12411_s25, 4  ;;  %p9205_p0 = scmp.ge.s32.totalorder %s12409_s24, 1  ;;  %s12486_s26 = int_to_ptr.vmem [resolvable:$true] %s199_s26 }
   0xa   : > { %p14449_p1 = scmp.eq.s32.totalorder %s12481_s27, 0  ;;  %p187_p2 = scmp.lt.s32.totalorder %s12409_s24, 3 }
   0xb   : > { %s12412_s29 = smov [#allocation9]   ;;  %s12413_s8 = smov [#allocation8]  }
   0xc   : > { %p12488_p3 = pnand %p9205_p0, %p187_p2  ;;  %s226_s30 = sshll.u32 %s12412_s29, 4  ;;  %s12501_s30 = int_to_ptr.vmem [resolvable:$true] %s226_s30 }
   0xd   : > { %s212_s9 = sshll.u32 %s12413_s8, 4  ;;  %s12161_s12 = scalar_lea.hbm %s14443_s1, 9216  ;;  %s12503_s9 = int_to_ptr.vmem [resolvable:$true] %s212_s9 }
   0xe   : > { %s14461_s28 = scalar_select %p12488_p3, 1, 0 }
   0xf   : > { %p11752_p5 = pneg %p12488_p3  ;;  %p12162_p7 = scmp.ne.s32.totalorder %s14443_s1, %s12161_s12 }
  0x10   : > { %p12168_p11 = scmp.lt.u32.totalorder %s12161_s12, %s14443_s1 }
  0x11   : > { %p12497_p6 = pnand %p11752_p5, %p14449_p1 }
  0x13   : > { %p12513_p8 = pneg %p12497_p6 }
  0x15   : > { %p12164_p9 = pnand %p12513_p8, %p12162_p7 }
  0x17   : > { %p12165_p10 = pneg %p12164_p9 }
  0x19   : > { %p12170_p12 = pnand %p12168_p11, %p12165_p10 }
  0x1b   : > { %12173 = shalt.err (!%p12170_p12)
}
  0x1c   : > { %s12174_s18 = scalar_lea.vmem %s12486_s26, 9216  ;;  %p12182_p5 = scmp.lt.s32.totalorder %s12486_s26, %s12486_s26 }
  0x1d   : > { %p12175_p13 = scmp.ne.s32.totalorder %s12486_s26, %s12174_s18  ;;  %p12183_p4 = scmp.lt.s32.totalorder %s12174_s18, %s12174_s18 }
  0x1f   : > { %p12177_p0 = pnand %p12175_p13, %p12513_p8  ;;  %p12184_p7 = por %p12183_p4, %p12182_p5 }
  0x21   : > { %p12178_p2 = pneg %p12177_p0 }
  0x23   : > { %p12185_p9 = pnand %p12184_p7, %p12178_p2 }
  0x25   : > { %12188 = shalt.err (!%p12185_p9)
}
  0x26   : > { %s14451_s19 = smov 64   ;;  %s14452_s20 = smov 4  }
  0x27   : > { %11755 = dma.hbm_to_vmem [thread:$0]  (!%p12497_p6), %s14443_s1, 9216, %s12486_s26, [#allocation7], %s14451_s19, %s14451_s19, %s14452_s20  }
  0x28   : > { %s12189_s11 = scalar_lea.hbm %s14445_s3, 16 }
  0x29   : > { %p12190_p4 = scmp.ne.s32.totalorder %s14445_s3, %s12189_s11  ;;  %p12196_p12 = scmp.lt.u32.totalorder %s12189_s11, %s14445_s3 }
  0x2b   : > { %p12192_p10 = pnand %p12190_p4, %p12513_p8 }
  0x2d   : > { %p12193_p11 = pneg %p12192_p10 }
  0x2f   : > { %p12198_p13 = pnand %p12196_p12, %p12193_p11 }
  0x31   : > { %12201 = shalt.err (!%p12198_p13)
}
  0x32   : > { %s12202_s26 = scalar_lea.vmem %s12501_s30, 16  ;;  %s12209_s17 = scalar_lea.vmem %s12501_s30, 32 }
  0x33   : > { %p12203_p0 = scmp.ne.s32.totalorder %s12501_s30, %s12202_s26  ;;  %p12210_p7 = scmp.lt.s32.totalorder %s12501_s30, %s12501_s30 }
  0x34   : > { %p12211_p9 = scmp.lt.s32.totalorder %s12209_s17, %s12202_s26 }
  0x35   : > { %p12205_p2 = pnand %p12203_p0, %p12513_p8 }
  0x36   : > { %p12212_p4 = por %p12211_p9, %p12210_p7 }
  0x37   : > { %p12206_p5 = pneg %p12205_p2 }
  0x39   : > { %p12213_p10 = pnand %p12212_p4, %p12206_p5 }
  0x3b   : > { %12216 = shalt.err (!%p12213_p10)
}
  0x3c   : > { %11761 = dma.hbm_to_vmem [thread:$0]  (!%p12497_p6), %s14445_s3, 16, %s12501_s30, [#allocation10]  }
  0x3d   : > { %s12217_s10 = scalar_lea.hbm %s14444_s2, 9216 }
  0x3e   : > { %p12218_p11 = scmp.ne.s32.totalorder %s14444_s2, %s12217_s10  ;;  %p12224_p0 = scmp.lt.u32.totalorder %s12217_s10, %s14444_s2 }
  0x40   : > { %p12220_p12 = pnand %p12218_p11, %p12513_p8 }
  0x42   : > { %p12221_p13 = pneg %p12220_p12 }
  0x44   : > { %p12226_p2 = pnand %p12224_p0, %p12221_p13 }
  0x46   : > { %12229 = shalt.err (!%p12226_p2)
}
  0x47   : > { %s12230_s30 = scalar_lea.vmem %s12503_s9, 9216  ;;  %p12238_p4 = scmp.lt.s32.totalorder %s12503_s9, %s12503_s9 }
  0x48   : > { %p12231_p5 = scmp.ne.s32.totalorder %s12503_s9, %s12230_s30  ;;  %p12239_p10 = scmp.lt.s32.totalorder %s12230_s30, %s12230_s30 }
  0x4a   : > { %p12233_p7 = pnand %p12231_p5, %p12513_p8  ;;  %p12240_p11 = por %p12239_p10, %p12238_p4 }
  0x4c   : > { %p12234_p9 = pneg %p12233_p7 }
  0x4e   : > { %p12241_p12 = pnand %p12240_p11, %p12234_p9 }
  0x50   : > { %12244 = shalt.err (!%p12241_p12)
}
  0x51   : > { %11758 = dma.hbm_to_vmem [thread:$0]  (!%p12497_p6), %s14444_s2, 9216, %s12503_s9, [#allocation7], %s14451_s19, %s14451_s19, %s14452_s20  }
  0x52   : > { %s12416_s17 = smov [#allocation11]   ;;  %s12417_s25 = smov [#allocation12]  }
  0x53   : > { %s237_s18 = sshll.u32 %s12416_s17, 4  ;;  %s247_s29 = sshll.u32 %s12417_s25, 4  ;;  %s238_s18 = int_to_ptr.vmem [resolvable:$true] %s237_s18  ;;  %s248_s29 = int_to_ptr.vmem [resolvable:$true] %s247_s29 }
  0x54   : > { %s12245_s11 = scalar_lea.hbm %s14446_s4, 16 }
  0x55   : > { %p12246_p13 = scmp.ne.s32.totalorder %s14446_s4, %s12245_s11  ;;  %p12252_p5 = scmp.lt.u32.totalorder %s12245_s11, %s14446_s4 }
  0x57   : > { %p12248_p0 = pnand %p12246_p13, %p12513_p8 }
  0x59   : > { %p12249_p2 = pneg %p12248_p0 }
  0x5b   : > { %p12254_p7 = pnand %p12252_p5, %p12249_p2 }
  0x5d   : > { %12257 = shalt.err (!%p12254_p7)
}
  0x5e   : > { %s12258_s9 = scalar_lea.vmem %s238_s18, 16  ;;  %s12265_s16 = scalar_lea.vmem %s238_s18, 32 }
  0x5f   : > { %p12259_p9 = scmp.ne.s32.totalorder %s238_s18, %s12258_s9  ;;  %p12266_p11 = scmp.lt.s32.totalorder %s238_s18, %s238_s18 }
  0x60   : > { %p12267_p12 = scmp.lt.s32.totalorder %s12265_s16, %s12258_s9 }
  0x61   : > { %p12261_p4 = pnand %p12259_p9, %p12513_p8 }
  0x62   : > { %p12268_p1 = por %p12267_p12, %p12266_p11 }
  0x63   : > { %p12262_p10 = pneg %p12261_p4 }
  0x65   : > { %p12269_p3 = pnand %p12268_p1, %p12262_p10 }
  0x67   : > { %12272 = shalt.err (!%p12269_p3)
}
  0x68   : > { %11764 = dma.hbm_to_vmem [thread:$0]  (!%p12497_p6), %s14446_s4, 16, %s238_s18, [#allocation10]  }
  0x69   : > { %s12273_s10 = scalar_lea.hbm %s14447_s5, 4608 }
  0x6a   : > { %p12274_p13 = scmp.ne.s32.totalorder %s14447_s5, %s12273_s10  ;;  %p12280_p3 = scmp.lt.u32.totalorder %s12273_s10, %s14447_s5 }
  0x6c   : > { %p12276_p0 = pnand %p12274_p13, %p12513_p8 }
  0x6e   : > { %p12277_p1 = pneg %p12276_p0 }
  0x70   : > { %p12282_p2 = pnand %p12280_p3, %p12277_p1 }
  0x72   : > { %12285 = shalt.err (!%p12282_p2)
}
  0x73   : > { %s12286_s30 = scalar_lea.vmem %s248_s29, 4608  ;;  %p12294_p4 = scmp.lt.s32.totalorder %s248_s29, %s248_s29 }
  0x74   : > { %p12287_p5 = scmp.ne.s32.totalorder %s248_s29, %s12286_s30  ;;  %p12295_p10 = scmp.lt.s32.totalorder %s12286_s30, %s12286_s30 }
  0x76   : > { %p12289_p7 = pnand %p12287_p5, %p12513_p8  ;;  %p12296_p11 = por %p12295_p10, %p12294_p4 }
  0x78   : > { %p12290_p9 = pneg %p12289_p7 }
  0x7a   : > { %p12297_p12 = pnand %p12296_p11, %p12290_p9 }
  0x7c   : > { %12300 = shalt.err (!%p12297_p12)
}
  0x7d   : > { %s12418_s18 = smov 128   ;;  %s12419_s15 = smov 8  }
  0x7e   : > { %11767 = dma.hbm_to_vmem [thread:$0]  (!%p12497_p6), %s14447_s5, 4608, %s248_s29, [#allocation13], %s12418_s18, %s12418_s18, %s12419_s15  }
  0x7f   : > { %s9204_s26 = sadd.s32 4294967294, %s12409_s24   ;;  %s12625_s17 = sadd.s32 1, %s12409_s24  }
  0x80   : > { %s32_s25 = sadd.s32 1, %s12405_s23  ;;  %s29_s8 = ssub.s32 %s12409_s24, %s12625_s17 }
  0x81   : > { %p39_p8 = scmp.ne.s32.totalorder %s12405_s23, %s12401_s22  ;;  %p30_p13 = scmp.eq.s32.totalorder %s29_s8, 0 }
  0x82   : > { %p40_p0 = scmp.eq.s32.totalorder %s12409_s24, 0  ;;  %p45_p1 = scmp.ne.s32.totalorder %s12401_s22, %s12397_s21 }
  0x83   : > { %p174_p3 = scmp.eq.s32.totalorder %s12481_s27, 1  ;;  %p14464_p5 = scmp.eq.s32.totalorder %s12481_s27, 0 }
  0x84   : > { %s12637_s10 = scalar_select %p30_p13, %s12405_s23, %s32_s25  }
  0x85   : > { %p41_p2 = por %p40_p0, %p39_p8  ;;  %p12641_p7 = por %p14464_p5, %p45_p1 }
  0x86   : > { %p12645_p6 = por %p174_p3, %p39_p8  ;;  %p180_p9 = scmp.eq.s32.totalorder %s9204_s26, 1 }
  0x87   : > { %p11781_p4 = scmp.lt.s32.totalorder %s12409_s24, 2  ;;  %s261_s11 = sand.u32 1, %s12405_s23  }
  0x88   : > { %s14466_s29 = scalar_select %p12645_p6, 1, 0 }
  0x89   : > { %p12651_p10 = por %p180_p9, %p45_p1  ;;  %s11723_s13 = smul.u32 172, %s261_s11 }
  0x8a   : > { %p12655_p11 = pnand %p11781_p4, %p41_p2  ;;  %s11724_s30 = smul.u32 2752, %s12409_s24 }
  0x8b   : > { %s14467_s12 = scalar_select %p12651_p10, 1, 0 }
  0x8c   : > { %s12663_s9 = scalar_lea.hbm %s14442_s0, %s11724_s30  ;;  %s265_s16 = scalar_lea.vmem [#allocation3], %s11723_s13 }
  0x8d   : > { %s272_s26 = sshll.u32 %s265_s16, 4  ;;  %s12667_s25 = scalar_lea.sflag [#allocation4], %s261_s11  ;;  %s12665_s26 = int_to_ptr.vmem [resolvable:$true] %s272_s26 }
  0x8e   : > { %s12301_s8 = scalar_lea.hbm %s12663_s9, 2752  ;;  %p12303_p8 = pneg %p12655_p11 }
  0x8f   : > { %p12302_p12 = scmp.ne.s32.totalorder %s12663_s9, %s12301_s8  ;;  %s12306_s15 = scalar_lea.hbm %s14442_s0, 5504 }
  0x90   : > { %p12307_p1 = scmp.lt.u32.totalorder %s12663_s9, %s14442_s0  ;;  %p12308_p3 = scmp.lt.u32.totalorder %s12306_s15, %s12301_s8 }
  0x91   : > { %p12304_p13 = pnand %p12303_p8, %p12302_p12  ;;  %p12310_p5 = scmp.lt.u32.totalorder %s12301_s8, %s12663_s9 }
  0x92   : > { %p12309_p2 = por %p12308_p3, %p12307_p1 }
  0x93   : > { %p12305_p0 = pneg %p12304_p13 }
  0x94   : > { %p12311_p9 = por %p12310_p5, %p12309_p2 }
  0x96   : > { %p12312_p4 = pnand %p12311_p9, %p12305_p0 }
  0x98   : > { %12315 = shalt.err (!%p12312_p4)
}
  0x99   : > { %s12316_s11 = scalar_lea.vmem %s12665_s26, 2752  ;;  %s12420_s13 = smov [#allocation3]  }
  0x9a   : > { %p12317_p12 = scmp.ne.s32.totalorder %s12665_s26, %s12316_s11  ;;  %s12321_s16 = sshll.u32 %s12420_s13, 4  ;;  %s12322_s16 = int_to_ptr.vmem [resolvable:$false] %s12321_s16 }
  0x9b   : > { %s12323_s19 = scalar_lea.vmem %s12322_s16, 5504  ;;  %p12324_p6 = scmp.lt.s32.totalorder %s12665_s26, %s12322_s16 }
  0x9c   : > { %p12319_p13 = pnand %p12317_p12, %p12303_p8  ;;  %p12325_p1 = scmp.lt.s32.totalorder %s12323_s19, %s12316_s11 }
  0x9e   : > { %p12320_p10 = pneg %p12319_p13  ;;  %p12326_p3 = por %p12325_p1, %p12324_p6 }
  0xa0   : > { %p12327_p2 = pnand %p12326_p3, %p12320_p10 }
  0xa2   : > { %12330 = shalt.err (!%p12327_p2)
}
  0xa3   : > { %s14469_s20 = smov 4   ;;  %s14470_s8 = smov 64  }
  0xa4   : > { %11771 = dma.hbm_to_vmem [thread:$0]  (!%p12655_p11), %s12663_s9, 2752, %s12665_s26, %s12667_s25, %s14470_s8, %s14470_s8, %s14469_s20  }
  0xa5   : > { %p14471_p8 = scmp.ne.s32.totalorder %s14461_s28, 0 }
  0xa7   : > { %284 = sbr.rel (%p14471_p8) target bundleno = 1968 (0x7b0), region = 44 }
  0xae   : > { %s12701_s30 = sand.u32 1, %s12401_s22  }
  0xaf   : > { %s11725_s18 = smul.u32 172, %s12701_s30  ;;  %s287_s15 = scalar_lea.sflag [#allocation4], %s12701_s30 }
  0xb1   : > { %s12705_s11 = scalar_lea.vmem [#allocation3], %s11725_s18 }
  0xb2   : > { %12376 = dma.done.wait (%p12641_p7), %s287_s15, 2752  }
  0xb3   : > { %12378 = vsyncadd (%p12641_p7), %s287_s15, 4294964544  ;;  %p14472_p6 = scmp.eq.s32.totalorder %s12481_s27, 0 }
  0xb5   : > { %12380 = dma.done.wait (%p14472_p6), [#allocation7], 18432   ;;  %p14473_p10 = pmov %p14472_p6 }
  0xb6   : > { %p14474_p11 = pmov %p14472_p6 }
  0xb7   : > { %12382 = vsyncadd (%p14473_p10), [#allocation7], 4294948864 }
  0xb8   : > { %12384 = dma.done.wait (%p14474_p11), [#allocation10], 32   ;;  %p14475_p0 = pmov %p14472_p6 }
  0xba   : > { %12386 = vsyncadd (%p14475_p0), [#allocation10], 4294967264  ;;  %p14476_p5 = pmov %p14475_p0 }
  0xbb   : > { %p14477_p9 = pmov %p14475_p0 }
  0xbc   : > { %12388 = dma.done.wait (%p14476_p5), [#allocation13], 4608  }
  0xbd   : > { %12390 = vsyncadd (%p14477_p9), [#allocation13], 4294962688  ;;  %v11834_v0 = vld [vmem:[#allocation6 + $0x40] sm:$0xff]   ;;  %v11835_v1 = vld [vmem:[#allocation6 + $0x48] sm:$0xff]   ;;  %vm557_vm0 = vsmask.f32 7424 }
  0xbe   : > { %10211 = vmatprep.subr.bf16.mxu0 %v11834_v0  ;;  %v11836_v2 = vld [vmem:[#allocation6 + $0x50] sm:$0xff]   ;;  %v11837_v3 = vld [vmem:[#allocation6 + $0x58] sm:$0xff]   ;;  %v11838_v11 = vld [vmem:[#allocation6 + $0x60] sm:$0xff]   ;;  %vm1213_vm1 = vcmask 1046528   ;;  %vm2014_vm2 = vsmask.f32 6400 }
  0xbf   : > { %10212 = vmatpush3.bf16.msra.mxu0 %v11834_v0  ;;  %v394_v4 = vld [vmem:[%s12705_s11] sm:$0xf]  ;;  %v395_v5 = vld [vmem:[%s12705_s11 + $0x4] sm:$0xf]  ;;  %v12728_v7 = vld [vmem:[%s12705_s11 + $0x8] sm:$0xff]   ;;  %vm2485_vm3 = vcmask 1045504  }
  0xc0   : > { %10213 = vmatprep.subr.bf16.mxu0 %v11835_v1  ;;  %v12725_v6 = vcombine.low %v394_v4, %v395_v5  ;;  %v566_v10 = vshll.u32 %v12728_v7, 16  ;;  %v11839_v15 = vld [vmem:[#allocation6 + $0x68] sm:$0xff]   ;;  %v11840_v18 = vld [vmem:[#allocation6 + $0x70] sm:$0xff]   ;;  %v11841_v21 = vld [vmem:[#allocation6 + $0x78] sm:$0xff]   ;;  %v570_v22 = vshrl.u32 %v12728_v7, 16  ;;  %vm3757_vm5 = vcmask 1044480  }
  0xc1   : > { %v12735_v17 = vld [vmem:[%s12705_s11 + $0x10] sm:$0xff]   ;;  %v12738_v19 = vld [vmem:[%s12705_s11 + $0x18] sm:$0xff]   ;;  %v12745_v26 = vld [vmem:[%s12705_s11 + $0x20] sm:$0xff]   ;;  %vm3286_vm4 = vsmask.f32 5376  ;;  %vm342_vm6 = vcmask 1041408  }
  0xc2   : > { %v559_v8 = vshrl.u32 %v12725_v6, 16  ;;  %v561_v9 = vshll.u32 %v12725_v6, 16  ;;  %v568_v13 = vrot.slane %v566_v10, 1  ;;  %v574_v20 = vshll.u32 %v12735_v17, 16  ;;  %v11845_v28 = vld [vmem:[#allocation6] sm:$0xff]   ;;  %v11848_v38 = vld [vmem:[#allocation6 + $0x8] sm:$0xff]  }
  0xc3   : > { %10214 = vmatpush3.bf16.msra.mxu0 %v11835_v1  ;;  %v578_v23 = vshrl.u32 %v12735_v17, 16  ;;  %v582_v24 = vshll.u32 %v12738_v19, 16  ;;  %v12748_v31 = vld [vmem:[%s12705_s11 + $0x28] sm:$0xff]   ;;  %v586_v32 = vshrl.u32 %v12738_v19, 16  ;;  %v590_v33 = vshll.u32 %v12745_v26, 16  ;;  %v12753_v34 = vld [vmem:[%s12705_s11 + $0x30] sm:$0xff]  }
  0xc4   : > { %10215 = vmatprep.subr.bf16.mxu0 %v11836_v2  ;;  %v563_v12 = vrot.slane %v561_v9, 1  ;;  %v576_v25 = vrot.slane %v574_v20, 1  ;;  %v572_v27 = vor.u32 %v570_v22, %v568_v13  ;;  %v12757_v36 = vld [vmem:[%s12705_s11 + $0x38] sm:$0xff]   ;;  %v594_v39 = vshrl.u32 %v12745_v26, 16  ;;  %v12763_v41 = vld [vmem:[%s12705_s11 + $0x40] sm:$0xff]   ;;  %v12768_v46 = vld [vmem:[%s12705_s11 + $0x48] sm:$0xff]  }
  0xc5   : > { %v584_v30 = vrot.slane %v582_v24, 1  ;;  %v598_v40 = vshll.u32 %v12748_v31, 16  ;;  %v592_v43 = vrot.slane %v590_v33, 1  ;;  %v606_v44 = vshll.u32 %v12753_v34, 16  ;;  %v11851_v49 = vld [vmem:[#allocation6 + $0x10] sm:$0xff]   ;;  %v12773_v52 = vld [vmem:[%s12705_s11 + $0x50] sm:$0xff]  }
  0xc6   : > { %v564_v14 = vor.u32 %v563_v12, %v559_v8  ;;  %v580_v29 = vor.u32 %v578_v23, %v576_v25  ;;  %v577_v35 = vsel %vm557_vm0, %v572_v27, %v576_v25  ;;  %v614_v45 = vshll.u32 %v12757_v36, 16  ;;  %v11854_v58 = vld [vmem:[#allocation6 + $0x18] sm:$0xff]   ;;  %v12781_v61 = vld [vmem:[%s12705_s11 + $0x58] sm:$0xff]   ;;  %s11726_s28 = smul.u32 144, %s12701_s30  ;;  %p14616_p4 = scmp.ne.s32.totalorder %s14466_s29, 0 }
  0xc7   : > { %10216 = vmatpush3.bf16.msra.mxu0 %v11836_v2  ;;  %v588_v42 = vor.u32 %v586_v32, %v584_v30  ;;  %v596_v47 = vor.u32 %v594_v39, %v592_v43  ;;  %v600_v48 = vrot.slane %v598_v40, 1  ;;  %v602_v50 = vshrl.u32 %v12748_v31, 16  ;;  %v11857_v8 = vld [vmem:[#allocation6 + $0x20] sm:$0xff]   ;;  %v11863_v25 = vld [vmem:[#allocation6 + $0x30] sm:$0xff]   ;;  %s11727_s14 = smul.u32 2304, %s12481_s27  ;;  %s9070_s27 = scalar_lea.sflag [#allocation5], %s12701_s30 }
  0xc8   : > { %10217 = vmatprep.subr.bf16.mxu0 %v11837_v3  ;;  %v569_v16 = vsel %vm557_vm0, %v564_v14, %v568_v13  ;;  %v585_v37 = vsel %vm557_vm0, %v580_v29, %v584_v30  ;;  %v622_v51 = vshll.u32 %v12763_v41, 16  ;;  %v610_v54 = vshrl.u32 %v12753_v34, 16  ;;  %v12793_v12 = vld [vmem:[%s12705_s11 + $0x68] sm:$0xff]   ;;  %s14300_s7 = scalar_lea.vmem [#allocation14], %s11726_s28  ;;  %s12422_s19 = smov [#allocation14]  }
  0xc9   : > { %10227 = vmatprep.mubr.bf16.mxu0 %v569_v16  ;;  %v593_v53 = vsel %vm557_vm0, %v588_v42, %v592_v43  ;;  %v618_v55 = vshrl.u32 %v12757_v36, 16  ;;  %v608_v56 = vrot.slane %v606_v44, 1  ;;  %v616_v57 = vrot.slane %v614_v45, 1  ;;  %v11867_v29 = vld [vmem:[#allocation6 + $0x38] sm:$0xff]   ;;  %v11869_v39 = vld [vmem:[#allocation6 + $0x80] sm:$0xff]   ;;  %s9083_s9 = sshll.u32 %s14300_s7, 4  ;;  %s14394_s13 = scalar_lea.hbm %s14448_s6, %s11727_s14  ;;  %s14396_s9 = int_to_ptr.vmem [resolvable:$true] %s9083_s9 }
  0xca   : > { %v626_v59 = vshrl.u32 %v12763_v41, 16  ;;  %v630_v60 = vshll.u32 %v12768_v46, 16  ;;  %v601_v62 = vsel %vm557_vm0, %v596_v47, %v600_v48  ;;  %v624_v63 = vrot.slane %v622_v51, 1  ;;  %v12808_v42 = vld [vmem:[%s12705_s11 + $0x78] sm:$0xff]   ;;  %s12331_s16 = scalar_lea.vmem %s14396_s9, 2304  ;;  %s12335_s20 = sshll.u32 %s12422_s19, 4  ;;  %s12336_s20 = int_to_ptr.vmem [resolvable:$false] %s12335_s20 }
  0xcb   : > { %10218 = vmatpush3.bf16.msra.mxu0 %v11837_v3  ;;  %v638_v0 = vshll.u32 %v12773_v52, 16  ;;  %v604_v1 = vor.u32 %v602_v50, %v600_v48  ;;  %v646_v2 = vshll.u32 %v12781_v61, 16  ;;  %v12787_v3 = vld [vmem:[%s12705_s11 + $0x60] sm:$0xff]   ;;  %v612_v4 = vor.u32 %v610_v54, %v608_v56  ;;  %v12819_v54 = vld [vmem:[%s12705_s11 + $0x88] sm:$0xff]   ;;  %p12332_p7 = scmp.ne.s32.totalorder %s14396_s9, %s12331_s16  ;;  %s12337_s8 = scalar_lea.vmem %s12336_s20, 4608 }
  0xcc   : > { %10219 = vmatprep.subr.bf16.mxu0 %v11838_v11  ;;  %v634_v5 = vshrl.u32 %v12768_v46, 16  ;;  %v632_v9 = vrot.slane %v630_v60, 1  ;;  %v642_v10 = vshrl.u32 %v12773_v52, 16  ;;  %v654_v16 = vshll.u32 %v12787_v3, 16  ;;  %p12338_p1 = scmp.lt.s32.totalorder %s14396_s9, %s12336_s20  ;;  %p12339_p3 = scmp.lt.s32.totalorder %s12337_s8, %s12331_s16 }
  0xcd   : > { %v609_v13 = vsel %vm557_vm0, %v604_v1, %v608_v56  ;;  %v640_v14 = vrot.slane %v638_v0, 1  ;;  %v617_v20 = vsel %vm557_vm0, %v612_v4, %v616_v57  ;;  %v662_v22 = vshll.u32 %v12793_v12, 16  ;;  %v12827_v0 = vld [vmem:[%s12705_s11 + $0x90] ss:$0 sps:$4 sm:$0x11]   ;;  %p12333_p12 = pnand %p12332_p7, %p14616_p4 }
  0xce   : > { %v620_v23 = vor.u32 %v618_v55, %v616_v57  ;;  %v656_v24 = vrot.slane %v654_v16, 1  ;;  %v628_v27 = vor.u32 %v626_v59, %v624_v63  ;;  %v678_v47 = vshll.u32 %v12808_v42, 16  ;;  %p12340_p2 = por %p12339_p3, %p12338_p1 }
  0xcf   : > { %10220 = vmatpush3.bf16.msra.mxu0 %v11838_v11  ;;  %v650_v11 = vshrl.u32 %v12781_v61, 16  ;;  %v664_v33 = vrot.slane %v662_v22, 1  ;;  %v644_v40 = vor.u32 %v642_v10, %v640_v14  ;;  %v682_v50 = vshrl.u32 %v12808_v42, 16  ;;  %v11872_v22 = vld [vmem:[#allocation6 + $0x98] sm:$0xff]   ;;  %p12334_p13 = pneg %p12333_p12 }
  0xd0   : > { %10221 = vmatprep.subr.bf16.mxu0 %v11839_v15  ;;  %v625_v30 = vsel %vm557_vm0, %v620_v23, %v624_v63  ;;  %v633_v32 = vsel %vm557_vm0, %v628_v27, %v632_v9  ;;  %v680_v57 = vrot.slane %v678_v47, 1  ;;  %v702_v10 = vshll.u32 %v12827_v0, 16  ;;  %v11873_v23 = vld [vmem:[#allocation6 + $0xa0] sm:$0xff]  }
  0xd1   : > { %v1223_v47 = vrot.slane %v12748_v31, 1  ;;  %vm343_vm7 = vsmask.f32 1280  ;;  %vm348_vm9 = vcmask 1043457   ;;  %vm349_vm10 = vsmask.f32 7942  ;;  %p12341_p8 = pnand %p12340_p2, %p12334_p13 }
  0xd2   : > { %v704_v16 = vrot.slane %v702_v10, 1  ;;  %vm13289_vm8 = vmand %vm342_vm6, %vm343_vm7  ;;  %vm4477_vm12 = vsmask.f32 5392 }
  0xd3   : > { %10222 = vmatpush3.bf16.msra.mxu0 %v11839_v15  ;;  %v648_v15 = vrot.slane %v646_v2, 1  ;;  %vm13295_vm11 = vmand %vm348_vm9, %vm349_vm10 }
  0xd4   : > { %10223 = vmatprep.subr.bf16.mxu0 %v11840_v18  ;;  %vm13322_vm13 = vmor %vm343_vm7, %vm4477_vm12 }
  0xd5   : > { %v649_v44 = vsel %vm557_vm0, %v644_v40, %v648_v15  ;;  %v652_v48 = vor.u32 %v650_v11, %v648_v15 }
  0xd7   : > { %10224 = vmatpush3.bf16.msra.mxu0 %v11840_v18  ;;  %v11860_v18 = vld [vmem:[#allocation6 + $0x28] sm:$0xff]   ;;  %v657_v55 = vsel %vm557_vm0, %v652_v48, %v656_v24  ;;  %v11880_v48 = vld [vmem:[#allocation6 + $0xd0] sm:$0xff]  }
  0xd8   : > { %10225 = vmatprep.subr.bf16.mxu0 %v11841_v21 }
  0xdb   : > { %10226 = vmatpush3.bf16.msra.mxu0 %v11841_v21  ;;  %v658_v21 = vshrl.u32 %v12787_v3, 16 }
  0xdc   : > { %10263 = vmatprep.subr.bf16.mxu0 %v11845_v28 }
  0xdd   : > { %v660_v51 = vor.u32 %v658_v21, %v656_v24  ;;  %v11871_v21 = vld [vmem:[#allocation6 + $0x90] sm:$0xff]   ;;  %v11874_v24 = vld [vmem:[#allocation6 + $0xa8] sm:$0xff]  }
  0xde   : > { %10228 = vmatmul.mubr.bf16.vlgmr.msra.gmra.mrb[0].mxu0 %v577_v35  ;;  %v666_v35 = vshrl.u32 %v12793_v12, 16 }
  0xdf   : > { %10264 = vmatpush3.bf16.msra.mxu0 %v11845_v28  ;;  %10231 = vmatprep.mubr.bf16.mxu0 %v585_v37  ;;  %v12801_v28 = vld [vmem:[%s12705_s11 + $0x70] sm:$0xff]   ;;  %v636_v37 = vor.u32 %v634_v5, %v632_v9  ;;  %v665_v56 = vsel %vm557_vm0, %v660_v51, %v664_v33  ;;  %v698_v5 = vshrl.u32 %v12819_v54, 16 }
  0xe0   : > { %10265 = vmatprep.subr.bf16.mxu0 %v11848_v38  ;;  %v674_v45 = vshrl.u32 %v12801_v28, 16  ;;  %v668_v59 = vor.u32 %v666_v35, %v664_v33  ;;  %v12121_v33 = vld [vmem:[%s12705_s11 + $0x10] sm:$0xff]   ;;  %v1241_v10 = vrot.slane %v12801_v28, 1 }
  0xe1   : > { %v641_v43 = vsel %vm557_vm0, %v636_v37, %v640_v14  ;;  %v1217_v35 = vrot.slane %v12121_v33, 1  ;;  %v12122_v37 = vld [vmem:[%s12705_s11 + $0x18] sm:$0xff]   ;;  %v11881_v51 = vld [vmem:[#allocation6 + $0xd8] sm:$0xff]  }
  0xe2   : > { %v11895_v33 = vld [vmem:[#allocation6 + $0x110] sm:$0xff]  }
  0xe3   : > { %10266 = vmatpush3.bf16.msra.mxu0 %v11848_v38  ;;  %v670_v38 = vshll.u32 %v12801_v28, 16 }
  0xe4   : > { %10267 = vmatprep.subr.bf16.mxu0 %v11851_v49 }
  0xe6   : > { %10232 = vmatmul.mubr.bf16.gmra.mrb[4].mxu0 %v593_v53  ;;  %v12816_v53 = vld [vmem:[%s12705_s11 + $0x80] sm:$0xff]  }
  0xe7   : > { %10235 = vmatprep.mubr.bf16.mxu0 %v601_v62  ;;  %10268 = vmatpush3.bf16.msra.mxu0 %v11851_v49  ;;  %v672_v49 = vrot.slane %v670_v38, 1  ;;  %v690_v60 = vshrl.u32 %v12816_v53, 16  ;;  %v694_v62 = vshll.u32 %v12819_v54, 16  ;;  %v1219_v38 = vrot.slane %v12122_v37, 1 }
  0xe8   : > { %10269 = vmatprep.subr.bf16.mxu0 %v11854_v58 }
  0xe9   : > { %v676_v63 = vor.u32 %v674_v45, %v672_v49  ;;  %v673_v1 = vsel %vm557_vm0, %v668_v59, %v672_v49  ;;  %v696_v9 = vrot.slane %v694_v62, 1  ;;  %v1220_v40 = vsel %vm1213_vm1, %v1217_v35, %v1219_v38  ;;  %v11883_v59 = vld [vmem:[#allocation6 + $0xe8] sm:$0xff]  }
  0xea   : > { %v1231_v62 = vrot.slane %v12768_v46, 1 }
  0xeb   : > { %10270 = vmatpush3.bf16.msra.mxu0 %v11854_v58  ;;  %v686_v58 = vshll.u32 %v12816_v53, 16  ;;  %v681_v2 = vsel %vm557_vm0, %v676_v63, %v680_v57  ;;  %v700_v15 = vor.u32 %v698_v5, %v696_v9 }
  0xec   : > { %10271 = vmatprep.subr.bf16.mxu0 %v11857_v8 }
  0xed   : > { %v688_v4 = vrot.slane %v686_v58, 1 }
  0xee   : > { %10236 = vmatmul.mubr.bf16.gmra.mrb[8].mxu0 %v609_v13 }
  0xef   : > { %10239 = vmatprep.mubr.bf16.mxu0 %v617_v20  ;;  %10272 = vmatpush3.bf16.msra.mxu0 %v11857_v8  ;;  %v684_v8 = vor.u32 %v682_v50, %v680_v57  ;;  %v692_v11 = vor.u32 %v690_v60, %v688_v4  ;;  %v11870_v20 = vld [vmem:[#allocation6 + $0x88] sm:$0xff]   ;;  %v11882_v57 = vld [vmem:[#allocation6 + $0xe0] sm:$0xff]   ;;  %v1229_v60 = vrot.slane %v12763_v41, 1 }
  0xf0   : > { %10273 = vmatprep.subr.bf16.mxu0 %v11860_v18 }
  0xf1   : > { %v689_v13 = vsel %vm557_vm0, %v684_v8, %v688_v4  ;;  %v697_v14 = vsel %vm557_vm0, %v692_v11, %v696_v9  ;;  %v1232_v63 = vsel %vm1213_vm1, %v1229_v60, %v1231_v62  ;;  %v1235_v4 = vrot.slane %v12781_v61, 1 }
  0xf2   : > { %v1237_v8 = vrot.slane %v12787_v3, 1  ;;  %v1243_v11 = vrot.slane %v12808_v42, 1 }
  0xf3   : > { %10274 = vmatpush3.bf16.msra.mxu0 %v11860_v18  ;;  %v705_v18 = vsel %vm557_vm0, %v700_v15, %v704_v16  ;;  %v1530_v15 = vld [vmem:[%s12705_s11 + $0x8] sm:$0xe]  ;;  %v12890_v16 = vld [vmem:[%s12705_s11 + $0xc] sm:$0xf] }
  0xf4   : > { %10275 = vmatprep.subr.bf16.mxu0 %v11863_v25  ;;  %v1238_v9 = vsel %vm1213_vm1, %v1235_v4, %v1237_v8 }
  0xf6   : > { %10240 = vmatmul.mubr.bf16.gmra.mrb[12].mxu0 %v625_v30 }
  0xf7   : > { %10243 = vmatprep.mubr.bf16.mxu0 %v633_v32  ;;  %10276 = vmatpush3.bf16.msra.mxu0 %v11863_v25 }
  0xf8   : > { %10277 = vmatprep.subr.bf16.mxu0 %v11867_v29 }
  0xfb   : > { %10278 = vmatpush3.bf16.msra.mxu0 %v11867_v29  ;;  %v12120_v29 = vld [vmem:[%s12705_s11 + $0x8] sm:$0xff]  }
  0xfc   : > { %10315 = vmatprep.subr.bf16.mxu0 %v11869_v39  ;;  %v1215_v30 = vrot.slane %v12120_v29, 1 }
  0xfe   : > { %10244 = vmatmul.mubr.bf16.gmra.mrb[16].mxu0 %v641_v43  ;;  %v11879_v43 = vld [vmem:[#allocation6 + $0xc8] sm:$0xff]  }
  0xff   : > { %10247 = vmatprep.mubr.bf16.mxu0 %v649_v44  ;;  %v12123_v44 = vld [vmem:[%s12705_s11 + $0x20] sm:$0xff]  }
 0x100   : > { %v1221_v45 = vrot.slane %v12123_v44, 1  ;;  %v12934_v44 = vld [vmem:[%s12705_s11 + $0x48] sm:$0xff]  }
 0x102   : > { %v1222_v49 = vsel %vm1213_vm1, %v1219_v38, %v1221_v45  ;;  %v1224_v50 = vsel %vm1213_vm1, %v1221_v45, %v1223_v47  ;;  %v11901_v45 = vld [vmem:[#allocation6 + $0x120] sm:$0xff]  }
 0x106   : > { %10248 = vmatmul.mubr.bf16.gmra.mrb[20].mxu0 %v657_v55  ;;  %v1225_v55 = vrot.slane %v12753_v34, 1 }
 0x107   : > { %10251 = vmatprep.mubr.bf16.mxu0 %v665_v56  ;;  %v1227_v56 = vrot.slane %v12757_v36, 1 }
 0x108   : > { %v1226_v58 = vsel %vm1213_vm1, %v1223_v47, %v1225_v55  ;;  %v12937_v47 = vld [vmem:[%s12705_s11 + $0x50] sm:$0xff]  }
 0x10e   : > { %10252 = vmatmul.mubr.bf16.gmra.mrb[24].mxu0 %v673_v1  ;;  %v11885_v1 = vld [vmem:[#allocation6 + $0xf8] sm:$0xff]  }
 0x10f   : > { %10255 = vmatprep.mubr.bf16.mxu0 %v681_v2  ;;  %v1233_v2 = vrot.slane %v12773_v52, 1 }
 0x111   : > { %v1236_v5 = vsel %vm1213_vm1, %v1233_v2, %v1235_v4 }
 0x116   : > { %10256 = vmatmul.mubr.bf16.gmra.mrb[28].mxu0 %v689_v13 }
 0x117   : > { %10259 = vmatprep.mubr.bf16.mxu0 %v697_v14  ;;  %v1244_v14 = vsel %vm1213_vm1, %v1241_v10, %v1243_v11 }
 0x11e   : > { %10260 = vmatmul.mubr.bf16.gmra.mrb[32].mxu0 %v705_v18  ;;  %v12893_v18 = vld [vmem:[%s12705_s11 + $0x10] sm:$0xff]  }
 0x11f   : > { %10279 = vmatprep.mubr.bf16.mxu0 %v12725_v6  ;;  %v11875_v6 = vld [vmem:[#allocation6 + $0xb0] sm:$0xff]  }
 0x126   : > { %10280 = vmatmul.mubr.bf16.vlgmr.msra.gmra.mrb[0].mxu0 %v12728_v7  ;;  %v11876_v7 = vld [vmem:[#allocation6 + $0xb8] sm:$0xff]  }
 0x127   : > { %10316 = vmatpush3.bf16.msra.mxu0 %v11869_v39  ;;  %10283 = vmatprep.mubr.bf16.mxu0 %v12735_v17  ;;  %v11878_v17 = vld [vmem:[#allocation6 + $0xc0] sm:$0xff]   ;;  %v1218_v39 = vsel %vm1213_vm1, %v1215_v30, %v1217_v35  ;;  %v12927_v35 = vld [vmem:[%s12705_s11 + $0x40] sm:$0xff]  }
 0x128   : > { %10317 = vmatprep.subr.bf16.mxu0 %v11870_v20 }
 0x12b   : > { %10318 = vmatpush3.bf16.msra.mxu0 %v11870_v20  ;;  %v12898_v20 = vcombine.low %v1530_v15, %v12890_v16 }
 0x12c   : > { %10319 = vmatprep.subr.bf16.mxu0 %v11871_v21 }
 0x12e   : > { %10284 = vmatmul.mubr.bf16.gmra.mrb[4].mxu0 %v12738_v19  ;;  %v1192_v19 = vld [vmem:[%s12705_s11] sm:$0xe] }
 0x12f   : > { %10287 = vmatprep.mubr.bf16.mxu0 %v12745_v26  ;;  %10320 = vmatpush3.bf16.msra.mxu0 %v11871_v21  ;;  %v12119_v26 = vld [vmem:[%s12705_s11 + $0x4] sm:$0xf]  ;;  %v1678_v21 = vrot.slane %v12893_v18, 1 }
 0x130   : > { %10321 = vmatprep.subr.bf16.mxu0 %v11872_v22  ;;  %v9254_v25 = vcombine.low %v1192_v19, %v12119_v26  ;;  %v12917_v19 = vld [vmem:[%s12705_s11 + $0x30] sm:$0xff]  }
 0x132   : > { %v1214_v27 = vrot.slane %v9254_v25, 1 }
 0x133   : > { %10322 = vmatpush3.bf16.msra.mxu0 %v11872_v22  ;;  %v12904_v22 = vld [vmem:[%s12705_s11 + $0x18] sm:$0xff]  }
 0x134   : > { %10323 = vmatprep.subr.bf16.mxu0 %v11873_v23  ;;  %v1216_v32 = vsel %vm1213_vm1, %v1214_v27, %v1215_v30  ;;  %v11892_v27 = vld [vmem:[#allocation6 + $0x108] sm:$0xff]   ;;  %v1686_v30 = vrot.slane %v12917_v19, 1 }
 0x136   : > { %10288 = vmatmul.mubr.bf16.gmra.mrb[8].mxu0 %v12748_v31  ;;  %v1228_v31 = vsel %vm1213_vm1, %v1225_v55, %v1227_v56  ;;  %v1694_v55 = vrot.slane %v12937_v47, 1 }
 0x137   : > { %10291 = vmatprep.mubr.bf16.mxu0 %v12753_v34  ;;  %10324 = vmatpush3.bf16.msra.mxu0 %v11873_v23  ;;  %v11884_v34 = vld [vmem:[#allocation6 + $0xf0] sm:$0xff]  }
 0x138   : > { %10325 = vmatprep.subr.bf16.mxu0 %v11874_v24  ;;  %v12907_v23 = vld [vmem:[%s12705_s11 + $0x20] sm:$0xff]  }
 0x13b   : > { %10326 = vmatpush3.bf16.msra.mxu0 %v11874_v24 }
 0x13c   : > { %10327 = vmatprep.subr.bf16.mxu0 %v11875_v6 }
 0x13e   : > { %10292 = vmatmul.mubr.bf16.gmra.mrb[12].mxu0 %v12757_v36  ;;  %v1230_v36 = vsel %vm1213_vm1, %v1227_v56, %v1229_v60  ;;  %v12944_v56 = vld [vmem:[%s12705_s11 + $0x58] sm:$0xff]   ;;  %v11911_v60 = vld [vmem:[#allocation6 + $0x138] sm:$0xff]  }
 0x13f   : > { %10295 = vmatprep.mubr.bf16.mxu0 %v12763_v41  ;;  %10328 = vmatpush3.bf16.msra.mxu0 %v11875_v6  ;;  %v11889_v41 = vld [vmem:[#allocation6 + $0x100] sm:$0xff]  }
 0x140   : > { %10329 = vmatprep.subr.bf16.mxu0 %v11876_v7 }
 0x143   : > { %10330 = vmatpush3.bf16.msra.mxu0 %v11876_v7  ;;  %v1680_v7 = vrot.slane %v12904_v22, 1 }
 0x144   : > { %10367 = vmatprep.subr.bf16.mxu0 %v11878_v17 }
 0x145   : > { %v1681_v26 = vsel %vm1213_vm1, %v1678_v21, %v1680_v7 }
 0x146   : > { %10296 = vmatmul.mubr.bf16.gmra.mrb[16].mxu0 %v12768_v46  ;;  %v1234_v46 = vsel %vm1213_vm1, %v1231_v62, %v1233_v2  ;;  %v1696_v62 = vrot.slane %v12944_v56, 1 }
 0x147   : > { %10299 = vmatprep.mubr.bf16.mxu0 %v12773_v52  ;;  %v1239_v52 = vrot.slane %v12793_v12, 1 }
 0x148   : > { %v1697_v2 = vsel %vm1213_vm1, %v1694_v55, %v1696_v62 }
 0x149   : > { %v1242_v13 = vsel %vm1213_vm1, %v1239_v52, %v1241_v10 }
 0x14e   : > { %10300 = vmatmul.mubr.bf16.gmra.mrb[20].mxu0 %v12781_v61  ;;  %v1240_v61 = vsel %vm1213_vm1, %v1237_v8, %v1239_v52  ;;  %v12970_v8 = vld [vmem:[%s12705_s11 + $0x80] sm:$0xff]  }
 0x14f   : > { %10303 = vmatprep.mubr.bf16.mxu0 %v12787_v3  ;;  %v1245_v3 = vrot.slane %v12816_v53, 1  ;;  %v1706_v10 = vrot.slane %v12970_v8, 1 }
 0x156   : > { %10304 = vmatmul.mubr.bf16.gmra.mrb[24].mxu0 %v12793_v12  ;;  %v1247_v12 = vrot.slane %v12819_v54, 1 }
 0x157   : > { %10307 = vmatprep.mubr.bf16.mxu0 %v12801_v28  ;;  %v1246_v28 = vsel %vm1213_vm1, %v1243_v11, %v1245_v3  ;;  %v12977_v11 = vld [vmem:[%s12705_s11 + $0x88] sm:$0xff]  }
 0x15e   : > { %10308 = vmatmul.mubr.bf16.gmra.mrb[28].mxu0 %v12808_v42  ;;  %v1248_v42 = vsel %vm1213_vm1, %v1245_v3, %v1247_v12 }
 0x15f   : > { %10311 = vmatprep.mubr.bf16.mxu0 %v12816_v53  ;;  %v1249_v53 = vrot.slane %v12827_v0, 1  ;;  %v1682_v0 = vrot.slane %v12907_v23, 1 }
 0x161   : > { %v1250_v24 = vsel %vm1213_vm1, %v1247_v12, %v1249_v53  ;;  %v1683_v25 = vsel %vm1213_vm1, %v1680_v7, %v1682_v0  ;;  %v1708_v12 = vrot.slane %v12977_v11, 1  ;;  %v2024_v53 = vshrl.u32 %v12893_v18, 16 }
 0x166   : > { %10312 = vmatmul.mubr.bf16.gmra.mrb[32].mxu0 %v12819_v54  ;;  %v1677_v54 = vrot.slane %v12898_v20, 1 }
 0x167   : > { %10331 = vmatprep.mubr.bf16.mxu0 %v1216_v32  ;;  %v12924_v32 = vld [vmem:[%s12705_s11 + $0x38] sm:$0xff]  }
 0x168   : > { %v1679_v6 = vsel %vm1213_vm1, %v1677_v54, %v1678_v21  ;;  %v2027_v54 = vshll.u32 %v12893_v18, 16  ;;  %v1709_v21 = vsel %vm1213_vm1, %v1706_v10, %v1708_v12 }
 0x16e   : > { %10332 = vmatmul.mubr.bf16.vlgmr.msra.gmra.mrb[0].mxu0 %v1218_v39  ;;  %v11898_v39 = vld [vmem:[#allocation6 + $0x118] sm:$0xff]  }
 0x16f   : > { %10368 = vmatpush3.bf16.msra.mxu0 %v11878_v17  ;;  %10335 = vmatprep.mubr.bf16.mxu0 %v1220_v40  ;;  %v12914_v17 = vld [vmem:[%s12705_s11 + $0x28] sm:$0xff]   ;;  %v1688_v40 = vrot.slane %v12924_v32, 1 }
 0x170   : > { %10369 = vmatprep.subr.bf16.mxu0 %v11879_v43  ;;  %v1684_v29 = vrot.slane %v12914_v17, 1 }
 0x172   : > { %v1685_v37 = vsel %vm1213_vm1, %v1682_v0, %v1684_v29  ;;  %v1687_v38 = vsel %vm1213_vm1, %v1684_v29, %v1686_v30  ;;  %v2033_v29 = vshrl.u32 %v12904_v22, 16 }
 0x173   : > { %10370 = vmatpush3.bf16.msra.mxu0 %v11879_v43  ;;  %v1690_v43 = vrot.slane %v12927_v35, 1 }
 0x174   : > { %10371 = vmatprep.subr.bf16.mxu0 %v11880_v48 }
 0x176   : > { %10336 = vmatmul.mubr.bf16.gmra.mrb[4].mxu0 %v1222_v49  ;;  %v1691_v49 = vsel %vm1213_vm1, %v1688_v40, %v1690_v43 }
 0x177   : > { %10339 = vmatprep.mubr.bf16.mxu0 %v1224_v50  ;;  %10372 = vmatpush3.bf16.msra.mxu0 %v11880_v48  ;;  %v1689_v48 = vsel %vm1213_vm1, %v1686_v30, %v1688_v40  ;;  %v11904_v50 = vld [vmem:[#allocation6 + $0x128] sm:$0xff]   ;;  %v2035_v40 = vrot.slane %v2033_v29, 1 }
 0x178   : > { %10373 = vmatprep.subr.bf16.mxu0 %v11881_v51 }
 0x17b   : > { %10374 = vmatpush3.bf16.msra.mxu0 %v11881_v51  ;;  %v1692_v51 = vrot.slane %v12934_v44, 1 }
 0x17c   : > { %10375 = vmatprep.subr.bf16.mxu0 %v11882_v57 }
 0x17e   : > { %10340 = vmatmul.mubr.bf16.gmra.mrb[8].mxu0 %v1226_v58  ;;  %v12947_v58 = vld [vmem:[%s12705_s11 + $0x60] sm:$0xff]  }
 0x17f   : > { %10343 = vmatprep.mubr.bf16.mxu0 %v1228_v31  ;;  %10376 = vmatpush3.bf16.msra.mxu0 %v11882_v57  ;;  %v11907_v57 = vld [vmem:[#allocation6 + $0x130] sm:$0xff]   ;;  %v1693_v31 = vsel %vm1213_vm1, %v1690_v43, %v1692_v51 }
 0x180   : > { %10377 = vmatprep.subr.bf16.mxu0 %v11883_v59 }
 0x183   : > { %10378 = vmatpush3.bf16.msra.mxu0 %v11883_v59  ;;  %v1695_v59 = vsel %vm1213_vm1, %v1692_v51, %v1694_v55  ;;  %v2051_v51 = vshrl.u32 %v12914_v17, 16  ;;  %v2054_v55 = vshll.u32 %v12914_v17, 16 }
 0x184   : > { %10379 = vmatprep.subr.bf16.mxu0 %v11884_v34 }
 0x186   : > { %10344 = vmatmul.mubr.bf16.gmra.mrb[12].mxu0 %v1230_v36  ;;  %v12954_v36 = vld [vmem:[%s12705_s11 + $0x68] sm:$0xff]  }
 0x187   : > { %10347 = vmatprep.mubr.bf16.mxu0 %v1232_v63  ;;  %10380 = vmatpush3.bf16.msra.mxu0 %v11884_v34  ;;  %v1698_v34 = vrot.slane %v12947_v58, 1  ;;  %v12956_v63 = vld [vmem:[#allocation6 + $0x140] sm:$0xff]  }
 0x188   : > { %10381 = vmatprep.subr.bf16.mxu0 %v11885_v1 }
 0x189   : > { %v1699_v4 = vsel %vm1213_vm1, %v1696_v62, %v1698_v34  ;;  %v2053_v62 = vrot.slane %v2051_v51, 1  ;;  %v11919_v51 = vld [vmem:[#allocation6 + $0x170] sm:$0xff]  }
 0x18b   : > { %10382 = vmatpush3.bf16.msra.mxu0 %v11885_v1  ;;  %v12959_v1 = vld [vmem:[%s12705_s11 + $0x70] sm:$0xff]  }
 0x18c   : > { %10419 = vmatprep.subr.bf16.mxu0 %v11889_v41 }
 0x18e   : > { %10348 = vmatmul.mubr.bf16.gmra.mrb[16].mxu0 %v1234_v46  ;;  %v1702_v46 = vrot.slane %v12959_v1, 1 }
 0x18f   : > { %10351 = vmatprep.mubr.bf16.mxu0 %v1236_v5  ;;  %v12967_v5 = vld [vmem:[%s12705_s11 + $0x78] sm:$0xff]  }
 0x196   : > { %10352 = vmatmul.mubr.bf16.gmra.mrb[20].mxu0 %v1238_v9 }
 0x197   : > { %10355 = vmatprep.mubr.bf16.mxu0 %v1240_v61  ;;  %v1704_v61 = vrot.slane %v12967_v5, 1 }
 0x199   : > { %v1707_v3 = vsel %vm1213_vm1, %v1704_v61, %v1706_v10 }
 0x19e   : > { %10356 = vmatmul.mubr.bf16.gmra.mrb[24].mxu0 %v1242_v13  ;;  %v12980_v13 = vld [vmem:[%s12705_s11 + $0x90] sm:$0xff]  }
 0x19f   : > { %10359 = vmatprep.mubr.bf16.mxu0 %v1244_v14  ;;  %v1705_v14 = vsel %vm1213_vm1, %v1702_v46, %v1704_v61  ;;  %v1710_v15 = vrot.slane %v12980_v13, 1  ;;  %v2072_v61 = vshll.u32 %v12924_v32, 16 }
 0x1a6   : > { %10360 = vmatmul.mubr.bf16.gmra.mrb[28].mxu0 %v1246_v28  ;;  %v2016_v28 = vshrl.u32 %v12898_v20, 16 }
 0x1a7   : > { %10363 = vmatprep.mubr.bf16.mxu0 %v1248_v42  ;;  %v2019_v42 = vshll.u32 %v12898_v20, 16  ;;  %v2036_v20 = vshll.u32 %v12904_v22, 16 }
 0x1a8   : > { %v2018_v7 = vrot.slane %v2016_v28, 1 }
 0x1a9   : > { %v2021_v0 = vrot.slane %v2019_v42, 2  ;;  %v2038_v43 = vrot.slane %v2036_v20, 2  ;;  %v2074_v42 = vrot.slane %v2072_v61, 2  ;;  %v13028_v61 = vld [vmem:[#allocation6 + $0x180] sm:$0xff]  }
 0x1ab   : > { %v2022_v30 = vor.u32 %v2021_v0, %v2018_v7  ;;  %v2090_v7 = vshll.u32 %v12934_v44, 16 }
 0x1ae   : > { %10364 = vmatmul.mubr.bf16.gmra.mrb[32].mxu0 %v1250_v24  ;;  %v1711_v24 = vsel %vm1213_vm1, %v1708_v12, %v1710_v15  ;;  %v2081_v12 = vshll.u32 %v12927_v35, 16 }
 0x1af   : > { %10383 = vmatprep.mubr.bf16.mxu0 %v1679_v6  ;;  %v11912_v6 = vld [vmem:[%s12705_s11 + $0x98] ss:$0 sps:$4 sm:$0x11]  }
 0x1b6   : > { %10384 = vmatmul.mubr.bf16.vlgmr.msra.gmra.mrb[0].mxu0 %v1681_v26  ;;  %v2026_v26 = vrot.slane %v2024_v53, 1 }
 0x1b7   : > { %10420 = vmatpush3.bf16.msra.mxu0 %v11889_v41  ;;  %10387 = vmatprep.mubr.bf16.mxu0 %v1683_v25  ;;  %v1700_v41 = vrot.slane %v12954_v36, 1  ;;  %v2029_v25 = vrot.slane %v2027_v54, 2  ;;  %v2083_v54 = vrot.slane %v2081_v12, 2 }
 0x1b8   : > { %10421 = vmatprep.subr.bf16.mxu0 %v11892_v27 }
 0x1b9   : > { %v1701_v52 = vsel %vm1213_vm1, %v1698_v34, %v1700_v41  ;;  %v1703_v9 = vsel %vm1213_vm1, %v1700_v41, %v1702_v46  ;;  %v2056_v34 = vrot.slane %v2054_v55, 2 }
 0x1bb   : > { %10422 = vmatpush3.bf16.msra.mxu0 %v11892_v27  ;;  %v1712_v27 = vrot.slane %v11912_v6, 1  ;;  %v2087_v6 = vshrl.u32 %v12934_v44, 16 }
 0x1bc   : > { %10423 = vmatprep.subr.bf16.mxu0 %v11895_v33 }
 0x1bd   : > { %v2089_v20 = vrot.slane %v2087_v6, 1 }
 0x1be   : > { %10388 = vmatmul.mubr.bf16.gmra.mrb[4].mxu0 %v1685_v37  ;;  %v2042_v37 = vshrl.u32 %v12907_v23, 16 }
 0x1bf   : > { %10391 = vmatprep.mubr.bf16.mxu0 %v1687_v38  ;;  %10424 = vmatpush3.bf16.msra.mxu0 %v11895_v33  ;;  %v2030_v33 = vor.u32 %v2029_v25, %v2026_v26  ;;  %v2045_v38 = vshll.u32 %v12907_v23, 16  ;;  %v2096_v26 = vshrl.u32 %v12937_v47, 16  ;;  %v2099_v25 = vshll.u32 %v12937_v47, 16 }
 0x1c0   : > { %10425 = vmatprep.subr.bf16.mxu0 %v11898_v39 }
 0x1c3   : > { %10426 = vmatpush3.bf16.msra.mxu0 %v11898_v39  ;;  %v1713_v39 = vsel %vm1213_vm1, %v1710_v15, %v1712_v27  ;;  %v11917_v27 = vld [vmem:[#allocation6 + $0x160] sm:$0xff]  }
 0x1c4   : > { %10427 = vmatprep.subr.bf16.mxu0 %v11901_v45 }
 0x1c6   : > { %10392 = vmatmul.mubr.bf16.gmra.mrb[8].mxu0 %v1689_v48  ;;  %v2044_v48 = vrot.slane %v2042_v37, 1  ;;  %v2098_v37 = vrot.slane %v2096_v26, 1 }
 0x1c7   : > { %10395 = vmatprep.mubr.bf16.mxu0 %v1691_v49  ;;  %10428 = vmatpush3.bf16.msra.mxu0 %v11901_v45  ;;  %v2031_v45 = vsel %vm2014_vm2, %v2022_v30, %v2030_v33  ;;  %v2047_v49 = vrot.slane %v2045_v38, 2  ;;  %v2092_v30 = vrot.slane %v2090_v7, 2  ;;  %v2101_v38 = vrot.slane %v2099_v25, 2 }
 0x1c8   : > { %10429 = vmatprep.subr.bf16.mxu0 %v11904_v50 }
 0x1cb   : > { %10430 = vmatpush3.bf16.msra.mxu0 %v11904_v50  ;;  %v2039_v50 = vor.u32 %v2038_v43, %v2035_v40  ;;  %v2093_v40 = vor.u32 %v2092_v30, %v2089_v20  ;;  %v2105_v43 = vshrl.u32 %v12944_v56, 16  ;;  %v2159_v20 = vshrl.u32 %v12977_v11, 16 }
 0x1cc   : > { %10431 = vmatprep.subr.bf16.mxu0 %v11907_v57  ;;  %v2162_v30 = vshll.u32 %v12977_v11, 16 }
 0x1ce   : > { %10396 = vmatmul.mubr.bf16.gmra.mrb[12].mxu0 %v1693_v31  ;;  %v2060_v31 = vshrl.u32 %v12917_v19, 16 }
 0x1cf   : > { %10399 = vmatprep.mubr.bf16.mxu0 %v1695_v59  ;;  %10432 = vmatpush3.bf16.msra.mxu0 %v11907_v57  ;;  %v2048_v57 = vor.u32 %v2047_v49, %v2044_v48  ;;  %v2063_v59 = vshll.u32 %v12917_v19, 16  ;;  %v2102_v48 = vor.u32 %v2101_v38, %v2098_v37  ;;  %v2114_v49 = vshrl.u32 %v12947_v58, 16 }
 0x1d0   : > { %10433 = vmatprep.subr.bf16.mxu0 %v11911_v60  ;;  %v2062_v41 = vrot.slane %v2060_v31, 1  ;;  %v2168_v37 = vshrl.u32 %v12980_v13, 16  ;;  %v2171_v38 = vshll.u32 %v12980_v13, 16 }
 0x1d1   : > { %v2065_v46 = vrot.slane %v2063_v59, 2  ;;  %v2103_v59 = vsel %vm2014_vm2, %v2093_v40, %v2102_v48 }
 0x1d3   : > { %10434 = vmatpush3.bf16.msra.mxu0 %v11911_v60  ;;  %v2040_v60 = vsel %vm2014_vm2, %v2030_v33, %v2039_v50  ;;  %v2066_v10 = vor.u32 %v2065_v46, %v2062_v41  ;;  %v2126_v41 = vshll.u32 %v12954_v36, 16 }
 0x1d4   : > { %10471 = vmatprep.subr.bf16.mxu0 %v12956_v63 }
 0x1d6   : > { %10400 = vmatmul.mubr.bf16.gmra.mrb[16].mxu0 %v1697_v2  ;;  %v2049_v2 = vsel %vm2014_vm2, %v2039_v50, %v2048_v57  ;;  %v2117_v50 = vshll.u32 %v12947_v58, 16 }
 0x1d7   : > { %10403 = vmatprep.mubr.bf16.mxu0 %v1699_v4  ;;  %v11914_v4 = vld [vmem:[#allocation6 + $0x148] sm:$0xff]  }
 0x1de   : > { %10404 = vmatmul.mubr.bf16.gmra.mrb[20].mxu0 %v1701_v52  ;;  %v2057_v52 = vor.u32 %v2056_v34, %v2053_v62  ;;  %v2119_v62 = vrot.slane %v2117_v50, 2  ;;  %v11920_v34 = vld [vmem:[#allocation6 + $0x178] sm:$0xff]   ;;  %v2170_v50 = vrot.slane %v2168_v37, 1  ;;  %v2515_v37 = vrot.slane %v12970_v8, 2 }
 0x1df   : > { %10407 = vmatprep.mubr.bf16.mxu0 %v1703_v9  ;;  %v2069_v9 = vshrl.u32 %v12924_v32, 16 }
 0x1e0   : > { %v2058_v15 = vsel %vm2014_vm2, %v2048_v57, %v2057_v52  ;;  %v2107_v57 = vrot.slane %v2105_v43, 1  ;;  %v2161_v43 = vrot.slane %v2159_v20, 1  ;;  %v2509_v20 = vrot.slane %v12954_v36, 2 }
 0x1e1   : > { %v2071_v28 = vrot.slane %v2069_v9, 1  ;;  %v2135_v9 = vshll.u32 %v12959_v1, 16 }
 0x1e6   : > { %10408 = vmatmul.mubr.bf16.gmra.mrb[24].mxu0 %v1705_v14  ;;  %v11915_v14 = vld [vmem:[#allocation6 + $0x150] sm:$0xff]  }
 0x1e7   : > { %10411 = vmatprep.mubr.bf16.mxu0 %v1707_v3  ;;  %v2078_v3 = vshrl.u32 %v12927_v35, 16 }
 0x1e9   : > { %v2080_v53 = vrot.slane %v2078_v3, 1  ;;  %v2128_v3 = vrot.slane %v2126_v41, 2 }
 0x1eb   : > { %v2084_v0 = vor.u32 %v2083_v54, %v2080_v53  ;;  %v2144_v53 = vshll.u32 %v12967_v5, 16 }
 0x1ed   : > { %v2094_v55 = vsel %vm2014_vm2, %v2084_v0, %v2093_v40 }
 0x1ee   : > { %10412 = vmatmul.mubr.bf16.gmra.mrb[28].mxu0 %v1709_v21  ;;  %v11916_v21 = vld [vmem:[#allocation6 + $0x158] sm:$0xff]  }
 0x1ef   : > { %10415 = vmatprep.mubr.bf16.mxu0 %v1711_v24  ;;  %v2075_v24 = vor.u32 %v2074_v42, %v2071_v28  ;;  %v2137_v28 = vrot.slane %v2135_v9, 2  ;;  %v2487_v9 = vrot.slane %v12893_v18, 2  ;;  %v2493_v18 = vrot.slane %v12914_v17, 2  ;;  %v11927_v17 = vld [vmem:[#allocation6 + $0x1a0] sm:$0xff]  }
 0x1f1   : > { %v2076_v29 = vsel %vm2014_vm2, %v2066_v10, %v2075_v24  ;;  %v2085_v33 = vsel %vm2014_vm2, %v2075_v24, %v2084_v0  ;;  %v2153_v24 = vshll.u32 %v12970_v8, 16  ;;  %v2146_v0 = vrot.slane %v2144_v53, 2 }
 0x1f6   : > { %10416 = vmatmul.mubr.bf16.gmra.mrb[32].mxu0 %v1713_v39  ;;  %v11918_v39 = vld [vmem:[#allocation6 + $0x168] sm:$0xff]  }
 0x1f7   : > { %10435 = vmatprep.mubr.bf16.mxu0 %v2031_v45  ;;  %v2108_v45 = vshll.u32 %v12944_v56, 16 }
 0x1f9   : > { %v2110_v31 = vrot.slane %v2108_v45, 2  ;;  %v2164_v45 = vrot.slane %v2162_v30, 2  ;;  %v2511_v30 = vrot.slane %v12959_v1, 2 }
 0x1fe   : > { %10436 = vmatmul.mubr.bf16.vlgmr.msra.gmra.mrb[0].mxu0 %v2040_v60  ;;  %v2116_v60 = vrot.slane %v2114_v49, 1 }
 0x1ff   : > { %10472 = vmatpush3.bf16.msra.mxu0 %v12956_v63  ;;  %10439 = vmatprep.mubr.bf16.mxu0 %v2049_v2  ;;  %v2067_v63 = vsel %vm2014_vm2, %v2057_v52, %v2066_v10  ;;  %v2111_v2 = vor.u32 %v2110_v31, %v2107_v57  ;;  %v2132_v52 = vshrl.u32 %v12959_v1, 16  ;;  %v2519_v1 = vrot.slane %v12980_v13, 2 }
 0x200   : > { %10473 = vmatprep.subr.bf16.mxu0 %v11914_v4  ;;  %v2120_v46 = vor.u32 %v2119_v62, %v2116_v60  ;;  %v2464_v60 = vld [vmem:[%s12705_s11 + $0x8] sm:$0xc] }
 0x201   : > { %v2112_v10 = vsel %vm2014_vm2, %v2102_v48, %v2111_v2  ;;  %v9299_v41 = vcombine.low %v2464_v60, %v12890_v16 }
 0x202   : > { %v2121_v12 = vsel %vm2014_vm2, %v2111_v2, %v2120_v46 }
 0x203   : > { %10474 = vmatpush3.bf16.msra.mxu0 %v11914_v4  ;;  %v2123_v4 = vshrl.u32 %v12954_v36, 16  ;;  %v2517_v36 = vrot.slane %v12977_v11, 2 }
 0x204   : > { %10475 = vmatprep.subr.bf16.mxu0 %v11915_v14 }
 0x206   : > { %10440 = vmatmul.mubr.bf16.gmra.mrb[4].mxu0 %v2058_v15  ;;  %v2134_v15 = vrot.slane %v2132_v52, 1  ;;  %v2486_v52 = vrot.slane %v9299_v41, 2 }
 0x207   : > { %10443 = vmatprep.mubr.bf16.mxu0 %v2067_v63  ;;  %10476 = vmatpush3.bf16.msra.mxu0 %v11915_v14  ;;  %v2125_v14 = vrot.slane %v2123_v4, 1  ;;  %v2141_v63 = vshrl.u32 %v12967_v5, 16 }
 0x208   : > { %10477 = vmatprep.subr.bf16.mxu0 %v11916_v21  ;;  %v2138_v54 = vor.u32 %v2137_v28, %v2134_v15  ;;  %v11924_v28 = vld [vmem:[#allocation6 + $0x188] sm:$0xff]  }
 0x209   : > { %v2129_v42 = vor.u32 %v2128_v3, %v2125_v14  ;;  %v2143_v7 = vrot.slane %v2141_v63, 1  ;;  %v2488_v14 = vsel %vm2485_vm3, %v2486_v52, %v2487_v9  ;;  %v2489_v3 = vrot.slane %v12904_v22, 2  ;;  %v11925_v63 = vld [vmem:[#allocation6 + $0x190] sm:$0xff]  }
 0x20a   : > { %v11940_v52 = vld [vmem:[#allocation6 + $0x1d0] sm:$0xff]  }
 0x20b   : > { %10478 = vmatpush3.bf16.msra.mxu0 %v11916_v21  ;;  %v2150_v21 = vshrl.u32 %v12970_v8, 16  ;;  %v2130_v6 = vsel %vm2014_vm2, %v2120_v46, %v2129_v42  ;;  %v2139_v26 = vsel %vm2014_vm2, %v2129_v42, %v2138_v54  ;;  %v2490_v15 = vsel %vm2485_vm3, %v2487_v9, %v2489_v3 }
 0x20c   : > { %10479 = vmatprep.subr.bf16.mxu0 %v11917_v27  ;;  %v2495_v42 = vrot.slane %v12917_v19, 2 }
 0x20d   : > { %v2152_v25 = vrot.slane %v2150_v21, 1 }
 0x20e   : > { %10444 = vmatmul.mubr.bf16.gmra.mrb[8].mxu0 %v2076_v29  ;;  %v2147_v29 = vor.u32 %v2146_v0, %v2143_v7  ;;  %v2496_v22 = vsel %vm2485_vm3, %v2493_v18, %v2495_v42  ;;  %v2503_v7 = vrot.slane %v12937_v47, 2 }
 0x20f   : > { %10447 = vmatprep.mubr.bf16.mxu0 %v2085_v33  ;;  %10480 = vmatpush3.bf16.msra.mxu0 %v11917_v27  ;;  %v2155_v27 = vrot.slane %v2153_v24, 2  ;;  %v11928_v24 = vld [vmem:[#allocation6 + $0x1a8] sm:$0xff]  }
 0x210   : > { %10481 = vmatprep.subr.bf16.mxu0 %v11918_v39  ;;  %v2148_v40 = vsel %vm2014_vm2, %v2138_v54, %v2147_v29  ;;  %v2497_v54 = vrot.slane %v12924_v32, 2  ;;  %v11929_v32 = vld [vmem:[#allocation6 + $0x1b0] sm:$0xff]  }
 0x211   : > { %v2156_v33 = vor.u32 %v2155_v27, %v2152_v25  ;;  %v2505_v25 = vrot.slane %v12944_v56, 2  ;;  %v2507_v27 = vrot.slane %v12947_v58, 2  ;;  %v2512_v58 = vsel %vm2485_vm3, %v2509_v20, %v2511_v30 }
 0x212   : > { %v2498_v21 = vsel %vm2485_vm3, %v2495_v42, %v2497_v54  ;;  %v13135_v42 = vld [vmem:[%s12705_s11 + $0x50] sm:$0xff]  }
 0x213   : > { %10482 = vmatpush3.bf16.msra.mxu0 %v11918_v39  ;;  %v1993_v39 = vld [vmem:[%s12705_s11 + $0x98] sm:$0x3]  ;;  %v2157_v49 = vsel %vm2014_vm2, %v2147_v29, %v2156_v33  ;;  %v2506_v47 = vsel %vm2485_vm3, %v2503_v7, %v2505_v25  ;;  %v2508_v29 = vsel %vm2485_vm3, %v2505_v25, %v2507_v27  ;;  %v2510_v56 = vsel %vm2485_vm3, %v2507_v27, %v2509_v20 }
 0x214   : > { %10483 = vmatprep.subr.bf16.mxu0 %v11919_v51  ;;  %v13045_v48 = vcombine.low %v1993_v39, %v1993_v39  ;;  %v13161_v27 = vld [vmem:[%s12705_s11 + $0x78] sm:$0xff]   ;;  %v12421_v20 = vmov 0  }
 0x215   : > { %11832 = vset.pattern.permute.xlu0 %v12421_v20  ;;  %340 = vst [vmem:[#allocation2] sm:$0xf] %v12421_v20  ;;  %341 = vst [vmem:[#allocation2 + $0x4] sm:$0xf] %v12421_v20  ;;  %11833 = vset.pattern.permute.xlu1 %v12421_v20 }
 0x216   : > { %10448 = vmatmul.mubr.bf16.gmra.mrb[12].mxu0 %v2094_v55  ;;  %v2165_v55 = vor.u32 %v2164_v45, %v2161_v43  ;;  %v2177_v57 = vshrl.u32 %v13045_v48, 16  ;;  %v2180_v31 = vshll.u32 %v13045_v48, 16  ;;  %v13090_v43 = vld [vmem:[%s12705_s11 + $0x14] sm:$0xf]  ;;  %v2518_v45 = vsel %vm2485_vm3, %v2515_v37, %v2517_v36  ;;  %354 = vst [vmem:[#allocation2 + $0x9c] sm:$0xf] %v12421_v20 }
 0x217   : > { %10451 = vmatprep.mubr.bf16.mxu0 %v2103_v59  ;;  %10484 = vmatpush3.bf16.msra.mxu0 %v11919_v51  ;;  %v2173_v51 = vrot.slane %v2171_v38, 2  ;;  %v2521_v11 = vrot.slane %v13045_v48, 2  ;;  %355 = vst [vmem:[#allocation2 + $0xa0] sm:$0xf] %v12421_v20 }
 0x218   : > { %10485 = vmatprep.subr.bf16.mxu0 %v11920_v34  ;;  %v2166_v62 = vsel %vm2014_vm2, %v2156_v33, %v2165_v55  ;;  %v2182_v2 = vrot.slane %v2180_v31, 2  ;;  %v2513_v33 = vrot.slane %v12967_v5, 2  ;;  %v2520_v5 = vsel %vm2485_vm3, %v2517_v36, %v2519_v1  ;;  %v13109_v31 = vld [vmem:[%s12705_s11 + $0x28] sm:$0xff]   ;;  %v362_v36 = vld [vmem:[#allocation12 + $0x20] sm:$0xff] }
 0x219   : > { %v2174_v59 = vor.u32 %v2173_v51, %v2170_v50  ;;  %v2522_v51 = vsel %vm2485_vm3, %v2519_v1, %v2521_v11  ;;  %v2954_v60 = vrot.slane %v13109_v31, 2  ;;  %v13178_v11 = vld [vmem:[%s12705_s11 + $0x90] sm:$0xff]  }
 0x21a   : > { %v2514_v38 = vsel %vm2485_vm3, %v2511_v30, %v2513_v33  ;;  %v2516_v39 = vsel %vm2485_vm3, %v2513_v33, %v2515_v37  ;;  %v2974_v30 = vrot.slane %v13161_v27, 2  ;;  %v13172_v37 = vld [vmem:[%s12705_s11 + $0x88] sm:$0xff]  }
 0x21b   : > { %10486 = vmatpush3.bf16.msra.mxu0 %v11920_v34  ;;  %v2179_v34 = vrot.slane %v2177_v57, 1  ;;  %v2175_v4 = vsel %vm2014_vm2, %v2165_v55, %v2174_v59  ;;  %v13105_v55 = vld [vmem:[%s12705_s11 + $0x20] sm:$0xff]  }
 0x21c   : > { %10523 = vmatprep.subr.bf16.mxu0 %v13028_v61 }
 0x21d   : > { %v2183_v46 = vor.u32 %v2182_v2, %v2179_v34  ;;  %v11937_v2 = vld [vmem:[#allocation6 + $0x1c8] sm:$0xff]  }
 0x21e   : > { %10452 = vmatmul.mubr.bf16.gmra.mrb[16].mxu0 %v2112_v10 }
 0x21f   : > { %10455 = vmatprep.mubr.bf16.mxu0 %v2121_v12  ;;  %v2184_v10 = vsel %vm2014_vm2, %v2174_v59, %v2183_v46  ;;  %v2491_v12 = vrot.slane %v12907_v23, 2  ;;  %v11926_v23 = vld [vmem:[#allocation6 + $0x198] sm:$0xff]   ;;  %v2952_v59 = vrot.slane %v13105_v55, 2 }
 0x221   : > { %v2492_v16 = vsel %vm2485_vm3, %v2489_v3, %v2491_v12  ;;  %v2494_v53 = vsel %vm2485_vm3, %v2491_v12, %v2493_v18  ;;  %v2955_v34 = vsel %vm2485_vm3, %v2952_v59, %v2954_v60  ;;  %v13129_v3 = vld [vmem:[%s12705_s11 + $0x48] sm:$0xff]  }
 0x222   : > { %v11943_v12 = vld [vmem:[#allocation6 + $0x1d8] sm:$0xff]  }
 0x226   : > { %10456 = vmatmul.mubr.bf16.gmra.mrb[20].mxu0 %v2130_v6  ;;  %v2501_v6 = vrot.slane %v12934_v44, 2  ;;  %v11934_v44 = vld [vmem:[#allocation6 + $0x1c0] sm:$0xff]  }
 0x227   : > { %10459 = vmatprep.mubr.bf16.mxu0 %v2139_v26  ;;  %v11930_v26 = vld [vmem:[#allocation6 + $0x1b8] sm:$0xff]  }
 0x228   : > { %v2504_v0 = vsel %vm2485_vm3, %v2501_v6, %v2503_v7 }
 0x22e   : > { %10460 = vmatmul.mubr.bf16.gmra.mrb[24].mxu0 %v2148_v40  ;;  %v2802_v40 = vld [vmem:[%s12705_s11 + $0x10] sm:$0xc] }
 0x22f   : > { %10463 = vmatprep.mubr.bf16.mxu0 %v2157_v49  ;;  %v13095_v8 = vcombine.low %v2802_v40, %v13090_v43  ;;  %v13098_v49 = vld [vmem:[%s12705_s11 + $0x18] sm:$0xff]   ;;  %v2978_v40 = vrot.slane %v13172_v37, 2 }
 0x230   : > { %v2950_v50 = vrot.slane %v13098_v49, 2 }
 0x231   : > { %v2949_v13 = vrot.slane %v13095_v8, 2 }
 0x232   : > { %v2953_v48 = vsel %vm2485_vm3, %v2950_v50, %v2952_v59  ;;  %v366_v59 = vld [vmem:[#allocation12 + $0x40] sm:$0xff] }
 0x233   : > { %v2951_v57 = vsel %vm2485_vm3, %v2949_v13, %v2950_v50  ;;  %v13181_v13 = vld [vmem:[%s12705_s11 + $0x98] sm:$0xff]  }
 0x236   : > { %10464 = vmatmul.mubr.bf16.gmra.mrb[28].mxu0 %v2166_v62  ;;  %v13115_v62 = vld [vmem:[%s12705_s11 + $0x30] sm:$0xff]  }
 0x237   : > { %10467 = vmatprep.mubr.bf16.mxu0 %v2175_v4  ;;  %v13119_v4 = vld [vmem:[%s12705_s11 + $0x38] sm:$0xff]   ;;  %v2956_v41 = vrot.slane %v13115_v62, 2 }
 0x238   : > { %v2958_v46 = vrot.slane %v13119_v4, 2 }
 0x239   : > { %v2957_v9 = vsel %vm2485_vm3, %v2954_v60, %v2956_v41  ;;  %v2980_v60 = vrot.slane %v13178_v11, 2 }
 0x23e   : > { %10468 = vmatmul.mubr.bf16.gmra.mrb[32].mxu0 %v2184_v10  ;;  %v13125_v10 = vld [vmem:[%s12705_s11 + $0x40] sm:$0xff]  }
 0x23f   : > { %10487 = vmatprep.mubr.bf16.mxu0 %v2488_v14  ;;  %v2959_v14 = vsel %vm2485_vm3, %v2956_v41, %v2958_v46  ;;  %v3296_v41 = vshrl.u32 %v13098_v49, 16 }
 0x246   : > { %10488 = vmatmul.mubr.bf16.vlgmr.msra.gmra.mrb[0].mxu0 %v2490_v15  ;;  %v2960_v15 = vrot.slane %v13125_v10, 2 }
 0x247   : > { %10524 = vmatpush3.bf16.msra.mxu0 %v13028_v61  ;;  %10491 = vmatprep.mubr.bf16.mxu0 %v2492_v16  ;;  %v2499_v61 = vrot.slane %v12927_v35, 2  ;;  %v2962_v16 = vrot.slane %v13129_v3, 2 }
 0x248   : > { %10525 = vmatprep.subr.bf16.mxu0 %v11924_v28  ;;  %v2961_v18 = vsel %vm2485_vm3, %v2958_v46, %v2960_v15  ;;  %v3299_v46 = vshll.u32 %v13098_v49, 16 }
 0x249   : > { %v2500_v19 = vsel %vm2485_vm3, %v2497_v54, %v2499_v61  ;;  %v2502_v35 = vsel %vm2485_vm3, %v2499_v61, %v2501_v6  ;;  %v11952_v61 = vld [vmem:[#allocation6 + $0x1f0] sm:$0xff]   ;;  %v11956_v6 = vld [vmem:[#allocation6 + $0x1f8] sm:$0xff]  }
 0x24b   : > { %10526 = vmatpush3.bf16.msra.mxu0 %v11924_v28  ;;  %v11946_v28 = vld [vmem:[#allocation6 + $0x1e0] sm:$0xff]  }
 0x24c   : > { %10527 = vmatprep.subr.bf16.mxu0 %v11925_v63 }
 0x24e   : > { %10492 = vmatmul.mubr.bf16.gmra.mrb[4].mxu0 %v2494_v53  ;;  %v13139_v53 = vld [vmem:[%s12705_s11 + $0x58] sm:$0xff]  }
 0x24f   : > { %10495 = vmatprep.mubr.bf16.mxu0 %v2496_v22  ;;  %10528 = vmatpush3.bf16.msra.mxu0 %v11925_v63  ;;  %v2963_v63 = vsel %vm2485_vm3, %v2960_v15, %v2962_v16  ;;  %v11949_v22 = vld [vmem:[#allocation6 + $0x1e8] sm:$0xff]   ;;  %v2966_v54 = vrot.slane %v13139_v53, 2 }
 0x250   : > { %10529 = vmatprep.subr.bf16.mxu0 %v11926_v23 }
 0x253   : > { %10530 = vmatpush3.bf16.msra.mxu0 %v11926_v23  ;;  %v2964_v23 = vrot.slane %v13135_v42, 2 }
 0x254   : > { %10531 = vmatprep.subr.bf16.mxu0 %v11927_v17 }
 0x256   : > { %10496 = vmatmul.mubr.bf16.gmra.mrb[8].mxu0 %v2498_v21  ;;  %v13145_v21 = vld [vmem:[%s12705_s11 + $0x60] sm:$0xff]  }
 0x257   : > { %10499 = vmatprep.mubr.bf16.mxu0 %v2500_v19  ;;  %10532 = vmatpush3.bf16.msra.mxu0 %v11927_v17  ;;  %v2965_v17 = vsel %vm2485_vm3, %v2962_v16, %v2964_v23  ;;  %v2967_v19 = vsel %vm2485_vm3, %v2964_v23, %v2966_v54  ;;  %v2968_v7 = vrot.slane %v13145_v21, 2 }
 0x258   : > { %10533 = vmatprep.subr.bf16.mxu0 %v11928_v24 }
 0x25b   : > { %10534 = vmatpush3.bf16.msra.mxu0 %v11928_v24  ;;  %v13149_v24 = vld [vmem:[%s12705_s11 + $0x68] sm:$0xff]  }
 0x25c   : > { %10535 = vmatprep.subr.bf16.mxu0 %v11929_v32 }
 0x25e   : > { %10500 = vmatmul.mubr.bf16.gmra.mrb[12].mxu0 %v2502_v35  ;;  %v13153_v35 = vld [vmem:[#allocation6 + $0x200] sm:$0xff]  }
 0x25f   : > { %10503 = vmatprep.mubr.bf16.mxu0 %v2504_v0  ;;  %10536 = vmatpush3.bf16.msra.mxu0 %v11929_v32  ;;  %v2970_v32 = vrot.slane %v13149_v24, 2  ;;  %v2969_v0 = vsel %vm2485_vm3, %v2966_v54, %v2968_v7  ;;  %v3305_v54 = vshrl.u32 %v13105_v55, 16 }
 0x260   : > { %10537 = vmatprep.subr.bf16.mxu0 %v11930_v26 }
 0x261   : > { %v2971_v25 = vsel %vm2485_vm3, %v2968_v7, %v2970_v32  ;;  %v3317_v7 = vshll.u32 %v13109_v31, 16 }
 0x263   : > { %10538 = vmatpush3.bf16.msra.mxu0 %v11930_v26  ;;  %v13157_v26 = vld [vmem:[%s12705_s11 + $0x70] sm:$0xff]   ;;  %v3319_v20 = vrot.slane %v3317_v7, 3 }
 0x264   : > { %10575 = vmatprep.subr.bf16.mxu0 %v11934_v44 }
 0x266   : > { %10504 = vmatmul.mubr.bf16.gmra.mrb[16].mxu0 %v2506_v47  ;;  %v360_v47 = vld [vmem:[#allocation12 + $0x10] sm:$0xff] }
 0x267   : > { %10507 = vmatprep.mubr.bf16.mxu0 %v2508_v29  ;;  %v2972_v29 = vrot.slane %v13157_v26, 2  ;;  %4165 = vperm.xlu1 %11833, %v360_v47  }
 0x269   : > { %v2975_v33 = vsel %vm2485_vm3, %v2972_v29, %v2974_v30 }
 0x26e   : > { %10508 = vmatmul.mubr.bf16.gmra.mrb[20].mxu0 %v2510_v56  ;;  %v2973_v56 = vsel %vm2485_vm3, %v2970_v32, %v2972_v29  ;;  %v371_v32 = vld [vmem:[#allocation12 + $0x68] sm:$0xff] }
 0x26f   : > { %10511 = vmatprep.mubr.bf16.mxu0 %v2512_v58  ;;  %v13168_v58 = vld [vmem:[%s12705_s11 + $0x80] sm:$0xff]  }
 0x270   : > { %v2976_v1 = vrot.slane %v13168_v58, 2 }
 0x272   : > { %v2979_v50 = vsel %vm2485_vm3, %v2976_v1, %v2978_v40 }
 0x276   : > { %10512 = vmatmul.mubr.bf16.gmra.mrb[24].mxu0 %v2514_v38  ;;  %v359_v38 = vld [vmem:[#allocation12 + $0x8] sm:$0xff] }
 0x277   : > { %10515 = vmatprep.mubr.bf16.mxu0 %v2516_v39  ;;  %v361_v39 = vld [vmem:[#allocation12 + $0x18] sm:$0xff] }
 0x278   : > { %4170 = vperm.xlu1 %11833, %v361_v39   ;;  %v3323_v39 = vshrl.u32 %v13115_v62, 16 }
 0x27e   : > { %10516 = vmatmul.mubr.bf16.gmra.mrb[28].mxu0 %v2518_v45  ;;  %v363_v45 = vld [vmem:[#allocation12 + $0x28] sm:$0xff] }
 0x27f   : > { %10519 = vmatprep.mubr.bf16.mxu0 %v2520_v5  ;;  %v2977_v5 = vsel %vm2485_vm3, %v2974_v30, %v2976_v1  ;;  %4180 = vperm.xlu1 %11833, %v363_v45   ;;  %v372_v30 = vld [vmem:[#allocation12 + $0x70] sm:$0xff]  ;;  %v3335_v45 = vshll.u32 %v13119_v4, 16 }
 0x286   : > { %10520 = vmatmul.mubr.bf16.gmra.mrb[32].mxu0 %v2522_v51  ;;  %v364_v51 = vld [vmem:[#allocation12 + $0x30] sm:$0xff] }
 0x287   : > { %10539 = vmatprep.mubr.bf16.mxu0 %v2951_v57  ;;  %v365_v57 = vld [vmem:[#allocation12 + $0x38] sm:$0xff] }
 0x288   : > { %4190 = vperm.xlu1 %11833, %v365_v57  }
 0x28e   : > { %10540 = vmatmul.mubr.bf16.vlgmr.msra.gmra.mrb[0].mxu0 %v2953_v48  ;;  %v2982_v48 = vrot.slane %v13181_v13, 2 }
 0x28f   : > { %10576 = vmatpush3.bf16.msra.mxu0 %v11934_v44  ;;  %10543 = vmatprep.mubr.bf16.mxu0 %v2955_v34  ;;  %v358_v44 = vld [vmem:[#allocation12] sm:$0xff]  ;;  %v3288_v34 = vshrl.u32 %v13095_v8, 16 }
 0x290   : > { %10577 = vmatprep.subr.bf16.mxu0 %v11937_v2  ;;  %4155 = vperm.xlu0 %11832, %v358_v44  }
 0x291   : > { %v3290_v15 = vrot.slane %v3288_v34, 2  ;;  %v3337_v34 = vrot.slane %v3335_v45, 3  ;;  %v385_v45 = vld [vmem:[#allocation12 + $0xd8] sm:$0xff] }
 0x293   : > { %10578 = vmatpush3.bf16.msra.mxu0 %v11937_v2  ;;  %v3291_v2 = vshll.u32 %v13095_v8, 16  ;;  %v369_v8 = vld [vmem:[#allocation12 + $0x58] sm:$0xff] }
 0x294   : > { %10579 = vmatprep.subr.bf16.mxu0 %v11940_v52  ;;  %4160 = vperm.xlu0 %11832, %v359_v38  }
 0x295   : > { %v3293_v16 = vrot.slane %v3291_v2, 3  ;;  %v376_v2 = vld [vmem:[#allocation12 + $0x90] sm:$0xff] }
 0x296   : > { %10544 = vmatmul.mubr.bf16.gmra.mrb[4].mxu0 %v2957_v9  ;;  %v2981_v9 = vsel %vm2485_vm3, %v2978_v40, %v2980_v60  ;;  %v3332_v40 = vshrl.u32 %v13119_v4, 16 }
 0x297   : > { %10547 = vmatprep.mubr.bf16.mxu0 %v2959_v14  ;;  %10580 = vmatpush3.bf16.msra.mxu0 %v11940_v52  ;;  %v367_v52 = vld [vmem:[#allocation12 + $0x48] sm:$0xff]  ;;  %v2983_v14 = vsel %vm2485_vm3, %v2980_v60, %v2982_v48 }
 0x298   : > { %10581 = vmatprep.subr.bf16.mxu0 %v11943_v12  ;;  %4175 = vperm.xlu0 %11832, %v362_v36   ;;  %v3326_v36 = vshll.u32 %v13115_v62, 16  ;;  %v11959_v60 = vld [vmem:[#allocation6 + $0x208] sm:$0xff]  }
 0x299   : > { %4200 = vperm.xlu1 %11833, %v367_v52  }
 0x29a   : > { %v3328_v57 = vrot.slane %v3326_v36, 3 }
 0x29b   : > { %10582 = vmatpush3.bf16.msra.mxu0 %v11943_v12  ;;  %v11957_v12 = vld [vmem:[%s12705_s11 + $0xa0] ss:$0 sps:$4 sm:$0x33]  }
 0x29c   : > { %10583 = vmatprep.subr.bf16.mxu0 %v11946_v28  ;;  %4185 = vperm.xlu0 %11832, %v364_v51   ;;  %v2984_v23 = vrot.slane %v11957_v12, 2  ;;  %v3325_v51 = vrot.slane %v3323_v39, 2 }
 0x29d   : > { %4210 = vperm.xlu1 %11833, %v369_v8  }
 0x29e   : > { %10548 = vmatmul.mubr.bf16.gmra.mrb[8].mxu0 %v2961_v18  ;;  %v3301_v18 = vrot.slane %v3299_v46, 3  ;;  %v378_v46 = vld [vmem:[#allocation12 + $0xa0] sm:$0xff]  ;;  %v3329_v52 = vor.u32 %v3328_v57, %v3325_v51  ;;  %v3377_v51 = vshrl.u32 %v13145_v21, 16  ;;  %v3380_v57 = vshll.u32 %v13145_v21, 16 }
 0x29f   : > { %10551 = vmatprep.mubr.bf16.mxu0 %v2963_v63  ;;  %10584 = vmatpush3.bf16.msra.mxu0 %v11946_v28  ;;  %v3298_v28 = vrot.slane %v3296_v41, 2  ;;  %v368_v63 = vld [vmem:[#allocation12 + $0x50] sm:$0xff]  ;;  %v377_v41 = vld [vmem:[#allocation12 + $0x98] sm:$0xff] }
 0x2a0   : > { %10585 = vmatprep.subr.bf16.mxu0 %v11949_v22  ;;  %4195 = vperm.xlu0 %11832, %v366_v59  }
 0x2a1   : > { %4220 = vperm.xlu1 %11833, %v371_v32   ;;  %v3359_v32 = vshrl.u32 %v13135_v42, 16 }
 0x2a3   : > { %10586 = vmatpush3.bf16.msra.mxu0 %v11949_v22  ;;  %v370_v22 = vld [vmem:[#allocation12 + $0x60] sm:$0xff] }
 0x2a4   : > { %10587 = vmatprep.subr.bf16.mxu0 %v11952_v61  ;;  %4205 = vperm.xlu0 %11832, %v368_v63  }
 0x2a6   : > { %10552 = vmatmul.mubr.bf16.gmra.mrb[12].mxu0 %v2965_v17  ;;  %v3294_v17 = vor.u32 %v3293_v16, %v3290_v15  ;;  %v11960_v15 = vld [vmem:[#allocation6 + $0x210] sm:$0xff]   ;;  %v3350_v16 = vshrl.u32 %v13129_v3, 16 }
 0x2a7   : > { %10555 = vmatprep.mubr.bf16.mxu0 %v2967_v19  ;;  %10588 = vmatpush3.bf16.msra.mxu0 %v11952_v61  ;;  %v3308_v61 = vshll.u32 %v13105_v55, 16  ;;  %v3302_v19 = vor.u32 %v3301_v18, %v3298_v28  ;;  %v3353_v28 = vshll.u32 %v13129_v3, 16  ;;  %v379_v18 = vld [vmem:[#allocation12 + $0xa8] sm:$0xff] }
 0x2a8   : > { %10589 = vmatprep.subr.bf16.mxu0 %v11956_v6  ;;  %4215 = vperm.xlu0 %11832, %v370_v22  }
 0x2a9   : > { %v3310_v44 = vrot.slane %v3308_v61, 3  ;;  %v3303_v47 = vsel %vm3286_vm4, %v3294_v17, %v3302_v19  ;;  %v11961_v61 = vld [vmem:[#allocation6 + $0x218] sm:$0xff]  }
 0x2aa   : > { %v380_v17 = vld [vmem:[#allocation12 + $0xb0] sm:$0xff] }
 0x2ab   : > { %10590 = vmatpush3.bf16.msra.mxu0 %v11956_v6  ;;  %v3314_v6 = vshrl.u32 %v13109_v31, 16 }
 0x2ac   : > { %10627 = vmatprep.subr.bf16.mxu0 %v13153_v35  ;;  %4225 = vperm.xlu0 %11832, %v372_v30   ;;  %v384_v30 = vld [vmem:[#allocation12 + $0xd0] sm:$0xff] }
 0x2ad   : > { %v3316_v29 = vrot.slane %v3314_v6, 2  ;;  %v382_v6 = vld [vmem:[#allocation12 + $0xc0] sm:$0xff] }
 0x2ae   : > { %10556 = vmatmul.mubr.bf16.gmra.mrb[16].mxu0 %v2969_v0  ;;  %v2985_v0 = vsel %vm2485_vm3, %v2982_v48, %v2984_v23  ;;  %v3334_v48 = vrot.slane %v3332_v40, 2  ;;  %v3352_v23 = vrot.slane %v3350_v16, 2  ;;  %v11963_v40 = vld [vmem:[#allocation6 + $0x228] sm:$0xff]   ;;  %v11965_v16 = vld [vmem:[#allocation6 + $0x238] sm:$0xff]  }
 0x2af   : > { %10559 = vmatprep.mubr.bf16.mxu0 %v2971_v25  ;;  %v3307_v25 = vrot.slane %v3305_v54, 2  ;;  %v3320_v1 = vor.u32 %v3319_v20, %v3316_v29  ;;  %v3355_v54 = vrot.slane %v3353_v28, 3  ;;  %v11962_v29 = vld [vmem:[#allocation6 + $0x220] sm:$0xff]   ;;  %v383_v20 = vld [vmem:[#allocation12 + $0xc8] sm:$0xff] }
 0x2b0   : > { %v3338_v12 = vor.u32 %v3337_v34, %v3334_v48  ;;  %v3389_v48 = vshll.u32 %v13149_v24, 16  ;;  %v11964_v34 = vld [vmem:[#allocation6 + $0x230] sm:$0xff]   ;;  %v389_v28 = vld [vmem:[#allocation12 + $0xf8] sm:$0xff] }
 0x2b1   : > { %v3311_v38 = vor.u32 %v3310_v44, %v3307_v25  ;;  %v3330_v63 = vsel %vm3286_vm4, %v3320_v1, %v3329_v52  ;;  %v3356_v25 = vor.u32 %v3355_v54, %v3352_v23  ;;  %v3368_v44 = vshrl.u32 %v13139_v53, 16 }
 0x2b2   : > { %v3339_v22 = vsel %vm3286_vm4, %v3329_v52, %v3338_v12  ;;  %v3379_v52 = vrot.slane %v3377_v51, 2  ;;  %v3404_v23 = vshrl.u32 %v13161_v27, 16  ;;  %v3407_v54 = vshll.u32 %v13161_v27, 16 }
 0x2b3   : > { %v3321_v59 = vsel %vm3286_vm4, %v3311_v38, %v3320_v1  ;;  %v3370_v36 = vrot.slane %v3368_v44, 2  ;;  %v393_v44 = vld [vmem:[#allocation12 + $0x118] sm:$0xff]  ;;  %v3434_v51 = vshll.u32 %v13178_v11, 16 }
 0x2b6   : > { %10560 = vmatmul.mubr.bf16.gmra.mrb[20].mxu0 %v2973_v56  ;;  %v373_v56 = vld [vmem:[#allocation12 + $0x78] sm:$0xff] }
 0x2b7   : > { %10563 = vmatprep.mubr.bf16.mxu0 %v2975_v33  ;;  %v374_v33 = vld [vmem:[#allocation12 + $0x80] sm:$0xff]  ;;  %4230 = vperm.xlu1 %11833, %v373_v56  }
 0x2b8   : > { %4235 = vperm.xlu0 %11832, %v374_v33   ;;  %v3361_v33 = vrot.slane %v3359_v32, 2 }
 0x2bc   : > { %4245 = vperm.xlu0 %11832, %v376_v2   ;;  %v387_v2 = vld [vmem:[#allocation12 + $0xe8] sm:$0xff] }
 0x2be   : > { %10564 = vmatmul.mubr.bf16.gmra.mrb[24].mxu0 %v2977_v5  ;;  %v375_v5 = vld [vmem:[#allocation12 + $0x88] sm:$0xff] }
 0x2bf   : > { %10567 = vmatprep.mubr.bf16.mxu0 %v2979_v50  ;;  %v3312_v50 = vsel %vm3286_vm4, %v3302_v19, %v3311_v38  ;;  %4240 = vperm.xlu1 %11833, %v375_v5   ;;  %v381_v19 = vld [vmem:[#allocation12 + $0xb8] sm:$0xff]  ;;  %v386_v5 = vld [vmem:[#allocation12 + $0xe0] sm:$0xff] }
 0x2c0   : > { %4255 = vperm.xlu0 %11832, %v378_v46  }
 0x2c3   : > { %4250 = vperm.xlu1 %11833, %v377_v41   ;;  %v388_v41 = vld [vmem:[#allocation12 + $0xf0] sm:$0xff] }
 0x2c4   : > { %4265 = vperm.xlu0 %11832, %v380_v17   ;;  %v392_v17 = vld [vmem:[#allocation12 + $0x110] sm:$0xff] }
 0x2c6   : > { %10568 = vmatmul.mubr.bf16.gmra.mrb[28].mxu0 %v2981_v9  ;;  %v3341_v9 = vshrl.u32 %v13125_v10, 16 }
 0x2c7   : > { %10571 = vmatprep.mubr.bf16.mxu0 %v2983_v14  ;;  %v3344_v14 = vshll.u32 %v13125_v10, 16  ;;  %4260 = vperm.xlu1 %11833, %v379_v18   ;;  %v390_v18 = vld [vmem:[#allocation12 + $0x100] sm:$0xff] }
 0x2c8   : > { %4275 = vperm.xlu0 %11832, %v382_v6  }
 0x2c9   : > { %v3346_v8 = vrot.slane %v3344_v14, 3 }
 0x2cb   : > { %4270 = vperm.xlu1 %11833, %v381_v19  }
 0x2cc   : > { %4285 = vperm.xlu0 %11832, %v384_v30  }
 0x2ce   : > { %10572 = vmatmul.mubr.bf16.gmra.mrb[32].mxu0 %v2985_v0  ;;  %v3362_v0 = vshll.u32 %v13135_v42, 16 }
 0x2cf   : > { %10591 = vmatprep.mubr.bf16.mxu0 %v3303_v47  ;;  %v3371_v47 = vshll.u32 %v13139_v53, 16  ;;  %4280 = vperm.xlu1 %11833, %v383_v20   ;;  %v3416_v20 = vshll.u32 %v13168_v58, 16 }
 0x2d0   : > { %v3364_v38 = vrot.slane %v3362_v0, 3  ;;  %4295 = vperm.xlu0 %11832, %v386_v5   ;;  %v3406_v0 = vrot.slane %v3404_v23, 2 }
 0x2d1   : > { %v3373_v1 = vrot.slane %v3371_v47, 3 }
 0x2d3   : > { %4290 = vperm.xlu1 %11833, %v385_v45  }
 0x2d4   : > { %4305 = vperm.xlu0 %11832, %v388_v41   ;;  %v13242_v41 = vld [vmem:[%s12705_s11 + $0xa0] ss:$0 sps:$4 sm:$0x77]  }
 0x2d6   : > { %10592 = vmatmul.mubr.bf16.vlgmr.msra.gmra.mrb[0].mxu0 %v3312_v50  ;;  %v3365_v50 = vor.u32 %v3364_v38, %v3361_v33  ;;  %v3425_v33 = vshll.u32 %v13172_v37, 16 }
 0x2d7   : > { %10628 = vmatpush3.bf16.msra.mxu0 %v13153_v35  ;;  %10595 = vmatprep.mubr.bf16.mxu0 %v3321_v59  ;;  %v3343_v35 = vrot.slane %v3341_v9, 2  ;;  %v3374_v59 = vor.u32 %v3373_v1, %v3370_v36  ;;  %v3382_v9 = vrot.slane %v3380_v57, 3  ;;  %v3418_v36 = vrot.slane %v3416_v20, 3 }
 0x2d8   : > { %10629 = vmatprep.subr.bf16.mxu0 %v11959_v60  ;;  %v3366_v46 = vsel %vm3286_vm4, %v3356_v25, %v3365_v50  ;;  %4300 = vperm.xlu1 %11833, %v387_v2   ;;  %v3427_v45 = vrot.slane %v3425_v33, 3  ;;  %v3436_v2 = vrot.slane %v3434_v51, 3  ;;  %v11969_v51 = vld [vmem:[#allocation8 + $0x48] sm:$0xff]  }
 0x2d9   : > { %v3347_v7 = vor.u32 %v3346_v8, %v3343_v35  ;;  %v3375_v14 = vsel %vm3286_vm4, %v3365_v50, %v3374_v59  ;;  %v3395_v35 = vshrl.u32 %v13157_v26, 16  ;;  %v3398_v8 = vshll.u32 %v13157_v26, 16  ;;  %4315 = vperm.xlu0 %11832, %v390_v18  }
 0x2da   : > { %v3431_v50 = vshrl.u32 %v13178_v11, 16 }
 0x2db   : > { %10630 = vmatpush3.bf16.msra.mxu0 %v11959_v60  ;;  %v3348_v56 = vsel %vm3286_vm4, %v3338_v12, %v3347_v7  ;;  %v3357_v39 = vsel %vm3286_vm4, %v3347_v7, %v3356_v25  ;;  %v3386_v60 = vshrl.u32 %v13149_v24, 16  ;;  %v3397_v6 = vrot.slane %v3395_v35, 2 }
 0x2dc   : > { %10631 = vmatprep.subr.bf16.mxu0 %v11960_v15  ;;  %4310 = vperm.xlu1 %11833, %v389_v28   ;;  %v3400_v7 = vrot.slane %v3398_v8, 3  ;;  %v3409_v25 = vrot.slane %v3407_v54, 3  ;;  %v3736_v28 = vld [vmem:[%s12705_s11 + $0x10] sm:$0x8] }
 0x2dd   : > { %v3388_v12 = vrot.slane %v3386_v60, 2  ;;  %4325 = vperm.xlu0 %11832, %v392_v17   ;;  %v3443_v60 = vshll.u32 %v13181_v13, 16 }
 0x2de   : > { %10596 = vmatmul.mubr.bf16.gmra.mrb[4].mxu0 %v3330_v63  ;;  %v3383_v63 = vor.u32 %v3382_v9, %v3379_v52  ;;  %v3401_v47 = vor.u32 %v3400_v7, %v3397_v6  ;;  %v3410_v30 = vor.u32 %v3409_v25, %v3406_v0  ;;  %v3761_v6 = vrot.slane %v13105_v55, 3 }
 0x2df   : > { %10599 = vmatprep.mubr.bf16.mxu0 %v3339_v22  ;;  %10632 = vmatpush3.bf16.msra.mxu0 %v11960_v15  ;;  %v3391_v15 = vrot.slane %v3389_v48, 3  ;;  %v3445_v9 = vrot.slane %v3443_v60, 3  ;;  %v3763_v7 = vrot.slane %v13109_v31, 3  ;;  %v3765_v0 = vrot.slane %v13115_v62, 3 }
 0x2e0   : > { %10633 = vmatprep.subr.bf16.mxu0 %v11961_v61  ;;  %v3384_v19 = vsel %vm3286_vm4, %v3374_v59, %v3383_v63  ;;  %v3411_v1 = vsel %vm3286_vm4, %v3401_v47, %v3410_v30  ;;  %v3440_v59 = vshrl.u32 %v13181_v13, 16  ;;  %v3769_v55 = vrot.slane %v13125_v10, 3 }
 0x2e1   : > { %v3392_v22 = vor.u32 %v3391_v15, %v3388_v12  ;;  %v3449_v12 = vshrl.u32 %v13242_v41, 16  ;;  %v3452_v15 = vshll.u32 %v13242_v41, 16  ;;  %v3766_v25 = vsel %vm3757_vm5, %v3763_v7, %v3765_v0 }
 0x2e2   : > { %v3442_v52 = vrot.slane %v3440_v59, 2  ;;  %v3771_v31 = vrot.slane %v13129_v3, 3  ;;  %v3773_v62 = vrot.slane %v13135_v42, 3  ;;  %v3777_v10 = vrot.slane %v13145_v21, 3  ;;  %v351_v59 = vld [vmem:[#allocation2 + $0x98] sm:$0xe] }
 0x2e3   : > { %10634 = vmatpush3.bf16.msra.mxu0 %v11961_v61  ;;  %v391_v61 = vld [vmem:[#allocation12 + $0x108] sm:$0xff]  ;;  %v3393_v32 = vsel %vm3286_vm4, %v3383_v63, %v3392_v22  ;;  %v3402_v38 = vsel %vm3286_vm4, %v3392_v22, %v3401_v47  ;;  %v3451_v63 = vrot.slane %v3449_v12, 2  ;;  %v3454_v35 = vrot.slane %v3452_v15, 3  ;;  %v4916_v12 = vld [vmem:[#allocation2] sm:$0xf] }
 0x2e4   : > { %10635 = vmatprep.subr.bf16.mxu0 %v11962_v29  ;;  %4320 = vperm.xlu1 %11833, %v391_v61   ;;  %v9344_v22 = vcombine.low %v3736_v28, %v13090_v43  ;;  %v3759_v61 = vrot.slane %v13098_v49, 3  ;;  %v3764_v43 = vsel %vm3757_vm5, %v3761_v6, %v3763_v7  ;;  %v3767_v49 = vrot.slane %v13119_v4, 3  ;;  %v4917_v15 = vld [vmem:[#allocation2 + $0x4] sm:$0xf] }
 0x2e5   : > { %v3455_v23 = vor.u32 %v3454_v35, %v3451_v63  ;;  %v3775_v4 = vrot.slane %v13139_v53, 3  ;;  %v3774_v20 = vsel %vm3757_vm5, %v3771_v31, %v3773_v62  ;;  %v3779_v3 = vrot.slane %v13149_v24, 3  ;;  %v13306_v63 = vld [vmem:[#allocation9] ss:$0 sm:$0xff] }
 0x2e6   : > { %10600 = vmatmul.mubr.bf16.gmra.mrb[8].mxu0 %v3348_v56  ;;  %v3422_v56 = vshrl.u32 %v13172_v37, 16  ;;  %v3758_v54 = vrot.slane %v9344_v22, 3  ;;  %v3770_v47 = vsel %vm3757_vm5, %v3767_v49, %v3769_v55  ;;  %v3781_v42 = vrot.slane %v13157_v26, 3 }
 0x2e7   : > { %10603 = vmatprep.mubr.bf16.mxu0 %v3357_v39  ;;  %10636 = vmatpush3.bf16.msra.mxu0 %v11962_v29  ;;  %v3413_v29 = vshrl.u32 %v13168_v58, 16  ;;  %v3780_v33 = vsel %vm3757_vm5, %v3777_v10, %v3779_v3  ;;  %v3783_v53 = vrot.slane %v13161_v27, 3  ;;  %v3785_v21 = vrot.slane %v13168_v58, 3 }
 0x2e8   : > { %10637 = vmatprep.subr.bf16.mxu0 %v11963_v40  ;;  %4330 = vperm.xlu1 %11833, %v393_v44   ;;  %v3768_v44 = vsel %vm3757_vm5, %v3765_v0, %v3767_v49  ;;  %v3787_v24 = vrot.slane %v13172_v37, 3  ;;  %v3789_v26 = vrot.slane %v13178_v11, 3  ;;  %v3791_v27 = vrot.slane %v13181_v13, 3  ;;  %v345_v13 = vld [vmem:[#allocation2 + $0x8] sm:$0x3] }
 0x2e9   : > { %v3415_v39 = vrot.slane %v3413_v29, 2  ;;  %v3772_v29 = vsel %vm3757_vm5, %v3769_v55, %v3771_v31  ;;  %v3793_v58 = vrot.slane %v13242_v41, 3  ;;  %v352_v60 = vsel %vm13295_vm11, 0, %v351_v59  ;;  %v11973_v41 = vld [vmem:[#allocation8 + $0x68] sm:$0xff]  }
 0x2ea   : > { %353 = vst [vmem:[#allocation2 + $0x98] sm:$0xe] %v352_v60  ;;  %v13304_v28 = vcombine.low %v4916_v12, %v4917_v15 }
 0x2eb   : > { %10638 = vmatpush3.bf16.msra.mxu0 %v11963_v40  ;;  %v3424_v40 = vrot.slane %v3422_v56, 2  ;;  %v3419_v5 = vor.u32 %v3418_v36, %v3415_v39  ;;  %v3778_v56 = vsel %vm3757_vm5, %v3775_v4, %v3777_v10  ;;  %v3784_v39 = vsel %vm3757_vm5, %v3781_v42, %v3783_v53 }
 0x2ec   : > { %10639 = vmatprep.subr.bf16.mxu0 %v11964_v34  ;;  %v3786_v36 = vsel %vm3757_vm5, %v3783_v53, %v3785_v21  ;;  %v3794_v37 = vsel %vm3757_vm5, %v3791_v27, %v3793_v58  ;;  %v5080_v49 = vshrl.u32 %v13304_v28, 16 }
 0x2ed   : > { %v3428_v57 = vor.u32 %v3427_v45, %v3424_v40  ;;  %v3420_v48 = vsel %vm3286_vm4, %v3410_v30, %v3419_v5  ;;  %v3776_v30 = vsel %vm3757_vm5, %v3773_v62, %v3775_v4  ;;  %v3790_v40 = vsel %vm3757_vm5, %v3787_v24, %v3789_v26 }
 0x2ee   : > { %10604 = vmatmul.mubr.bf16.gmra.mrb[12].mxu0 %v3366_v46  ;;  %v3792_v45 = vsel %vm3757_vm5, %v3789_v26, %v3791_v27 }
 0x2ef   : > { %10607 = vmatprep.mubr.bf16.mxu0 %v3375_v14  ;;  %10640 = vmatpush3.bf16.msra.mxu0 %v11964_v34  ;;  %v3433_v34 = vrot.slane %v3431_v50, 2  ;;  %v3429_v46 = vsel %vm3286_vm4, %v3419_v5, %v3428_v57  ;;  %v11968_v5 = vld [vmem:[#allocation8 + $0x40] sm:$0xff]   ;;  %v346_v50 = vsel %vm13289_vm8, 0, %v345_v13 }
 0x2f0   : > { %10641 = vmatprep.subr.bf16.mxu0 %v11965_v16  ;;  %10679 = vmatprep.subr.bf16.mxu1 %v11968_v5  ;;  %347 = vst [vmem:[#allocation2 + $0x8] sm:$0x3] %v346_v50 }
 0x2f1   : > { %v3437_v14 = vor.u32 %v3436_v2, %v3433_v34  ;;  %10680 = vmatpush3.bf16.msra.mxu1 %v11968_v5  ;;  %v11971_v34 = vld [vmem:[#allocation8 + $0x58] sm:$0xff]   ;;  %v11972_v2 = vld [vmem:[#allocation8 + $0x60] sm:$0xff]  }
 0x2f2   : > { %10681 = vmatprep.subr.bf16.mxu1 %v11969_v51 }
 0x2f3   : > { %10642 = vmatpush3.bf16.msra.mxu0 %v11965_v16  ;;  %v3446_v16 = vor.u32 %v3445_v9, %v3442_v52  ;;  %v3438_v18 = vsel %vm3286_vm4, %v3428_v57, %v3437_v14  ;;  %v11975_v52 = vld [vmem:[#allocation8 + $0x78] sm:$0xff]   ;;  %v13301_v9 = vld [vmem:[#allocation8] sm:$0xff]  }
 0x2f5   : > { %v3447_v8 = vsel %vm3286_vm4, %v3437_v14, %v3446_v16  ;;  %v3456_v17 = vsel %vm3286_vm4, %v3446_v16, %v3455_v23  ;;  %10682 = vmatpush3.bf16.msra.mxu1 %v11969_v51  ;;  %v4166_v16 = vpop.permute.xlu1 %4165 }
 0x2f6   : > { %10608 = vmatmul.mubr.bf16.gmra.mrb[16].mxu0 %v3384_v19  ;;  %v3760_v19 = vsel %vm3757_vm5, %v3758_v54, %v3759_v61 }
 0x2f7   : > { %10611 = vmatprep.mubr.bf16.mxu0 %v3393_v32  ;;  %v3762_v32 = vsel %vm3757_vm5, %v3759_v61, %v3761_v6  ;;  %v4875_v60 = vld [vmem:[#allocation2 + $0x8] sm:$0xe] }
 0x2f9   : > { %v4171_v54 = vpop.permute.xlu1 %4170 }
 0x2fe   : > { %10612 = vmatmul.mubr.bf16.gmra.mrb[20].mxu0 %v3402_v38  ;;  %v3782_v38 = vsel %vm3757_vm5, %v3779_v3, %v3781_v42  ;;  %v13314_v4 = vpop.permute.xlu1 %4180 }
 0x2ff   : > { %10615 = vmatprep.mubr.bf16.mxu0 %v3411_v1  ;;  %v3788_v1 = vsel %vm3757_vm5, %v3785_v21, %v3787_v24 }
 0x306   : > { %10616 = vmatmul.mubr.bf16.gmra.mrb[24].mxu0 %v3420_v48  ;;  %v11970_v48 = vld [vmem:[#allocation8 + $0x50] sm:$0xff]  }
 0x307   : > { %10619 = vmatprep.mubr.bf16.mxu0 %v3429_v46  ;;  %10683 = vmatprep.subr.bf16.mxu1 %v11970_v48  ;;  %v11974_v46 = vld [vmem:[#allocation8 + $0x70] sm:$0xff]  }
 0x308   : > { %10684 = vmatpush3.bf16.msra.mxu1 %v11970_v48 }
 0x309   : > { %10685 = vmatprep.subr.bf16.mxu1 %v11971_v34 }
 0x30c   : > { %10686 = vmatpush3.bf16.msra.mxu1 %v11971_v34 }
 0x30d   : > { %10687 = vmatprep.subr.bf16.mxu1 %v11972_v2 }
 0x30e   : > { %10620 = vmatmul.mubr.bf16.gmra.mrb[28].mxu0 %v3438_v18 }
 0x30f   : > { %10623 = vmatprep.mubr.bf16.mxu0 %v3447_v8  ;;  %v4156_v14 = vpop.permute.xlu0 %4155  ;;  %v5082_v8 = vshll.u32 %v13304_v28, 16 }
 0x310   : > { %10688 = vmatpush3.bf16.msra.mxu1 %v11972_v2 }
 0x311   : > { %10689 = vmatprep.subr.bf16.mxu1 %v11973_v41 }
 0x313   : > { %v4161_v18 = vpop.permute.xlu0 %4160 }
 0x314   : > { %10690 = vmatpush3.bf16.msra.mxu1 %v11973_v41  ;;  %v4191_v41 = vpop.permute.xlu1 %4190 }
 0x315   : > { %10691 = vmatprep.subr.bf16.mxu1 %v11974_v46 }
 0x316   : > { %10624 = vmatmul.mubr.bf16.gmra.mrb[32].mxu0 %v3456_v17 }
 0x317   : > { %10643 = vmatprep.mubr.bf16.mxu0 %v3760_v19 }
 0x318   : > { %10692 = vmatpush3.bf16.msra.mxu1 %v11974_v46 }
 0x319   : > { %10693 = vmatprep.subr.bf16.mxu1 %v11975_v52 }
 0x31c   : > { %10694 = vmatpush3.bf16.msra.mxu1 %v11975_v52 }
 0x31d   : > { %10731 = vmatprep.subr.bf16.mxu1 %v13301_v9 }
 0x31e   : > { %10644 = vmatmul.mubr.bf16.vlgmr.msra.gmra.mrb[0].mxu0 %v3762_v32  ;;  %v4176_v32 = vpop.permute.xlu0 %4175 }
 0x31f   : > { %10647 = vmatprep.mubr.bf16.mxu0 %v3764_v43 }
 0x326   : > { %10648 = vmatmul.mubr.bf16.gmra.mrb[4].mxu0 %v3766_v25  ;;  %v5084_v25 = vrot.slane %v5082_v8, 1 }
 0x327   : > { %10651 = vmatprep.mubr.bf16.mxu0 %v3768_v44 }
 0x328   : > { %v13316_v3 = vor.u32 %v5084_v25, %v5080_v49 }
 0x32e   : > { %10652 = vmatmul.mubr.bf16.gmra.mrb[8].mxu0 %v3770_v47 }
 0x32f   : > { %10655 = vmatprep.mubr.bf16.mxu0 %v3772_v29 }
 0x336   : > { %10656 = vmatmul.mubr.bf16.gmra.mrb[12].mxu0 %v3774_v20 }
 0x337   : > { %10659 = vmatprep.mubr.bf16.mxu0 %v3776_v30 }
 0x33e   : > { %10660 = vmatmul.mubr.bf16.gmra.mrb[16].mxu0 %v3778_v56 }
 0x33f   : > { %10663 = vmatprep.mubr.bf16.mxu0 %v3780_v33 }
 0x346   : > { %10664 = vmatmul.mubr.bf16.gmra.mrb[20].mxu0 %v3782_v38 }
 0x347   : > { %10667 = vmatprep.mubr.bf16.mxu0 %v3784_v39  ;;  %v4186_v39 = vpop.permute.xlu0 %4185 }
 0x34e   : > { %10668 = vmatmul.mubr.bf16.gmra.mrb[24].mxu0 %v3786_v36 }
 0x34f   : > { %10671 = vmatprep.mubr.bf16.mxu0 %v3788_v1 }
 0x356   : > { %10672 = vmatmul.mubr.bf16.gmra.mrb[28].mxu0 %v3790_v40 }
 0x357   : > { %10675 = vmatprep.mubr.bf16.mxu0 %v3792_v45 }
 0x35e   : > { %10676 = vmatmul.mubr.bf16.gmra.mrb[32].mxu0 %v3794_v37 }
 0x3f1   : > { %v10645_v35 = vpop.f32.mrb[0].mxu0 }
 0x3f2   : > { %v4083_v22 = vadd.f32 %v10645_v35, %v13306_v63  ;;  %v3895_v23 = vpop.f32.mrb[1].mxu0 }
 0x3f3   : > { %v4081_v61 = vadd.f32 %v13306_v63, %v3895_v23  ;;  %v10646_v17 = vpop.f32.mrb[2].mxu0 }
 0x3f4   : > { %v4119_v19 = vmax.f32 %v4083_v22, 0.0  ;;  %v4084_v6 = vadd.f32 %v10646_v17, %v13306_v63  ;;  %v3898_v7 = vpop.f32.mrb[3].mxu0  ;;  %v13327_v22 = vpop.permute.xlu0 %4195 }
 0x3f5   : > { %v4117_v43 = vmax.f32 %v4081_v61, 0.0  ;;  %v4082_v0 = vadd.f32 %v13306_v63, %v3898_v7 }
 0x3f6   : > { %v4335_v44 = vmul.f32 %v4166_v16, %v4119_v19  ;;  %v4120_v55 = vmax.f32 %v4084_v6, 0.0 }
 0x3f7   : > { %v4333_v31 = vmul.f32 %v4156_v14, %v4117_v43  ;;  %v4118_v47 = vmax.f32 %v4082_v0, 0.0 }
 0x3f8   : > { %v9566_v29 = vpack.c.bf16 %v4335_v44, %v4335_v44  ;;  %v4336_v62 = vmul.f32 %v4171_v54, %v4120_v55 }
 0x3f9   : > { %v9564_v20 = vpack.c.bf16 %v4333_v31, %v4333_v31  ;;  %v4334_v30 = vmul.f32 %v4161_v18, %v4118_v47  ;;  %v10649_v10 = vpop.f32.mrb[4].mxu0 }
 0x3fa   : > { %v4499_v56 = vshrl.u32 %v9566_v29, 16  ;;  %v4502_v33 = vshll.u32 %v9566_v29, 16  ;;  %v9567_v42 = vpack.c.bf16 %v4336_v62, %v4336_v62  ;;  %v4087_v53 = vadd.f32 %v10649_v10, %v13306_v63  ;;  %v3911_v38 = vpop.f32.mrb[5].mxu0 }
 0x3fb   : > { %v4480_v21 = vshrl.u32 %v9564_v20, 16  ;;  %v4483_v24 = vshll.u32 %v9564_v20, 16  ;;  %v9565_v36 = vpack.c.bf16 %v4334_v30, %v4334_v30  ;;  %v4085_v1 = vadd.f32 %v13306_v63, %v3911_v38  ;;  %v10650_v26 = vpop.f32.mrb[6].mxu0  ;;  %v13337_v30 = vpop.permute.xlu1 %4200 }
 0x3fc   : > { %v4501_v27 = vrot.slane %v4499_v56, 6  ;;  %v4504_v40 = vrot.slane %v4502_v33, 7  ;;  %v4509_v45 = vshrl.u32 %v9567_v42, 16  ;;  %v4512_v58 = vshll.u32 %v9567_v42, 16  ;;  %v3914_v37 = vpop.f32.mrb[7].mxu0 }
 0x3fd   : > { %v4482_v5 = vrot.slane %v4480_v21, 6  ;;  %v4485_v13 = vrot.slane %v4483_v24, 7  ;;  %v4489_v50 = vshrl.u32 %v9565_v36, 16  ;;  %v4492_v51 = vshll.u32 %v9565_v36, 16  ;;  %v4206_v24 = vpop.permute.xlu0 %4205 }
 0x3fe   : > { %v4505_v59 = vor.u32 %v4504_v40, %v4501_v27  ;;  %v4511_v48 = vrot.slane %v4509_v45, 6  ;;  %v4514_v34 = vrot.slane %v4512_v58, 7  ;;  %v4123_v2 = vmax.f32 %v4087_v53, 0.0 }
 0x3ff   : > { %v4486_v52 = vor.u32 %v4485_v13, %v4482_v5  ;;  %v4491_v14 = vrot.slane %v4489_v50, 6  ;;  %v4494_v12 = vrot.slane %v4492_v51, 7  ;;  %v4121_v15 = vmax.f32 %v4085_v1, 0.0 }
 0x400   : > { %v4507_v16 = vrot.slane %v4505_v59, 4  ;;  %v4515_v18 = vor.u32 %v4514_v34, %v4511_v48  ;;  %v4339_v35 = vmul.f32 %v4186_v39, %v4123_v2  ;;  %v4088_v8 = vadd.f32 %v10650_v26, %v13306_v63 }
 0x401   : > { %v4487_v23 = vrot.slane %v4486_v52, 4  ;;  %v4876_v54 = vsel %vm13295_vm11, %v4486_v52, %v4875_v60  ;;  %v4495_v61 = vor.u32 %v4494_v12, %v4491_v14  ;;  %v4337_v17 = vmul.f32 %v4176_v32, %v4121_v15  ;;  %v10653_v19 = vpop.f32.mrb[8].mxu0  ;;  %v4211_v52 = vpop.permute.xlu1 %4210 }
 0x402   : > { %4877 = vst [vmem:[#allocation2 + $0x8] sm:$0xe] %v4876_v54  ;;  %v4516_v6 = vsel %vm13322_vm13, %v4507_v16, %v4515_v18  ;;  %v4517_v7 = vrot.slane %v4515_v18, 4  ;;  %v9570_v43 = vpack.c.bf16 %v4339_v35, %v4339_v35  ;;  %v4124_v0 = vmax.f32 %v4088_v8, 0.0  ;;  %v3927_v49 = vpop.f32.mrb[9].mxu0 }
 0x403   : > { %4880 = vst [vmem:[#allocation2 + $0x14] sm:$0xf] %v4516_v6  ;;  %v4496_v25 = vsel %vm13322_vm13, %v4487_v23, %v4495_v61  ;;  %v4497_v44 = vrot.slane %v4495_v61, 4  ;;  %v9568_v55 = vpack.c.bf16 %v4337_v17, %v4337_v17  ;;  %v4086_v57 = vadd.f32 %v13306_v63, %v3914_v37  ;;  %v10654_v31 = vpop.f32.mrb[10].mxu0  ;;  %v4216_v61 = vpop.permute.xlu0 %4215 }
 0x404   : > { %4878 = vst [vmem:[#allocation2 + $0xc] sm:$0xf] %v4496_v25  ;;  %v4539_v32 = vshrl.u32 %v9570_v43, 16  ;;  %v4542_v47 = vshll.u32 %v9570_v43, 16  ;;  %v4340_v29 = vmul.f32 %v4191_v41, %v4124_v0  ;;  %v4091_v62 = vadd.f32 %v10653_v19, %v13306_v63  ;;  %v3930_v20 = vpop.f32.mrb[11].mxu0 }
 0x405   : > { %v4506_v10 = vsel %vm13322_vm13, %v4497_v44, %v4505_v59  ;;  %v4519_v56 = vshrl.u32 %v9568_v55, 16  ;;  %v4522_v33 = vshll.u32 %v9568_v55, 16  ;;  %v4122_v42 = vmax.f32 %v4086_v57, 0.0 }
 0x406   : > { %4879 = vst [vmem:[#allocation2 + $0x10] sm:$0xf] %v4506_v10  ;;  %v4541_v53 = vrot.slane %v4539_v32, 6  ;;  %v4544_v38 = vrot.slane %v4542_v47, 7  ;;  %v9571_v39 = vpack.c.bf16 %v4340_v29, %v4340_v29  ;;  %v4127_v21 = vmax.f32 %v4091_v62, 0.0  ;;  %v13355_v62 = vpop.permute.xlu1 %4220 }
 0x407   : > { %v4521_v36 = vrot.slane %v4519_v56, 6  ;;  %v4524_v1 = vrot.slane %v4522_v33, 7  ;;  %v4338_v26 = vmul.f32 %v13314_v4, %v4122_v42  ;;  %v4089_v27 = vadd.f32 %v13306_v63, %v3927_v49 }
 0x408   : > { %v4545_v40 = vor.u32 %v4544_v38, %v4541_v53  ;;  %v4549_v45 = vshrl.u32 %v9571_v39, 16  ;;  %v4552_v58 = vshll.u32 %v9571_v39, 16  ;;  %v4343_v37 = vmul.f32 %v4206_v24, %v4127_v21 }
 0x409   : > { %v4525_v5 = vor.u32 %v4524_v1, %v4521_v36  ;;  %v9569_v13 = vpack.c.bf16 %v4338_v26, %v4338_v26  ;;  %v4125_v50 = vmax.f32 %v4089_v27, 0.0  ;;  %v4092_v51 = vadd.f32 %v10654_v31, %v13306_v63  ;;  %v10657_v59 = vpop.f32.mrb[12].mxu0  ;;  %v4226_v36 = vpop.permute.xlu0 %4225 }
 0x40a   : > { %v4547_v60 = vrot.slane %v4545_v40, 4  ;;  %v4551_v48 = vrot.slane %v4549_v45, 6  ;;  %v4554_v34 = vrot.slane %v4552_v58, 7  ;;  %v9574_v2 = vpack.c.bf16 %v4343_v37, %v4343_v37  ;;  %v3943_v41 = vpop.f32.mrb[13].mxu0 }
 0x40b   : > { %v4526_v4 = vsel %vm13322_vm13, %v4517_v7, %v4525_v5  ;;  %v4527_v14 = vrot.slane %v4525_v5, 4  ;;  %v4529_v12 = vshrl.u32 %v9569_v13, 16  ;;  %v4532_v15 = vshll.u32 %v9569_v13, 16  ;;  %v10658_v16 = vpop.f32.mrb[14].mxu0 }
 0x40c   : > { %4881 = vst [vmem:[#allocation2 + $0x18] sm:$0xf] %v4526_v4  ;;  %v4555_v18 = vor.u32 %v4554_v34, %v4551_v48  ;;  %v4579_v35 = vshrl.u32 %v9574_v2, 16  ;;  %v4582_v8 = vshll.u32 %v9574_v2, 16  ;;  %v4341_v23 = vmul.f32 %v13327_v22, %v4125_v50  ;;  %v3946_v54 = vpop.f32.mrb[15].mxu0 }
 0x40d   : > { %v4531_v17 = vrot.slane %v4529_v12, 6  ;;  %v4534_v19 = vrot.slane %v4532_v15, 7  ;;  %v4128_v6 = vmax.f32 %v4092_v51, 0.0  ;;  %v4090_v43 = vadd.f32 %v13306_v63, %v3930_v20 }
 0x40e   : > { %v4556_v7 = vsel %vm13322_vm13, %v4547_v60, %v4555_v18  ;;  %v4557_v0 = vrot.slane %v4555_v18, 4  ;;  %v4581_v49 = vrot.slane %v4579_v35, 6  ;;  %v4584_v25 = vrot.slane %v4582_v8, 7 }
 0x40f   : > { %4884 = vst [vmem:[#allocation2 + $0x24] sm:$0xf] %v4556_v7  ;;  %v4535_v44 = vor.u32 %v4534_v19, %v4531_v17  ;;  %v9572_v55 = vpack.c.bf16 %v4341_v23, %v4341_v23  ;;  %v4344_v57 = vmul.f32 %v4211_v52, %v4128_v6  ;;  %v4126_v31 = vmax.f32 %v4090_v43, 0.0  ;;  %v4231_v52 = vpop.permute.xlu1 %4230 }
 0x410   : > { %v13350_v32 = vor.u32 %v4584_v25, %v4581_v49  ;;  %v4095_v22 = vadd.f32 %v10657_v59, %v13306_v63  ;;  %v4093_v47 = vadd.f32 %v13306_v63, %v3943_v41  ;;  %v4096_v29 = vadd.f32 %v10658_v16, %v13306_v63  ;;  %v4236_v25 = vpop.permute.xlu0 %4235 }
 0x411   : > { %v4536_v20 = vsel %vm13322_vm13, %v4527_v14, %v4535_v44  ;;  %v4537_v10 = vrot.slane %v4535_v44, 4  ;;  %v4559_v56 = vshrl.u32 %v9572_v55, 16  ;;  %v4562_v33 = vshll.u32 %v9572_v55, 16  ;;  %v13359_v42 = vpop.f32.mrb[16].mxu0 }
 0x412   : > { %4882 = vst [vmem:[#allocation2 + $0x1c] sm:$0xf] %v4536_v20  ;;  %v4587_v53 = vrot.slane %v13350_v32, 4  ;;  %v9575_v38 = vpack.c.bf16 %v4344_v57, %v4344_v57  ;;  %v4342_v39 = vmul.f32 %v13337_v30, %v4126_v31  ;;  %v4131_v21 = vmax.f32 %v4095_v22, 0.0  ;;  %v13363_v24 = vpop.f32.mrb[17].mxu0 }
 0x413   : > { %v4546_v1 = vsel %vm13322_vm13, %v4537_v10, %v4545_v40  ;;  %v4561_v26 = vrot.slane %v4559_v56, 6  ;;  %v4564_v27 = vrot.slane %v4562_v33, 7  ;;  %v4129_v45 = vmax.f32 %v4093_v47, 0.0  ;;  %v13367_v58 = vpop.f32.mrb[18].mxu0 }
 0x414   : > { %4883 = vst [vmem:[#allocation2 + $0x20] sm:$0xf] %v4546_v1  ;;  %v4589_v37 = vshrl.u32 %v9575_v38, 16  ;;  %v4592_v5 = vshll.u32 %v9575_v38, 16  ;;  %v9573_v13 = vpack.c.bf16 %v4342_v39, %v4342_v39  ;;  %v4347_v50 = vmul.f32 %v4226_v36, %v4131_v21  ;;  %v13369_v51 = vpop.f32.mrb[19].mxu0  ;;  %v11977_v21 = vld [vmem:[#allocation2 + $0x8] sm:$0xff]   ;;  %v4241_v36 = vpop.permute.xlu1 %4240 }
 0x415   : > { %v4565_v30 = vor.u32 %v4564_v27, %v4561_v26  ;;  %v4345_v59 = vmul.f32 %v4216_v61, %v4129_v45  ;;  %v4132_v60 = vmax.f32 %v4096_v29, 0.0  ;;  %v4094_v48 = vadd.f32 %v13306_v63, %v3946_v54 }
 0x416   : > { %v4591_v34 = vrot.slane %v4589_v37, 6  ;;  %v4594_v2 = vrot.slane %v4592_v5, 7  ;;  %v4569_v40 = vshrl.u32 %v9573_v13, 16  ;;  %v4572_v41 = vshll.u32 %v9573_v13, 16 }
 0x417   : > { %v4566_v4 = vsel %vm13322_vm13, %v4557_v0, %v4565_v30  ;;  %v4567_v14 = vrot.slane %v4565_v30, 4  ;;  %v9578_v12 = vpack.c.bf16 %v4347_v50, %v4347_v50  ;;  %v9576_v15 = vpack.c.bf16 %v4345_v59, %v4345_v59 }
 0x418   : > { %4885 = vst [vmem:[#allocation2 + $0x28] sm:$0xf] %v4566_v4  ;;  %v4595_v16 = vor.u32 %v4594_v2, %v4591_v34  ;;  %v4571_v18 = vrot.slane %v4569_v40, 6  ;;  %v4574_v35 = vrot.slane %v4572_v41, 7  ;;  %v4348_v8 = vmul.f32 %v4231_v52, %v4132_v60  ;;  %v4246_v60 = vpop.permute.xlu0 %4245 }
 0x419   : > { %v4619_v23 = vshrl.u32 %v9578_v12, 16  ;;  %v4622_v61 = vshll.u32 %v9578_v12, 16  ;;  %v4599_v17 = vshrl.u32 %v9576_v15, 16  ;;  %v4602_v54 = vshll.u32 %v9576_v15, 16  ;;  %v13374_v19 = vpop.f32.mrb[20].mxu0 }
 0x41a   : > { %v4596_v6 = vsel %vm13322_vm13, %v4587_v53, %v4595_v16  ;;  %v4597_v43 = vrot.slane %v4595_v16, 4  ;;  %v4575_v7 = vor.u32 %v4574_v35, %v4571_v18  ;;  %v9579_v0 = vpack.c.bf16 %v4348_v8, %v4348_v8  ;;  %v13378_v49 = vpop.f32.mrb[21].mxu0 }
 0x41b   : > { %4888 = vst [vmem:[#allocation2 + $0x34] sm:$0xf] %v4596_v6  ;;  %v4621_v44 = vrot.slane %v4619_v23, 6  ;;  %v4624_v55 = vrot.slane %v4622_v61, 7  ;;  %v4601_v57 = vrot.slane %v4599_v17, 6  ;;  %v4604_v31 = vrot.slane %v4602_v54, 7 }
 0x41c   : > { %v13380_v22 = vpop.f32.mrb[22].mxu0  ;;  %v4576_v47 = vsel %vm13322_vm13, %v4567_v14, %v4575_v7  ;;  %v4577_v29 = vrot.slane %v4575_v7, 4  ;;  %v4629_v20 = vshrl.u32 %v9579_v0, 16  ;;  %v4632_v10 = vshll.u32 %v9579_v0, 16 }
 0x41d   : > { %v13384_v56 = vpop.f32.mrb[23].mxu0  ;;  %4886 = vst [vmem:[#allocation2 + $0x2c] sm:$0xf] %v4576_v47  ;;  %v13386_v33 = vor.u32 %v4624_v55, %v4621_v44  ;;  %v13388_v53 = vor.u32 %v4604_v31, %v4601_v57  ;;  %v4130_v38 = vmax.f32 %v4094_v48, 0.0  ;;  %v4099_v39 = vadd.f32 %v13359_v42, %v13306_v63 }
 0x41e   : > { %v4586_v1 = vsel %vm13322_vm13, %v4577_v29, %v13350_v32  ;;  %v4631_v26 = vrot.slane %v4629_v20, 6  ;;  %v4634_v27 = vrot.slane %v4632_v10, 7  ;;  %v4097_v45 = vadd.f32 %v13306_v63, %v13363_v24  ;;  %v13407_v24 = vld [vmem:[#allocation2 + $0x10] sm:$0xff]   ;;  %v4256_v10 = vpop.permute.xlu0 %4255 }
 0x41f   : > { %4887 = vst [vmem:[#allocation2 + $0x30] sm:$0xf] %v4586_v1  ;;  %v4627_v37 = vrot.slane %v13386_v33, 4  ;;  %v4606_v5 = vsel %vm13322_vm13, %v4597_v43, %v13388_v53  ;;  %v4607_v42 = vrot.slane %v13388_v53, 4  ;;  %v4346_v13 = vmul.f32 %v13355_v62, %v4130_v38 }
 0x420   : > { %4889 = vst [vmem:[#allocation2 + $0x38] sm:$0xf] %v4606_v5  ;;  %v13403_v50 = vor.u32 %v4634_v27, %v4631_v26  ;;  %v4135_v32 = vmax.f32 %v4099_v39, 0.0  ;;  %v4133_v30 = vmax.f32 %v4097_v45, 0.0  ;;  %v4100_v59 = vadd.f32 %v13367_v58, %v13306_v63 }
 0x421   : > { %v9577_v48 = vpack.c.bf16 %v4346_v13, %v4346_v13  ;;  %v5087_v34 = vshll.u32 %v11977_v21, 16  ;;  %v4098_v2 = vadd.f32 %v13306_v63, %v13369_v51  ;;  %v5091_v40 = vshrl.u32 %v11977_v21, 16  ;;  %v13411_v41 = vpop.f32.mrb[24].mxu0  ;;  %v4251_v51 = vpop.permute.xlu1 %4250 }
 0x422   : > { %v4636_v62 = vsel %vm13322_vm13, %v4627_v37, %v13403_v50  ;;  %v4637_v52 = vrot.slane %v13403_v50, 4  ;;  %v4351_v4 = vmul.f32 %v4246_v60, %v4135_v32  ;;  %v4349_v14 = vmul.f32 %v4236_v25, %v4133_v30  ;;  %v13417_v58 = vpop.f32.mrb[25].mxu0 }
 0x423   : > { %4892 = vst [vmem:[#allocation2 + $0x44] sm:$0xf] %v4636_v62  ;;  %v4609_v12 = vshrl.u32 %v9577_v48, 16  ;;  %v4612_v15 = vshll.u32 %v9577_v48, 16  ;;  %v4136_v16 = vmax.f32 %v4100_v59, 0.0  ;;  %v5089_v18 = vrot.slane %v5087_v34, 1 }
 0x424   : > { %v13419_v35 = vpop.f32.mrb[26].mxu0  ;;  %v9582_v8 = vpack.c.bf16 %v4351_v4, %v4351_v4  ;;  %v9580_v23 = vpack.c.bf16 %v4349_v14, %v4349_v14  ;;  %v4134_v61 = vmax.f32 %v4098_v2, 0.0  ;;  %v5095_v17 = vshll.u32 %v13407_v24, 16  ;;  %v13441_v48 = vld [vmem:[#allocation2 + $0x18] sm:$0xff]   ;;  %v11982_v34 = vld [vmem:[#allocation8 + $0x8] sm:$0xff]  }
 0x425   : > { %v13422_v54 = vpop.f32.mrb[27].mxu0  ;;  %v4611_v6 = vrot.slane %v4609_v12, 6  ;;  %v4614_v43 = vrot.slane %v4612_v15, 7  ;;  %v4352_v7 = vmul.f32 %v4251_v51, %v4136_v16  ;;  %v5090_v0 = vsel %vm557_vm0, %v13316_v3, %v5089_v18  ;;  %v13434_v32 = vpop.permute.xlu1 %4260 }
 0x426   : > { %v4659_v25 = vshrl.u32 %v9582_v8, 16  ;;  %v4662_v44 = vshll.u32 %v9582_v8, 16  ;;  %v4639_v55 = vshrl.u32 %v9580_v23, 16  ;;  %v4642_v57 = vshll.u32 %v9580_v23, 16  ;;  %10695 = vmatprep.mubr.bf16.mxu1 %v5090_v0  ;;  %v4266_v51 = vpop.permute.xlu0 %4265 }
 0x427   : > { %v4615_v31 = vor.u32 %v4614_v43, %v4611_v6  ;;  %v9583_v47 = vpack.c.bf16 %v4352_v7, %v4352_v7  ;;  %v4350_v29 = vmul.f32 %v4241_v36, %v4134_v61  ;;  %v5093_v20 = vor.u32 %v5091_v40, %v5089_v18  ;;  %v13453_v18 = vld [vmem:[#allocation2 + $0x20] sm:$0xff]  }
 0x428   : > { %v4661_v53 = vrot.slane %v4659_v25, 6  ;;  %v4664_v38 = vrot.slane %v4662_v44, 7  ;;  %v4641_v39 = vrot.slane %v4639_v55, 6  ;;  %v4644_v21 = vrot.slane %v4642_v57, 7 }
 0x429   : > { %v4616_v1 = vsel %vm13322_vm13, %v4607_v42, %v4615_v31  ;;  %v4617_v26 = vrot.slane %v4615_v31, 4  ;;  %v4669_v27 = vshrl.u32 %v9583_v47, 16  ;;  %v4672_v3 = vshll.u32 %v9583_v47, 16  ;;  %v13428_v45 = vpop.f32.mrb[28].mxu0  ;;  %v4271_v55 = vpop.permute.xlu1 %4270 }
 0x42a   : > { %4890 = vst [vmem:[#allocation2 + $0x3c] sm:$0xf] %v4616_v1  ;;  %v13430_v37 = vor.u32 %v4664_v38, %v4661_v53  ;;  %v4645_v5 = vor.u32 %v4644_v21, %v4641_v39  ;;  %v9581_v13 = vpack.c.bf16 %v4350_v29, %v4350_v29  ;;  %v5097_v36 = vrot.slane %v5095_v17, 1  ;;  %v13432_v50 = vpop.f32.mrb[29].mxu0 }
 0x42b   : > { %v4626_v30 = vsel %vm13322_vm13, %v4617_v26, %v13386_v33  ;;  %v4671_v42 = vrot.slane %v4669_v27, 6  ;;  %v4674_v59 = vrot.slane %v4672_v3, 7  ;;  %v4103_v60 = vadd.f32 %v13374_v19, %v13306_v63  ;;  %v13443_v2 = vpop.f32.mrb[30].mxu0  ;;  %v13476_v3 = vpop.permute.xlu0 %4275 }
 0x42c   : > { %4891 = vst [vmem:[#allocation2 + $0x40] sm:$0xf] %v4626_v30  ;;  %v4667_v40 = vrot.slane %v13430_v37, 4  ;;  %v4646_v62 = vsel %vm13322_vm13, %v4637_v52, %v4645_v5  ;;  %v4647_v4 = vrot.slane %v4645_v5, 4  ;;  %v4649_v14 = vshrl.u32 %v9581_v13, 16  ;;  %v13448_v12 = vpop.f32.mrb[31].mxu0 }
 0x42d   : > { %4893 = vst [vmem:[#allocation2 + $0x48] sm:$0xf] %v4646_v62  ;;  %v13450_v33 = vor.u32 %v4674_v59, %v4671_v42  ;;  %v4652_v15 = vshll.u32 %v9581_v13, 16  ;;  %v5098_v19 = vsel %vm557_vm0, %v5093_v20, %v5097_v36  ;;  %v4139_v16 = vmax.f32 %v4103_v60, 0.0 }
 0x42e   : > { %v4651_v8 = vrot.slane %v4649_v14, 6  ;;  %10696 = vmatmul.mubr.bf16.vlgmr.msra.gmra.mrb[0].mxu1 %v5098_v19  ;;  %v4101_v23 = vadd.f32 %v13306_v63, %v13378_v49  ;;  %v4104_v52 = vadd.f32 %v13380_v22, %v13306_v63  ;;  %v5099_v61 = vshrl.u32 %v13407_v24, 16  ;;  %v11985_v22 = vld [vmem:[#allocation8 + $0x10] sm:$0xff]  }
 0x42f   : > { %v4676_v17 = vsel %vm13322_vm13, %v4667_v40, %v13450_v33  ;;  %v4677_v6 = vrot.slane %v13450_v33, 4  ;;  %v4654_v43 = vrot.slane %v4652_v15, 7  ;;  %10732 = vmatpush3.bf16.msra.mxu1 %v13301_v9  ;;  %v4355_v7 = vmul.f32 %v4266_v51, %v4139_v16 }
 0x430   : > { %4896 = vst [vmem:[#allocation2 + $0x54] sm:$0xf] %v4676_v17  ;;  %v4137_v0 = vmax.f32 %v4101_v23, 0.0  ;;  %v4140_v25 = vmax.f32 %v4104_v52, 0.0  ;;  %v5101_v44 = vor.u32 %v5099_v61, %v5097_v36  ;;  %v5103_v49 = vshll.u32 %v13441_v48, 16  ;;  %10733 = vmatprep.subr.bf16.mxu1 %v11982_v34  ;;  %v11988_v36 = vld [vmem:[#allocation8 + $0x18] sm:$0xff]   ;;  %v4281_v17 = vpop.permute.xlu1 %4280 }
 0x431   : > { %v4655_v24 = vor.u32 %v4654_v43, %v4651_v8  ;;  %v9586_v57 = vpack.c.bf16 %v4355_v7, %v4355_v7  ;;  %v4102_v31 = vadd.f32 %v13306_v63, %v13384_v56  ;;  %v5107_v47 = vshrl.u32 %v13441_v48, 16  ;;  %v13469_v29 = vpop.f32.mrb[32].mxu0 }
 0x432   : > { %v4353_v9 = vmul.f32 %v4256_v10, %v4137_v0  ;;  %v4356_v20 = vmul.f32 %v4271_v55, %v4140_v25  ;;  %v5105_v53 = vrot.slane %v5103_v49, 1  ;;  %v5111_v38 = vshll.u32 %v13453_v18, 16  ;;  %v13472_v39 = vpop.f32.mrb[33].mxu0  ;;  %v13499_v55 = vld [vmem:[#allocation2 + $0x28] sm:$0xff]  }
 0x433   : > { %v4656_v21 = vsel %vm13322_vm13, %v4647_v4, %v4655_v24  ;;  %v4657_v1 = vrot.slane %v4655_v24, 4  ;;  %v4699_v26 = vshrl.u32 %v9586_v57, 16  ;;  %v4702_v27 = vshll.u32 %v9586_v57, 16  ;;  %10734 = vmatpush3.bf16.msra.mxu1 %v11982_v34  ;;  %v13479_v30 = vpop.f32.mrb[34].mxu0 }
 0x434   : > { %4894 = vst [vmem:[#allocation2 + $0x4c] sm:$0xf] %v4656_v21  ;;  %v9584_v56 = vpack.c.bf16 %v4353_v9, %v4353_v9  ;;  %v9587_v5 = vpack.c.bf16 %v4356_v20, %v4356_v20  ;;  %v5106_v10 = vsel %vm557_vm0, %v5101_v44, %v5105_v53  ;;  %v4138_v13 = vmax.f32 %v4102_v31, 0.0  ;;  %10735 = vmatprep.subr.bf16.mxu1 %v11985_v22  ;;  %v13484_v34 = vpop.f32.mrb[35].mxu0  ;;  %v4286_v44 = vpop.permute.xlu0 %4285 }
 0x435   : > { %v4666_v42 = vsel %vm13322_vm13, %v4657_v1, %v13430_v37  ;;  %v4701_v59 = vrot.slane %v4699_v26, 6  ;;  %v4704_v60 = vrot.slane %v4702_v27, 7  ;;  %10699 = vmatprep.mubr.bf16.mxu1 %v5106_v10  ;;  %v5109_v48 = vor.u32 %v5107_v47, %v5105_v53  ;;  %v11991_v37 = vld [vmem:[#allocation8 + $0x20] sm:$0xff]   ;;  %v11994_v53 = vld [vmem:[#allocation8 + $0x28] sm:$0xff]  }
 0x436   : > { %4895 = vst [vmem:[#allocation2 + $0x50] sm:$0xf] %v4666_v42  ;;  %v4679_v40 = vshrl.u32 %v9584_v56, 16  ;;  %v4682_v62 = vshll.u32 %v9584_v56, 16  ;;  %v4709_v4 = vshrl.u32 %v9587_v5, 16  ;;  %v4712_v14 = vshll.u32 %v9587_v5, 16  ;;  %v4291_v56 = vpop.permute.xlu1 %4290 }
 0x437   : > { %v13486_v15 = vor.u32 %v4704_v60, %v4701_v59  ;;  %v4354_v19 = vmul.f32 %v13434_v32, %v4138_v13  ;;  %v5113_v16 = vrot.slane %v5111_v38, 1  ;;  %v4107_v51 = vadd.f32 %v13411_v41, %v13306_v63  ;;  %10736 = vmatpush3.bf16.msra.mxu1 %v11985_v22  ;;  %v13514_v42 = vld [vmem:[#allocation2 + $0x30] sm:$0xff]  }
 0x438   : > { %v4681_v8 = vrot.slane %v4679_v40, 6  ;;  %v4684_v23 = vrot.slane %v4682_v62, 7  ;;  %v4711_v52 = vrot.slane %v4709_v4, 6  ;;  %v4714_v61 = vrot.slane %v4712_v14, 7  ;;  %10737 = vmatprep.subr.bf16.mxu1 %v11988_v36  ;;  %v11998_v62 = vld [vmem:[#allocation8 + $0x30] sm:$0xff]  }
 0x439   : > { %v4707_v43 = vrot.slane %v13486_v15, 4  ;;  %v9585_v7 = vpack.c.bf16 %v4354_v19, %v4354_v19  ;;  %v5114_v0 = vsel %vm557_vm0, %v5109_v48, %v5113_v16  ;;  %v4143_v25 = vmax.f32 %v4107_v51, 0.0 }
 0x43a   : > { %v4685_v32 = vor.u32 %v4684_v23, %v4681_v8  ;;  %v13493_v49 = vor.u32 %v4714_v61, %v4711_v52  ;;  %10700 = vmatmul.mubr.bf16.gmra.mrb[4].mxu1 %v5114_v0  ;;  %v4105_v41 = vadd.f32 %v13306_v63, %v13417_v58  ;;  %v4108_v22 = vadd.f32 %v13419_v35, %v13306_v63 }
 0x43b   : > { %v4689_v24 = vshrl.u32 %v9585_v7, 16  ;;  %v4692_v57 = vshll.u32 %v9585_v7, 16  ;;  %v4359_v31 = vmul.f32 %v4286_v44, %v4143_v25  ;;  %v5115_v47 = vshrl.u32 %v13453_v18, 16  ;;  %10738 = vmatpush3.bf16.msra.mxu1 %v11988_v36  ;;  %v12001_v7 = vld [vmem:[#allocation8 + $0x38] sm:$0xff]  }
 0x43c   : > { %v4686_v9 = vsel %vm13322_vm13, %v4677_v6, %v4685_v32  ;;  %v4687_v20 = vrot.slane %v4685_v32, 4  ;;  %v4716_v58 = vsel %vm13322_vm13, %v4707_v43, %v13493_v49  ;;  %v4717_v35 = vrot.slane %v13493_v49, 4  ;;  %10739 = vmatprep.subr.bf16.mxu1 %v11991_v37 }
 0x43d   : > { %4897 = vst [vmem:[#allocation2 + $0x58] sm:$0xf] %v4686_v9  ;;  %4900 = vst [vmem:[#allocation2 + $0x64] sm:$0xf] %v4716_v58  ;;  %v4691_v38 = vrot.slane %v4689_v24, 6  ;;  %v4694_v21 = vrot.slane %v4692_v57, 7  ;;  %v9590_v18 = vpack.c.bf16 %v4359_v31, %v4359_v31  ;;  %v5117_v33 = vor.u32 %v5115_v47, %v5113_v16  ;;  %v13519_v16 = vpop.permute.xlu0 %4295  ;;  %v4301_v9 = vpop.permute.xlu1 %4300 }
 0x43e   : > { %v4141_v1 = vmax.f32 %v4105_v41, 0.0  ;;  %v4144_v26 = vmax.f32 %v4108_v22, 0.0  ;;  %v5119_v27 = vshll.u32 %v13499_v55, 16  ;;  %v4106_v6 = vadd.f32 %v13306_v63, %v13422_v54 }
 0x43f   : > { %v4695_v5 = vor.u32 %v4694_v21, %v4691_v38  ;;  %v4739_v10 = vshrl.u32 %v9590_v18, 16  ;;  %v4742_v13 = vshll.u32 %v9590_v18, 16  ;;  %10740 = vmatpush3.bf16.msra.mxu1 %v11991_v37  ;;  %v5123_v40 = vshrl.u32 %v13499_v55, 16 }
 0x440   : > { %v4357_v36 = vmul.f32 %v13476_v3, %v4141_v1  ;;  %v4360_v59 = vmul.f32 %v4291_v56, %v4144_v26  ;;  %v5121_v60 = vrot.slane %v5119_v27, 1  ;;  %v4142_v48 = vmax.f32 %v4106_v6, 0.0  ;;  %10741 = vmatprep.subr.bf16.mxu1 %v11994_v53  ;;  %v13534_v26 = vld [vmem:[#allocation9] ss:$0 sm:$0xff] }
 0x441   : > { %v4696_v4 = vsel %vm13322_vm13, %v4687_v20, %v4695_v5  ;;  %v4697_v54 = vrot.slane %v4695_v5, 4  ;;  %v4741_v14 = vrot.slane %v4739_v10, 6  ;;  %v4744_v19 = vrot.slane %v4742_v13, 7  ;;  %v4306_v21 = vpop.permute.xlu0 %4305  ;;  %v13542_v27 = vld [vmem:[#allocation8 + $0x80] sm:$0xff]  }
 0x442   : > { %4898 = vst [vmem:[#allocation2 + $0x5c] sm:$0xf] %v4696_v4  ;;  %v9588_v3 = vpack.c.bf16 %v4357_v36, %v4357_v36  ;;  %v9591_v51 = vpack.c.bf16 %v4360_v59, %v4360_v59  ;;  %v5122_v37 = vsel %vm557_vm0, %v5117_v33, %v5121_v60  ;;  %v4358_v8 = vmul.f32 %v4281_v17, %v4142_v48  ;;  %v13540_v33 = vld [vmem:[#allocation2 + $0x38] sm:$0xff]  }
 0x443   : > { %v4706_v23 = vsel %vm13322_vm13, %v4697_v54, %v13486_v15  ;;  %v13525_v52 = vor.u32 %v4744_v19, %v4741_v14  ;;  %10703 = vmatprep.mubr.bf16.mxu1 %v5122_v37  ;;  %v5125_v61 = vor.u32 %v5123_v40, %v5121_v60  ;;  %v5127_v43 = vshll.u32 %v13514_v42, 16  ;;  %10742 = vmatpush3.bf16.msra.mxu1 %v11994_v53  ;;  %v4311_v14 = vpop.permute.xlu1 %4310 }
 0x444   : > { %4899 = vst [vmem:[#allocation2 + $0x60] sm:$0xf] %v4706_v23  ;;  %v4719_v0 = vshrl.u32 %v9588_v3, 16  ;;  %v4722_v25 = vshll.u32 %v9588_v3, 16  ;;  %v4749_v44 = vshrl.u32 %v9591_v51, 16  ;;  %v4752_v32 = vshll.u32 %v9591_v51, 16  ;;  %10743 = vmatprep.subr.bf16.mxu1 %v11998_v62 }
 0x445   : > { %v4747_v17 = vrot.slane %v13525_v52, 4  ;;  %v9589_v41 = vpack.c.bf16 %v4358_v8, %v4358_v8  ;;  %v5129_v22 = vrot.slane %v5127_v43, 1  ;;  %v4111_v15 = vadd.f32 %v13428_v45, %v13306_v63  ;;  %v4316_v8 = vpop.permute.xlu0 %4315 }
 0x446   : > { %v4721_v24 = vrot.slane %v4719_v0, 6  ;;  %v4724_v57 = vrot.slane %v4722_v25, 7  ;;  %v4751_v31 = vrot.slane %v4749_v44, 6  ;;  %v4754_v47 = vrot.slane %v4752_v32, 7 }
 0x447   : > { %v4729_v20 = vshrl.u32 %v9589_v41, 16  ;;  %v4732_v58 = vshll.u32 %v9589_v41, 16  ;;  %v5130_v53 = vsel %vm557_vm0, %v5125_v61, %v5129_v22  ;;  %v4147_v38 = vmax.f32 %v4111_v15, 0.0  ;;  %10744 = vmatpush3.bf16.msra.mxu1 %v11998_v62  ;;  %v13553_v62 = vld [vmem:[#allocation2 + $0x40] sm:$0xff]  }
 0x448   : > { %v4725_v18 = vor.u32 %v4724_v57, %v4721_v24  ;;  %v13532_v1 = vor.u32 %v4754_v47, %v4751_v31  ;;  %10704 = vmatmul.mubr.bf16.gmra.mrb[8].mxu1 %v5130_v53  ;;  %v4109_v63 = vadd.f32 %v13534_v26, %v13432_v50  ;;  %v4112_v45 = vadd.f32 %v13534_v26, %v13443_v2 }
 0x449   : > { %v4731_v6 = vrot.slane %v4729_v20, 6  ;;  %v4734_v56 = vrot.slane %v4732_v58, 7  ;;  %v4363_v5 = vmul.f32 %v4306_v21, %v4147_v38  ;;  %v5131_v10 = vshrl.u32 %v13514_v42, 16  ;;  %10745 = vmatprep.subr.bf16.mxu1 %v12001_v7 }
 0x44a   : > { %v4726_v13 = vsel %vm13322_vm13, %v4717_v35, %v4725_v18  ;;  %v4727_v36 = vrot.slane %v4725_v18, 4  ;;  %v4756_v50 = vsel %vm13322_vm13, %v4747_v17, %v13532_v1  ;;  %v4757_v2 = vrot.slane %v13532_v1, 4  ;;  %v4326_v18 = vpop.permute.xlu0 %4325 }
 0x44b   : > { %4901 = vst [vmem:[#allocation2 + $0x68] sm:$0xf] %v4726_v13  ;;  %4904 = vst [vmem:[#allocation2 + $0x74] sm:$0xf] %v4756_v50  ;;  %v4735_v59 = vor.u32 %v4734_v56, %v4731_v6  ;;  %v9594_v60 = vpack.c.bf16 %v4363_v5, %v4363_v5  ;;  %v4145_v48 = vmax.f32 %v4109_v63, 0.0  ;;  %v4148_v40 = vmax.f32 %v4112_v45, 0.0  ;;  %10746 = vmatpush3.bf16.msra.mxu1 %v12001_v7  ;;  %v4321_v56 = vpop.permute.xlu1 %4320 }
 0x44c   : > { %v5133_v49 = vor.u32 %v5131_v10, %v5129_v22  ;;  %v5135_v4 = vshll.u32 %v13540_v33, 16  ;;  %v4110_v35 = vadd.f32 %v13534_v26, %v13448_v12  ;;  %v5139_v54 = vshrl.u32 %v13540_v33, 16  ;;  %10783 = vmatprep.subr.bf16.mxu1 %v13542_v27 }
 0x44d   : > { %v4736_v19 = vsel %vm13322_vm13, %v4727_v36, %v4735_v59  ;;  %v4737_v3 = vrot.slane %v4735_v59, 4  ;;  %v4779_v51 = vshrl.u32 %v9594_v60, 16  ;;  %v4782_v37 = vshll.u32 %v9594_v60, 16  ;;  %v13577_v60 = vld [vmem:[#allocation2 + $0x48] sm:$0xff]  }
 0x44e   : > { %4902 = vst [vmem:[#allocation2 + $0x6c] sm:$0xf] %v4736_v19  ;;  %v4361_v23 = vmul.f32 %v13519_v16, %v4145_v48  ;;  %v4364_v61 = vmul.f32 %v4311_v14, %v4148_v40  ;;  %v5137_v43 = vrot.slane %v5135_v4, 1  ;;  %v4146_v7 = vmax.f32 %v4110_v35, 0.0  ;;  %v13588_v19 = vld [vmem:[#allocation2 + $0x50] sm:$0xff]  }
 0x44f   : > { %v4746_v12 = vsel %vm13322_vm13, %v4737_v3, %v13525_v52  ;;  %v4781_v0 = vrot.slane %v4779_v51, 6  ;;  %v4784_v25 = vrot.slane %v4782_v37, 7  ;;  %v5143_v44 = vshll.u32 %v13553_v62, 16 }
 0x450   : > { %4903 = vst [vmem:[#allocation2 + $0x70] sm:$0xf] %v4746_v12  ;;  %v9592_v32 = vpack.c.bf16 %v4361_v23, %v4361_v23  ;;  %v9595_v17 = vpack.c.bf16 %v4364_v61, %v4364_v61  ;;  %v5138_v41 = vsel %vm557_vm0, %v5133_v49, %v5137_v43  ;;  %v4362_v22 = vmul.f32 %v4301_v9, %v4146_v7  ;;  %v4331_v7 = vpop.permute.xlu1 %4330 }
 0x451   : > { %v4785_v15 = vor.u32 %v4784_v25, %v4781_v0  ;;  %10707 = vmatprep.mubr.bf16.mxu1 %v5138_v41  ;;  %v5141_v16 = vor.u32 %v5139_v54, %v5137_v43  ;;  %v5145_v24 = vrot.slane %v5143_v44, 1  ;;  %v4115_v57 = vadd.f32 %v13534_v26, %v13469_v29 }
 0x452   : > { %v4759_v31 = vshrl.u32 %v9592_v32, 16  ;;  %v4762_v47 = vshll.u32 %v9592_v32, 16  ;;  %v4789_v52 = vshrl.u32 %v9595_v17, 16  ;;  %v4792_v20 = vshll.u32 %v9595_v17, 16 }
 0x453   : > { %v4787_v58 = vrot.slane %v4785_v15, 4  ;;  %v9593_v53 = vpack.c.bf16 %v4362_v22, %v4362_v22  ;;  %v5146_v38 = vsel %vm557_vm0, %v5141_v16, %v5145_v24  ;;  %v4151_v21 = vmax.f32 %v4115_v57, 0.0 }
 0x454   : > { %v4761_v63 = vrot.slane %v4759_v31, 6  ;;  %v4764_v45 = vrot.slane %v4762_v47, 7  ;;  %v4791_v9 = vrot.slane %v4789_v52, 6  ;;  %v4794_v6 = vrot.slane %v4792_v20, 7  ;;  %10708 = vmatmul.mubr.bf16.gmra.mrb[12].mxu1 %v5146_v38  ;;  %v13605_v38 = vld [vmem:[#allocation2 + $0x60] sm:$0xff]  }
 0x455   : > { %v4769_v5 = vshrl.u32 %v9593_v53, 16  ;;  %v4772_v10 = vshll.u32 %v9593_v53, 16  ;;  %v4367_v13 = vmul.f32 %v4326_v18, %v4151_v21  ;;  %v4113_v29 = vadd.f32 %v13534_v26, %v13472_v39 }
 0x456   : > { %v4765_v36 = vor.u32 %v4764_v45, %v4761_v63  ;;  %v13573_v50 = vor.u32 %v4794_v6, %v4791_v9  ;;  %v4116_v59 = vadd.f32 %v13534_v26, %v13479_v30  ;;  %v5147_v48 = vshrl.u32 %v13553_v62, 16 }
 0x457   : > { %v4771_v40 = vrot.slane %v4769_v5, 6  ;;  %v4774_v49 = vrot.slane %v4772_v10, 7  ;;  %v9598_v4 = vpack.c.bf16 %v4367_v13, %v4367_v13  ;;  %v4149_v35 = vmax.f32 %v4113_v29, 0.0 }
 0x458   : > { %v4766_v54 = vsel %vm13322_vm13, %v4757_v2, %v4765_v36  ;;  %v4767_v39 = vrot.slane %v4765_v36, 4  ;;  %v4796_v14 = vsel %vm13322_vm13, %v4787_v58, %v13573_v50  ;;  %v4797_v30 = vrot.slane %v13573_v50, 4  ;;  %v13611_v50 = vld [vmem:[#allocation2 + $0x68] sm:$0xff]  }
 0x459   : > { %4905 = vst [vmem:[#allocation2 + $0x78] sm:$0xf] %v4766_v54  ;;  %4908 = vst [vmem:[#allocation2 + $0x84] sm:$0xf] %v4796_v14  ;;  %v4775_v3 = vor.u32 %v4774_v49, %v4771_v40  ;;  %v4819_v51 = vshrl.u32 %v9598_v4, 16  ;;  %v4822_v37 = vshll.u32 %v9598_v4, 16  ;;  %v4365_v23 = vmul.f32 %v4316_v8, %v4149_v35 }
 0x45a   : > { %v4152_v61 = vmax.f32 %v4116_v59, 0.0  ;;  %v5149_v1 = vor.u32 %v5147_v48, %v5145_v24  ;;  %v5151_v43 = vshll.u32 %v13577_v60, 16  ;;  %v4114_v2 = vadd.f32 %v13534_v26, %v13484_v34  ;;  %v13601_v26 = vld [vmem:[#allocation2 + $0x58] sm:$0xff]   ;;  %v13613_v4 = vld [vmem:[#allocation2 + $0x70] sm:$0xff]  }
 0x45b   : > { %v4776_v12 = vsel %vm13322_vm13, %v4767_v39, %v4775_v3  ;;  %v4777_v0 = vrot.slane %v4775_v3, 4  ;;  %v4821_v25 = vrot.slane %v4819_v51, 6  ;;  %v4824_v44 = vrot.slane %v4822_v37, 7  ;;  %v4913_v3 = vld [vmem:[#allocation2 + $0x98] sm:$0x3] }
 0x45c   : > { %4906 = vst [vmem:[#allocation2 + $0x7c] sm:$0xf] %v4776_v12  ;;  %v9596_v32 = vpack.c.bf16 %v4365_v23, %v4365_v23  ;;  %v4368_v17 = vmul.f32 %v4331_v7, %v4152_v61  ;;  %v5153_v41 = vrot.slane %v5151_v43, 1  ;;  %v4150_v22 = vmax.f32 %v4114_v2, 0.0 }
 0x45d   : > { %v4786_v8 = vsel %vm13322_vm13, %v4777_v0, %v4785_v15  ;;  %v13597_v16 = vor.u32 %v4824_v44, %v4821_v25  ;;  %v5155_v24 = vshrl.u32 %v13577_v60, 16  ;;  %v5159_v34 = vshll.u32 %v13588_v19, 16 }
 0x45e   : > { %4907 = vst [vmem:[#allocation2 + $0x80] sm:$0xf] %v4786_v8  ;;  %v4799_v57 = vshrl.u32 %v9596_v32, 16  ;;  %v4802_v31 = vshll.u32 %v9596_v32, 16  ;;  %v9599_v47 = vpack.c.bf16 %v4368_v17, %v4368_v17  ;;  %v5154_v52 = vsel %vm557_vm0, %v5149_v1, %v5153_v41 }
 0x45f   : > { %v4827_v20 = vrot.slane %v13597_v16, 4  ;;  %10711 = vmatprep.mubr.bf16.mxu1 %v5154_v52  ;;  %v4366_v58 = vmul.f32 %v4321_v56, %v4150_v22  ;;  %v5157_v53 = vor.u32 %v5155_v24, %v5153_v41  ;;  %v5161_v15 = vrot.slane %v5159_v34, 1 }
 0x460   : > { %v4801_v21 = vrot.slane %v4799_v57, 6  ;;  %v4804_v18 = vrot.slane %v4802_v31, 7  ;;  %v4829_v63 = vshrl.u32 %v9599_v47, 16  ;;  %v4832_v45 = vshll.u32 %v9599_v47, 16 }
 0x461   : > { %v9597_v9 = vpack.c.bf16 %v4366_v58, %v4366_v58  ;;  %v5162_v6 = vsel %vm557_vm0, %v5157_v53, %v5161_v15  ;;  %v5163_v5 = vshrl.u32 %v13588_v19, 16  ;;  %v5167_v10 = vshll.u32 %v13601_v26, 16 }
 0x462   : > { %v4805_v13 = vor.u32 %v4804_v18, %v4801_v21  ;;  %v4831_v29 = vrot.slane %v4829_v63, 6  ;;  %v4834_v36 = vrot.slane %v4832_v45, 7  ;;  %10712 = vmatmul.mubr.bf16.gmra.mrb[16].mxu1 %v5162_v6  ;;  %v5171_v56 = vshrl.u32 %v13601_v26, 16 }
 0x463   : > { %v4809_v59 = vshrl.u32 %v9597_v9, 16  ;;  %v4812_v48 = vshll.u32 %v9597_v9, 16  ;;  %v5165_v40 = vor.u32 %v5163_v5, %v5161_v15  ;;  %v5169_v49 = vrot.slane %v5167_v10, 1  ;;  %v13621_v7 = vld [vmem:[#allocation2 + $0x78] sm:$0xff]  }
 0x464   : > { %v4806_v35 = vsel %vm13322_vm13, %v4797_v30, %v4805_v13  ;;  %v4807_v54 = vrot.slane %v4805_v13, 4  ;;  %v4835_v39 = vor.u32 %v4834_v36, %v4831_v29  ;;  %v5175_v14 = vshll.u32 %v13605_v38, 16 }
 0x465   : > { %4909 = vst [vmem:[#allocation2 + $0x88] sm:$0xf] %v4806_v35  ;;  %v4811_v51 = vrot.slane %v4809_v59, 6  ;;  %v4814_v37 = vrot.slane %v4812_v48, 7  ;;  %v5170_v23 = vsel %vm557_vm0, %v5165_v40, %v5169_v49  ;;  %v5173_v61 = vor.u32 %v5171_v56, %v5169_v49  ;;  %v13632_v34 = vld [vmem:[#allocation2 + $0x80] sm:$0xff]  }
 0x466   : > { %v4836_v1 = vsel %vm13322_vm13, %v4827_v20, %v4835_v39  ;;  %v4837_v43 = vrot.slane %v4835_v39, 4  ;;  %10715 = vmatprep.mubr.bf16.mxu1 %v5170_v23  ;;  %v5177_v2 = vrot.slane %v5175_v14, 1  ;;  %v5179_v12 = vshrl.u32 %v13605_v38, 16  ;;  %v13654_v48 = vld [vmem:[#allocation2 + $0xc] sm:$0xf]  ;;  %v13659_v39 = vld [vmem:[#allocation2 + $0x10] sm:$0xff]  }
 0x467   : > { %4912 = vst [vmem:[#allocation2 + $0x94] sm:$0xf] %v4836_v1  ;;  %v4815_v30 = vor.u32 %v4814_v37, %v4811_v51  ;;  %v5183_v0 = vshll.u32 %v13611_v50, 16  ;;  %v5191_v25 = vshll.u32 %v13613_v4, 16  ;;  %v5187_v17 = vshrl.u32 %v13611_v50, 16  ;;  %v13661_v14 = vld [vmem:[#allocation2 + $0x18] sm:$0xff]  }
 0x468   : > { %v4914_v44 = vsel %vm13289_vm8, %v4837_v43, %v4913_v3  ;;  %v5178_v32 = vsel %vm557_vm0, %v5173_v61, %v5177_v2  ;;  %v5181_v8 = vor.u32 %v5179_v12, %v5177_v2  ;;  %v5199_v31 = vshll.u32 %v13621_v7, 16  ;;  %v6050_v35 = vld [vmem:[#allocation2 + $0x8] sm:$0xe]  ;;  %v13664_v51 = vld [vmem:[#allocation2 + $0x20] sm:$0xff]   ;;  %v13669_v61 = vld [vmem:[#allocation2 + $0x30] sm:$0xff]  }
 0x469   : > { %4915 = vst [vmem:[#allocation2 + $0x98] sm:$0x3] %v4914_v44  ;;  %v4816_v41 = vsel %vm13322_vm13, %v4807_v54, %v4815_v30  ;;  %v4817_v22 = vrot.slane %v4815_v30, 4  ;;  %v5185_v24 = vrot.slane %v5183_v0, 1  ;;  %v5193_v57 = vrot.slane %v5191_v25, 1  ;;  %v13666_v37 = vld [vmem:[#allocation2 + $0x28] sm:$0xff]  }
 0x46a   : > { %4910 = vst [vmem:[#allocation2 + $0x8c] sm:$0xf] %v4816_v41  ;;  %10716 = vmatmul.mubr.bf16.gmra.mrb[20].mxu1 %v5178_v32  ;;  %v5195_v20 = vshrl.u32 %v13613_v4, 16  ;;  %v5201_v58 = vrot.slane %v5199_v31, 1  ;;  %v5207_v53 = vshll.u32 %v13632_v34, 16  ;;  %v5203_v63 = vshrl.u32 %v13621_v7, 16 }
 0x46b   : > { %v4826_v11 = vsel %vm13322_vm13, %v4817_v22, %v13597_v16  ;;  %v5186_v47 = vsel %vm557_vm0, %v5181_v8, %v5185_v24  ;;  %v5189_v52 = vor.u32 %v5187_v17, %v5185_v24  ;;  %v5211_v5 = vshrl.u32 %v13632_v34, 16  ;;  %v13677_v41 = vld [vmem:[#allocation2 + $0x38] sm:$0xff]   ;;  %v13682_v31 = vld [vmem:[#allocation2 + $0x40] sm:$0xff]  }
 0x46c   : > { %4911 = vst [vmem:[#allocation2 + $0x90] sm:$0xf] %v4826_v11  ;;  %10719 = vmatprep.mubr.bf16.mxu1 %v5186_v47  ;;  %v5197_v15 = vor.u32 %v5195_v20, %v5193_v57  ;;  %v5209_v46 = vrot.slane %v5207_v53, 1  ;;  %v5205_v16 = vor.u32 %v5203_v63, %v5201_v58  ;;  %v13657_v54 = vcombine.low %v6050_v35, %v13654_v48  ;;  %v13686_v20 = vld [vmem:[#allocation2 + $0x48] sm:$0xff]  }
 0x46d   : > { %v5194_v21 = vsel %vm557_vm0, %v5189_v52, %v5193_v57  ;;  %v6543_v43 = vshrl.u32 %v13659_v39, 16  ;;  %v6546_v2 = vshll.u32 %v13659_v39, 16  ;;  %v6552_v30 = vshrl.u32 %v13661_v14, 16 }
 0x46e   : > { %v5202_v18 = vsel %vm557_vm0, %v5197_v15, %v5201_v58  ;;  %v5213_v13 = vor.u32 %v5211_v5, %v5209_v46  ;;  %v5210_v29 = vsel %vm557_vm0, %v5205_v16, %v5209_v46  ;;  %v6535_v23 = vshrl.u32 %v13657_v54, 16  ;;  %v13692_v5 = vld [vmem:[#allocation2 + $0x50] sm:$0xff]  }
 0x46f   : > { %v6538_v1 = vshll.u32 %v13657_v54, 16  ;;  %v6555_v0 = vshll.u32 %v13661_v14, 16  ;;  %v6545_v44 = vrot.slane %v6543_v43, 1  ;;  %v6548_v32 = vrot.slane %v6546_v2, 2 }
 0x470   : > { %v6537_v12 = vrot.slane %v6535_v23, 1  ;;  %v6554_v17 = vrot.slane %v6552_v30, 1  ;;  %v6561_v8 = vshrl.u32 %v13664_v51, 16  ;;  %v6564_v24 = vshll.u32 %v13664_v51, 16  ;;  %v13706_v23 = vld [vmem:[#allocation2 + $0x10] sm:$0xff]  }
 0x471   : > { %v13644_v45 = vld [vmem:[#allocation2 + $0x88] sm:$0xff]   ;;  %v6540_v25 = vrot.slane %v6538_v1, 2  ;;  %v6557_v22 = vrot.slane %v6555_v0, 2  ;;  %v6570_v57 = vshrl.u32 %v13666_v37, 16  ;;  %v6573_v47 = vshll.u32 %v13666_v37, 16  ;;  %v13714_v0 = vld [vmem:[#allocation2 + $0x60] sm:$0xff]  }
 0x472   : > { %10720 = vmatmul.mubr.bf16.gmra.mrb[24].mxu1 %v5194_v21  ;;  %v5215_v9 = vshll.u32 %v13644_v45, 16  ;;  %v5219_v59 = vshrl.u32 %v13644_v45, 16  ;;  %v6579_v52 = vshrl.u32 %v13669_v61, 16  ;;  %v6563_v53 = vrot.slane %v6561_v8, 1 }
 0x473   : > { %10723 = vmatprep.mubr.bf16.mxu1 %v5202_v18  ;;  %v13647_v6 = vld [vmem:[#allocation2 + $0x90] ss:$0 sps:$4 sm:$0x11]   ;;  %v6541_v11 = vor.u32 %v6540_v25, %v6537_v12  ;;  %v6558_v58 = vor.u32 %v6557_v22, %v6554_v17  ;;  %v6566_v15 = vrot.slane %v6564_v24, 2  ;;  %v6572_v21 = vrot.slane %v6570_v57, 1  ;;  %v12005_v12 = vld [vmem:[#allocation8 + $0x90] sm:$0xff]  }
 0x474   : > { %v5217_v10 = vrot.slane %v5215_v9, 1  ;;  %v5223_v36 = vshll.u32 %v13647_v6, 16  ;;  %v12004_v18 = vld [vmem:[#allocation8 + $0x88] sm:$0xff]   ;;  %v6575_v46 = vrot.slane %v6573_v47, 2  ;;  %v6581_v16 = vrot.slane %v6579_v52, 1 }
 0x475   : > { %v6582_v9 = vshll.u32 %v13669_v61, 16  ;;  %v6597_v35 = vshrl.u32 %v13682_v31, 16  ;;  %v6606_v30 = vshrl.u32 %v13686_v20, 16  ;;  %v13719_v22 = vld [vmem:[#allocation2 + $0x68] sm:$0xff]   ;;  %v6609_v24 = vshll.u32 %v13686_v20, 16 }
 0x476   : > { %v5218_v56 = vsel %vm557_vm0, %v5213_v13, %v5217_v10  ;;  %v5221_v40 = vor.u32 %v5219_v59, %v5217_v10  ;;  %v5225_v49 = vrot.slane %v5223_v36, 1  ;;  %v6567_v13 = vor.u32 %v6566_v15, %v6563_v53  ;;  %v13702_v59 = vld [vmem:[#allocation2 + $0x58] sm:$0xff]  }
 0x477   : > { %v6591_v36 = vshll.u32 %v13677_v41, 16  ;;  %v6608_v8 = vrot.slane %v6606_v30, 1  ;;  %v6615_v57 = vshrl.u32 %v13692_v5, 16  ;;  %v6618_v52 = vshll.u32 %v13692_v5, 16 }
 0x478   : > { %v5226_v3 = vsel %vm557_vm0, %v5221_v40, %v5225_v49  ;;  %v6576_v40 = vor.u32 %v6575_v46, %v6572_v21  ;;  %v6584_v49 = vrot.slane %v6582_v9, 2  ;;  %v13711_v1 = vsel %vm2014_vm2, %v6558_v58, %v6567_v13 }
 0x479   : > { %14486 = vst [vmem:[#allocation22_spill] sm:$0xff] %v13711_v1  ;;  %v6593_v2 = vrot.slane %v6591_v36, 2  ;;  %v6611_v15 = vrot.slane %v6609_v24, 2  ;;  %v6617_v21 = vrot.slane %v6615_v57, 1  ;;  %v6627_v46 = vshll.u32 %v13702_v59, 16 }
 0x47a   : > { %10724 = vmatmul.mubr.bf16.gmra.mrb[28].mxu1 %v5210_v29  ;;  %v6588_v29 = vshrl.u32 %v13677_v41, 16  ;;  %v13717_v25 = vsel %vm2014_vm2, %v6567_v13, %v6576_v40  ;;  %v6620_v13 = vrot.slane %v6618_v52, 2  ;;  %v6633_v36 = vshrl.u32 %v13714_v0, 16 }
 0x47b   : > { %10727 = vmatprep.mubr.bf16.mxu1 %v5218_v56  ;;  %v13699_v56 = vld [vmem:[#allocation2 + $0x8] sm:$0xff]   ;;  %14487 = vst [vmem:[#allocation23_spill] sm:$0xff] %v13717_v25 }
 0x47c   : > { %v6590_v43 = vrot.slane %v6588_v29, 1  ;;  %v6621_v30 = vor.u32 %v6620_v13, %v6617_v21 }
 0x482   : > { %10728 = vmatmul.mubr.bf16.gmra.mrb[32].mxu1 %v5226_v3  ;;  %v6600_v3 = vshll.u32 %v13682_v31, 16 }
 0x483   : > { %10747 = vmatprep.mubr.bf16.mxu1 %v13304_v28  ;;  %v6549_v28 = vor.u32 %v6548_v32, %v6545_v44  ;;  %v6585_v44 = vor.u32 %v6584_v49, %v6581_v16  ;;  %v6599_v32 = vrot.slane %v6597_v35, 1  ;;  %v12006_v16 = vld [vmem:[#allocation8 + $0x98] sm:$0xff]   ;;  %v6612_v49 = vor.u32 %v6611_v15, %v6608_v8  ;;  %v13752_v8 = vld [vmem:[#allocation2 + $0x88] sm:$0xff]  }
 0x484   : > { %v6602_v17 = vrot.slane %v6600_v3, 2  ;;  %v6636_v35 = vshll.u32 %v13714_v0, 16  ;;  %v6642_v3 = vshrl.u32 %v13719_v22, 16  ;;  %14492 = vst [vmem:[#allocation28_spill] sm:$0xff] %v13752_v8  ;;  %v12007_v15 = vld [vmem:[#allocation8 + $0xa0] sm:$0xff]  }
 0x485   : > { %v13689_v63 = vsel %vm2014_vm2, %v6541_v11, %v6549_v28  ;;  %v13695_v10 = vsel %vm2014_vm2, %v6549_v28, %v6558_v58  ;;  %v13723_v11 = vld [vmem:[#allocation2 + $0x70] sm:$0xff]   ;;  %v13726_v28 = vsel %vm2014_vm2, %v6576_v40, %v6585_v44  ;;  %v6624_v58 = vshrl.u32 %v13702_v59, 16  ;;  %v13738_v40 = vld [vmem:[#allocation2 + $0x78] sm:$0xff]  }
 0x486   : > { %14484 = vst [vmem:[#allocation20_spill] sm:$0xff] %v13689_v63  ;;  %14485 = vst [vmem:[#allocation21_spill] sm:$0xff] %v13695_v10  ;;  %v6603_v47 = vor.u32 %v6602_v17, %v6599_v32  ;;  %v6645_v32 = vshll.u32 %v13719_v22, 16  ;;  %v6651_v17 = vshrl.u32 %v13723_v11, 16  ;;  %v6638_v52 = vrot.slane %v6636_v35, 2 }
 0x487   : > { %14488 = vst [vmem:[#allocation24_spill] sm:$0xff] %v13726_v28  ;;  %v6626_v29 = vrot.slane %v6624_v58, 1  ;;  %v6644_v58 = vrot.slane %v6642_v3, 1  ;;  %v13758_v21 = vsel %vm2014_vm2, %v6612_v49, %v6621_v30  ;;  %v6681_v28 = vshll.u32 %v13752_v8, 16 }
 0x488   : > { %v13755_v24 = vsel %vm2014_vm2, %v6603_v47, %v6612_v49  ;;  %14494 = vst [vmem:[#allocation30_spill] sm:$0xff] %v13758_v21  ;;  %v6653_v13 = vrot.slane %v6651_v17, 1 }
 0x489   : > { %14493 = vst [vmem:[#allocation29_spill] sm:$0xff] %v13755_v24 }
 0x48a   : > { %10748 = vmatmul.mubr.bf16.vlgmr.msra.gmra.mrb[0].mxu1 %v13699_v56 }
 0x48b   : > { %10751 = vmatprep.mubr.bf16.mxu1 %v13706_v23  ;;  %10784 = vmatpush3.bf16.msra.mxu1 %v13542_v27  ;;  %v6594_v27 = vor.u32 %v6593_v2, %v6590_v43  ;;  %v13742_v43 = vld [vmem:[#allocation2 + $0x18] sm:$0xff]   ;;  %v13745_v2 = vld [vmem:[#allocation2 + $0x80] sm:$0xff]  }
 0x48c   : > { %10785 = vmatprep.subr.bf16.mxu1 %v12004_v18  ;;  %14491 = vst [vmem:[#allocation27_spill] sm:$0xff] %v13745_v2  ;;  %v6669_v3 = vshrl.u32 %v13745_v2, 16  ;;  %v6672_v49 = vshll.u32 %v13745_v2, 16 }
 0x48d   : > { %v13731_v53 = vsel %vm2014_vm2, %v6585_v44, %v6594_v27  ;;  %v13735_v9 = vsel %vm2014_vm2, %v6594_v27, %v6603_v47  ;;  %v6635_v44 = vrot.slane %v6633_v36, 1  ;;  %v13749_v27 = vld [vmem:[#allocation2 + $0x20] sm:$0xff]   ;;  %v6654_v36 = vshll.u32 %v13723_v11, 16 }
 0x48e   : > { %14489 = vst [vmem:[#allocation25_spill] sm:$0xff] %v13731_v53  ;;  %14490 = vst [vmem:[#allocation26_spill] sm:$0xff] %v13735_v9  ;;  %v13761_v9 = vld [vmem:[#allocation2 + $0x90] sm:$0xff]   ;;  %v6660_v47 = vshrl.u32 %v13738_v40, 16 }
 0x48f   : > { %10786 = vmatpush3.bf16.msra.mxu1 %v12004_v18  ;;  %v6629_v18 = vrot.slane %v6627_v46, 2  ;;  %v6647_v46 = vrot.slane %v6645_v32, 2  ;;  %14495 = vst [vmem:[#allocation31_spill] sm:$0xff] %v13761_v9  ;;  %v6639_v53 = vor.u32 %v6638_v52, %v6635_v44  ;;  %v6656_v35 = vrot.slane %v6654_v36, 2  ;;  %v12008_v44 = vld [vmem:[#allocation8 + $0xa8] sm:$0xff]  }
 0x490   : > { %10787 = vmatprep.subr.bf16.mxu1 %v12005_v12  ;;  %v6662_v17 = vrot.slane %v6660_v47, 1 }
 0x491   : > { %v6630_v57 = vor.u32 %v6629_v18, %v6626_v29  ;;  %v6663_v29 = vshll.u32 %v13738_v40, 16  ;;  %v6648_v18 = vor.u32 %v6647_v46, %v6644_v58  ;;  %v6671_v58 = vrot.slane %v6669_v3, 1  ;;  %v12009_v3 = vld [vmem:[#allocation8 + $0xb0] sm:$0xff]  }
 0x492   : > { %10752 = vmatmul.mubr.bf16.gmra.mrb[4].mxu1 %v13742_v43  ;;  %v6674_v46 = vrot.slane %v6672_v49, 2 }
 0x493   : > { %10755 = vmatprep.mubr.bf16.mxu1 %v13749_v27  ;;  %10788 = vmatpush3.bf16.msra.mxu1 %v12005_v12  ;;  %v13764_v12 = vsel %vm2014_vm2, %v6621_v30, %v6630_v57  ;;  %v13771_v32 = vsel %vm2014_vm2, %v6630_v57, %v6639_v53  ;;  %v6665_v21 = vrot.slane %v6663_v29, 2  ;;  %v6678_v30 = vshrl.u32 %v13752_v8, 16 }
 0x494   : > { %10789 = vmatprep.subr.bf16.mxu1 %v12006_v16  ;;  %14496 = vst [vmem:[#allocation32_spill] sm:$0xff] %v13764_v12  ;;  %14497 = vst [vmem:[#allocation33_spill] sm:$0xff] %v13771_v32  ;;  %v13775_v52 = vsel %vm2014_vm2, %v6639_v53, %v6648_v18  ;;  %v6657_v12 = vor.u32 %v6656_v35, %v6653_v13  ;;  %v6675_v47 = vor.u32 %v6674_v46, %v6671_v58  ;;  %v6983_v35 = vld [vmem:[#allocation2 + $0x8] sm:$0xc] }
 0x495   : > { %14498 = vst [vmem:[#allocation34_spill] sm:$0xff] %v13775_v52  ;;  %v6666_v36 = vor.u32 %v6665_v21, %v6662_v17  ;;  %v6680_v24 = vrot.slane %v6678_v30, 1  ;;  %v6690_v29 = vshll.u32 %v13761_v9, 16  ;;  %v6683_v21 = vrot.slane %v6681_v28, 2 }
 0x496   : > { %v13781_v57 = vsel %vm2014_vm2, %v6648_v18, %v6657_v12  ;;  %v9470_v18 = vcombine.low %v6983_v35, %v13654_v48  ;;  %v7005_v30 = vrot.slane %v13659_v39, 2  ;;  %v7009_v28 = vrot.slane %v13664_v51, 2 }
 0x497   : > { %10790 = vmatpush3.bf16.msra.mxu1 %v12006_v16  ;;  %v6687_v16 = vshrl.u32 %v13761_v9, 16  ;;  %14499 = vst [vmem:[#allocation35_spill] sm:$0xff] %v13781_v57  ;;  %v13786_v53 = vsel %vm2014_vm2, %v6657_v12, %v6666_v36  ;;  %v13789_v49 = vsel %vm2014_vm2, %v6666_v36, %v6675_v47  ;;  %v6684_v17 = vor.u32 %v6683_v21, %v6680_v24  ;;  %v12010_v24 = vld [vmem:[#allocation8 + $0xb8] sm:$0xff]  }
 0x498   : > { %10791 = vmatprep.subr.bf16.mxu1 %v12007_v15  ;;  %14500 = vst [vmem:[#allocation36_spill] sm:$0xff] %v13786_v53  ;;  %14501 = vst [vmem:[#allocation37_spill] sm:$0xff] %v13789_v49  ;;  %v7004_v12 = vrot.slane %v9470_v18, 2  ;;  %v7011_v58 = vrot.slane %v13666_v37, 2  ;;  %v7013_v48 = vrot.slane %v13669_v61, 2  ;;  %v7015_v35 = vrot.slane %v13677_v41, 2 }
 0x499   : > { %v6689_v13 = vrot.slane %v6687_v16, 1  ;;  %v13799_v46 = vsel %vm2014_vm2, %v6675_v47, %v6684_v17  ;;  %v13818_v47 = vld [vmem:[#allocation2 + $0x98] ss:$0 sps:$4 sm:$0x33]   ;;  %v7019_v18 = vrot.slane %v13686_v20, 2  ;;  %v13914_v53 = vld [vmem:[#allocation2 + $0x48] sm:$0xff]  }
 0x49a   : > { %10756 = vmatmul.mubr.bf16.gmra.mrb[8].mxu1 %v13499_v55  ;;  %v6692_v55 = vrot.slane %v6690_v29, 2  ;;  %14503 = vst [vmem:[#allocation39_spill] sm:$0xff] %v13799_v46  ;;  %v13810_v29 = vsel %vm2485_vm3, %v7004_v12, %v7005_v30  ;;  %14509 = vst [vmem:[#allocation45_spill] sm:$0xff] %v13818_v47  ;;  %v13832_v12 = vsel %vm2485_vm3, %v7013_v48, %v7015_v35 }
 0x49b   : > { %10759 = vmatprep.mubr.bf16.mxu1 %v13514_v42  ;;  %10792 = vmatpush3.bf16.msra.mxu1 %v12007_v15  ;;  %v7007_v42 = vrot.slane %v13661_v14, 2  ;;  %14506 = vst [vmem:[#allocation42_spill] sm:$0xff] %v13810_v29  ;;  %14511 = vst [vmem:[#allocation47_spill] sm:$0xff] %v13832_v12 }
 0x49c   : > { %10793 = vmatprep.subr.bf16.mxu1 %v12008_v44  ;;  %v13794_v15 = vor.u32 %v6692_v55, %v6689_v13  ;;  %v13821_v13 = vsel %vm2485_vm3, %v7011_v58, %v7013_v48  ;;  %v7017_v55 = vrot.slane %v13682_v31, 2 }
 0x49d   : > { %v13802_v36 = vsel %vm2485_vm3, %v7005_v30, %v7007_v42  ;;  %v13813_v21 = vsel %vm2485_vm3, %v7007_v42, %v7009_v28  ;;  %14510 = vst [vmem:[#allocation46_spill] sm:$0xff] %v13821_v13  ;;  %v7023_v30 = vrot.slane %v13702_v59, 2  ;;  %v7025_v42 = vrot.slane %v13714_v0, 2  ;;  %v13839_v13 = vld [vmem:[#allocation8 + $0xc0] sm:$0xff]  }
 0x49e   : > { %14502 = vst [vmem:[#allocation38_spill] sm:$0xff] %v13794_v15  ;;  %14504 = vst [vmem:[#allocation40_spill] sm:$0xff] %v13802_v36  ;;  %v13807_v16 = vsel %vm2014_vm2, %v6684_v17, %v13794_v15  ;;  %v7021_v17 = vrot.slane %v13692_v5, 2 }
 0x49f   : > { %10794 = vmatpush3.bf16.msra.mxu1 %v12008_v44  ;;  %14505 = vst [vmem:[#allocation41_spill] sm:$0xff] %v13807_v16  ;;  %14507 = vst [vmem:[#allocation43_spill] sm:$0xff] %v13813_v21  ;;  %v13816_v44 = vsel %vm2485_vm3, %v7009_v28, %v7011_v58  ;;  %v13835_v28 = vsel %vm2485_vm3, %v7015_v35, %v7017_v55  ;;  %v7027_v58 = vrot.slane %v13719_v22, 2 }
 0x4a0   : > { %10795 = vmatprep.subr.bf16.mxu1 %v12009_v3  ;;  %14508 = vst [vmem:[#allocation44_spill] sm:$0xff] %v13816_v44  ;;  %14512 = vst [vmem:[#allocation48_spill] sm:$0xff] %v13835_v28  ;;  %v13842_v44 = vsel %vm2485_vm3, %v7017_v55, %v7019_v18  ;;  %v13845_v21 = vsel %vm2485_vm3, %v7019_v18, %v7021_v17  ;;  %v7031_v28 = vrot.slane %v13738_v40, 2  ;;  %v7033_v55 = vrot.slane %v13745_v2, 2 }
 0x4a1   : > { %14513 = vst [vmem:[#allocation49_spill] sm:$0xff] %v13842_v44  ;;  %14514 = vst [vmem:[#allocation50_spill] sm:$0xff] %v13845_v21  ;;  %v13854_v48 = vsel %vm2485_vm3, %v7025_v42, %v7027_v58  ;;  %v7035_v44 = vrot.slane %v13752_v8, 2  ;;  %v7037_v18 = vrot.slane %v13761_v9, 2 }
 0x4a2   : > { %10760 = vmatmul.mubr.bf16.gmra.mrb[12].mxu1 %v13540_v33  ;;  %v7029_v33 = vrot.slane %v13723_v11, 2  ;;  %14517 = vst [vmem:[#allocation53_spill] sm:$0xff] %v13854_v48 }
 0x4a3   : > { %10763 = vmatprep.mubr.bf16.mxu1 %v13553_v62  ;;  %10796 = vmatpush3.bf16.msra.mxu1 %v12009_v3  ;;  %v13848_v62 = vsel %vm2485_vm3, %v7021_v17, %v7023_v30  ;;  %v13851_v3 = vsel %vm2485_vm3, %v7023_v30, %v7025_v42  ;;  %v7039_v17 = vrot.slane %v13818_v47, 2  ;;  %v13868_v42 = vsel %vm2485_vm3, %v7031_v28, %v7033_v55 }
 0x4a4   : > { %10797 = vmatprep.subr.bf16.mxu1 %v12010_v24  ;;  %14515 = vst [vmem:[#allocation51_spill] sm:$0xff] %v13848_v62  ;;  %14516 = vst [vmem:[#allocation52_spill] sm:$0xff] %v13851_v3  ;;  %v13857_v35 = vsel %vm2485_vm3, %v7027_v58, %v7029_v33  ;;  %v13865_v30 = vsel %vm2485_vm3, %v7029_v33, %v7031_v28  ;;  %v13872_v58 = vsel %vm2485_vm3, %v7033_v55, %v7035_v44  ;;  %v7320_v3 = vld [vmem:[#allocation2 + $0x10] sm:$0xc]  ;;  %v13882_v33 = vld [vmem:[#allocation2 + $0x14] sm:$0xf] }
 0x4a5   : > { %14518 = vst [vmem:[#allocation54_spill] sm:$0xff] %v13857_v35  ;;  %14519 = vst [vmem:[#allocation55_spill] sm:$0xff] %v13865_v30  ;;  %v13875_v35 = vsel %vm2485_vm3, %v7035_v44, %v7037_v18  ;;  %v13878_v48 = vsel %vm2485_vm3, %v7037_v18, %v7039_v17  ;;  %v12129_v28 = vld [vmem:[#allocation2 + $0x4] sm:$0xf]  ;;  %v13885_v30 = vcombine.low %v7320_v3, %v13882_v33  ;;  %v13887_v55 = vld [vmem:[#allocation2 + $0x18] sm:$0xff]  }
 0x4a6   : > { %14520 = vst [vmem:[#allocation56_spill] sm:$0xff] %v13868_v42  ;;  %14521 = vst [vmem:[#allocation57_spill] sm:$0xff] %v13872_v58  ;;  %v13889_v44 = vld [vmem:[#allocation2 + $0x20] sm:$0xff]  }
 0x4a7   : > { %10798 = vmatpush3.bf16.msra.mxu1 %v12010_v24  ;;  %14522 = vst [vmem:[#allocation58_spill] sm:$0xff] %v13875_v35  ;;  %14523 = vst [vmem:[#allocation59_spill] sm:$0xff] %v13878_v48  ;;  %v5713_v24 = vld [vmem:[#allocation2] sm:$0xe]  ;;  %v13891_v35 = vld [vmem:[#allocation2 + $0x28] sm:$0xff]   ;;  %v7805_v17 = vshrl.u32 %v13885_v30, 16 }
 0x4a8   : > { %10835 = vmatprep.subr.bf16.mxu1 %v13839_v13  ;;  %v9425_v42 = vcombine.low %v5713_v24, %v12129_v28  ;;  %14524 = vst [vmem:[#allocation60_spill] sm:$0xff] %v13885_v30  ;;  %v7813_v48 = vshrl.u32 %v13887_v55, 16  ;;  %v13902_v24 = vld [vmem:[#allocation2 + $0x38] sm:$0xff]   ;;  %v7816_v28 = vshll.u32 %v13887_v55, 16  ;;  %v7822_v58 = vshrl.u32 %v13889_v44, 16  ;;  %v13908_v62 = vld [vmem:[#allocation2 + $0x40] sm:$0xff]  }
 0x4a9   : > { %v7807_v21 = vrot.slane %v7805_v17, 2  ;;  %v7831_v36 = vshrl.u32 %v13891_v35, 16  ;;  %v7834_v15 = vshll.u32 %v13891_v35, 16  ;;  %v7849_v57 = vshrl.u32 %v13902_v24, 16 }
 0x4aa   : > { %10764 = vmatmul.mubr.bf16.gmra.mrb[16].mxu1 %v13577_v60  ;;  %v13893_v18 = vrot.slane %v9425_v42, 1  ;;  %v13895_v60 = vld [vmem:[#allocation2 + $0x30] sm:$0xff]   ;;  %v7825_v42 = vshll.u32 %v13889_v44, 16  ;;  %v7815_v12 = vrot.slane %v7813_v48, 2  ;;  %v7824_v29 = vrot.slane %v7822_v58, 2 }
 0x4ab   : > { %10767 = vmatprep.mubr.bf16.mxu1 %v13588_v19  ;;  %v7808_v19 = vshll.u32 %v13885_v30, 16  ;;  %v7833_v46 = vrot.slane %v7831_v36, 2  ;;  %v7840_v47 = vshrl.u32 %v13895_v60, 16  ;;  %v7843_v49 = vshll.u32 %v13895_v60, 16  ;;  %v13921_v36 = vld [vmem:[#allocation2 + $0x58] sm:$0xff]  }
 0x4ac   : > { %v7827_v3 = vrot.slane %v7825_v42, 3  ;;  %v7836_v48 = vrot.slane %v7834_v15, 3  ;;  %v7852_v42 = vshll.u32 %v13902_v24, 16  ;;  %v7888_v1 = vshll.u32 %v13921_v36, 16 }
 0x4ad   : > { %v7810_v30 = vrot.slane %v7808_v19, 3  ;;  %v7845_v58 = vrot.slane %v7843_v49, 3  ;;  %v13931_v49 = vld [vmem:[#allocation2 + $0x60] sm:$0xff]  }
 0x4ae   : > { %v7828_v19 = vor.u32 %v7827_v3, %v7824_v29  ;;  %v7837_v32 = vor.u32 %v7836_v48, %v7833_v46  ;;  %v7854_v15 = vrot.slane %v7852_v42, 3 }
 0x4af   : > { %v7811_v16 = vor.u32 %v7810_v30, %v7807_v21  ;;  %v7858_v21 = vshrl.u32 %v13908_v62, 16 }
 0x4b1   : > { %v7860_v3 = vrot.slane %v7858_v21, 2  ;;  %v7885_v21 = vshrl.u32 %v13921_v36, 16 }
 0x4b2   : > { %10768 = vmatmul.mubr.bf16.gmra.mrb[20].mxu1 %v13601_v26  ;;  %v7818_v26 = vrot.slane %v7816_v28, 3  ;;  %v7842_v28 = vrot.slane %v7840_v47, 2  ;;  %v7861_v47 = vshll.u32 %v13908_v62, 16 }
 0x4b3   : > { %10771 = vmatprep.mubr.bf16.mxu1 %v13605_v38  ;;  %v13916_v38 = vld [vmem:[#allocation2 + $0x50] sm:$0xff]  }
 0x4b4   : > { %v7819_v17 = vor.u32 %v7818_v26, %v7815_v12  ;;  %v7851_v12 = vrot.slane %v7849_v57, 2  ;;  %v7846_v29 = vor.u32 %v7845_v58, %v7842_v28  ;;  %v13934_v26 = vsel %vm3286_vm4, %v7828_v19, %v7837_v32  ;;  %v13940_v57 = vld [vmem:[#allocation2 + $0x68] sm:$0xff]  }
 0x4b5   : > { %14527 = vst [vmem:[#allocation63_spill] sm:$0xff] %v13934_v26  ;;  %v7879_v28 = vshll.u32 %v13916_v38, 16  ;;  %v13947_v26 = vld [vmem:[#allocation2 + $0x70] sm:$0xff]  }
 0x4b6   : > { %v13924_v30 = vsel %vm3286_vm4, %v7811_v16, %v7819_v17  ;;  %v13927_v52 = vsel %vm3286_vm4, %v7819_v17, %v7828_v19  ;;  %v7867_v16 = vshrl.u32 %v13914_v53, 16  ;;  %v7876_v17 = vshrl.u32 %v13916_v38, 16 }
 0x4b7   : > { %14525 = vst [vmem:[#allocation61_spill] sm:$0xff] %v13924_v30  ;;  %14526 = vst [vmem:[#allocation62_spill] sm:$0xff] %v13927_v52  ;;  %v7870_v30 = vshll.u32 %v13914_v53, 16  ;;  %v13943_v46 = vsel %vm3286_vm4, %v7837_v32, %v7846_v29  ;;  %v7855_v48 = vor.u32 %v7854_v15, %v7851_v12  ;;  %v7881_v25 = vrot.slane %v7879_v28, 3  ;;  %v13953_v32 = vld [vmem:[#allocation2 + $0x78] sm:$0xff]  }
 0x4b8   : > { %14528 = vst [vmem:[#allocation64_spill] sm:$0xff] %v13943_v46  ;;  %v7869_v58 = vrot.slane %v7867_v16, 2  ;;  %v7878_v42 = vrot.slane %v7876_v17, 2  ;;  %v7887_v15 = vrot.slane %v7885_v21, 2  ;;  %v13957_v16 = vld [vmem:[#allocation2 + $0x80] sm:$0xff]  }
 0x4b9   : > { %v7872_v19 = vrot.slane %v7870_v30, 3  ;;  %v13950_v52 = vsel %vm3286_vm4, %v7846_v29, %v7855_v48  ;;  %v7897_v30 = vshll.u32 %v13931_v49, 16  ;;  %v7890_v29 = vrot.slane %v7888_v1, 3  ;;  %v13974_v1 = vld [vmem:[#allocation2 + $0x90] sm:$0xff]  }
 0x4ba   : > { %10772 = vmatmul.mubr.bf16.gmra.mrb[24].mxu1 %v13611_v50  ;;  %v7863_v50 = vrot.slane %v7861_v47, 3  ;;  %14529 = vst [vmem:[#allocation65_spill] sm:$0xff] %v13950_v52  ;;  %v7894_v47 = vshrl.u32 %v13931_v49, 16  ;;  %v7882_v46 = vor.u32 %v7881_v25, %v7878_v42  ;;  %v7948_v8 = vshrl.u32 %v13974_v1, 16 }
 0x4bb   : > { %10775 = vmatprep.mubr.bf16.mxu1 %v13613_v4  ;;  %v7873_v12 = vor.u32 %v7872_v19, %v7869_v58  ;;  %v7899_v52 = vrot.slane %v7897_v30, 3  ;;  %v7906_v58 = vshll.u32 %v13940_v57, 16  ;;  %v13967_v19 = vld [vmem:[#allocation2 + $0x88] sm:$0xff]   ;;  %v7891_v10 = vor.u32 %v7890_v29, %v7887_v15 }
 0x4bc   : > { %v7864_v4 = vor.u32 %v7863_v50, %v7860_v3  ;;  %v7903_v3 = vshrl.u32 %v13940_v57, 16  ;;  %v7896_v28 = vrot.slane %v7894_v47, 2  ;;  %v7921_v47 = vshrl.u32 %v13953_v32, 16 }
 0x4bd   : > { %v13970_v21 = vsel %vm3286_vm4, %v7873_v12, %v7882_v46  ;;  %v7908_v42 = vrot.slane %v7906_v58, 3  ;;  %v13980_v30 = vsel %vm3286_vm4, %v7882_v46, %v7891_v10  ;;  %v7924_v15 = vshll.u32 %v13953_v32, 16 }
 0x4be   : > { %v13960_v17 = vsel %vm3286_vm4, %v7855_v48, %v7864_v4  ;;  %v13964_v50 = vsel %vm3286_vm4, %v7864_v4, %v7873_v12  ;;  %14532 = vst [vmem:[#allocation68_spill] sm:$0xff] %v13970_v21  ;;  %v7905_v63 = vrot.slane %v7903_v3, 2  ;;  %v7912_v48 = vshrl.u32 %v13947_v26, 16  ;;  %14533 = vst [vmem:[#allocation69_spill] sm:$0xff] %v13980_v30  ;;  %v13984_v3 = vld [vmem:[#allocation2 + $0x98] sm:$0xff]  }
 0x4bf   : > { %14530 = vst [vmem:[#allocation66_spill] sm:$0xff] %v13960_v17  ;;  %14531 = vst [vmem:[#allocation67_spill] sm:$0xff] %v13964_v50  ;;  %v7900_v25 = vor.u32 %v7899_v52, %v7896_v28  ;;  %v7915_v4 = vshll.u32 %v13947_v26, 16  ;;  %v7930_v29 = vshrl.u32 %v13957_v16, 16  ;;  %v7923_v58 = vrot.slane %v7921_v47, 2 }
 0x4c0   : > { %v7914_v12 = vrot.slane %v7912_v48, 2  ;;  %v7909_v52 = vor.u32 %v7908_v42, %v7905_v63  ;;  %v7926_v21 = vrot.slane %v7924_v15, 3  ;;  %v7933_v17 = vshll.u32 %v13957_v16, 16 }
 0x4c1   : > { %v7917_v28 = vrot.slane %v7915_v4, 3  ;;  %v7932_v50 = vrot.slane %v7930_v29, 2  ;;  %v7939_v46 = vshrl.u32 %v13967_v19, 16  ;;  %v7942_v9 = vshll.u32 %v13967_v19, 16  ;;  %v8253_v29 = vld [vmem:[#allocation2 + $0x10] sm:$0x8] }
 0x4c2   : > { %10776 = vmatmul.mubr.bf16.gmra.mrb[28].mxu1 %v13621_v7  ;;  %v13987_v7 = vsel %vm3286_vm4, %v7891_v10, %v7900_v25  ;;  %v13992_v48 = vsel %vm3286_vm4, %v7900_v25, %v7909_v52  ;;  %v7927_v2 = vor.u32 %v7926_v21, %v7923_v58  ;;  %v7935_v10 = vrot.slane %v7933_v17, 3 }
 0x4c3   : > { %10779 = vmatprep.mubr.bf16.mxu1 %v13632_v34  ;;  %14534 = vst [vmem:[#allocation70_spill] sm:$0xff] %v13987_v7  ;;  %14535 = vst [vmem:[#allocation71_spill] sm:$0xff] %v13992_v48  ;;  %v7918_v30 = vor.u32 %v7917_v28, %v7914_v12  ;;  %v7941_v7 = vrot.slane %v7939_v46, 2  ;;  %v7951_v63 = vshll.u32 %v13974_v1, 16  ;;  %v7944_v4 = vrot.slane %v7942_v9, 3 }
 0x4c4   : > { %v7950_v47 = vrot.slane %v7948_v8, 2  ;;  %v7957_v15 = vshrl.u32 %v13984_v3, 16  ;;  %v7936_v12 = vor.u32 %v7935_v10, %v7932_v50  ;;  %v7960_v48 = vshll.u32 %v13984_v3, 16 }
 0x4c5   : > { %v13998_v42 = vsel %vm3286_vm4, %v7909_v52, %v7918_v30  ;;  %v14002_v25 = vsel %vm3286_vm4, %v7918_v30, %v7927_v2  ;;  %v7953_v28 = vrot.slane %v7951_v63, 3  ;;  %v14537_v17 = vrot.slane %v13699_v56, 1 }
 0x4c6   : > { %14536 = vst [vmem:[#allocation72_spill] sm:$0xff] %v14002_v25  ;;  %v5737_v9 = vrot.slane %v13706_v23, 1  ;;  %v7945_v8 = vor.u32 %v7944_v4, %v7941_v7  ;;  %v7959_v52 = vrot.slane %v7957_v15, 2  ;;  %v14012_v58 = vsel %vm3286_vm4, %v7927_v2, %v7936_v12 }
 0x4c7   : > { %v5736_v21 = vsel %vm1213_vm1, %v13893_v18, %v14537_v17  ;;  %v7954_v30 = vor.u32 %v7953_v28, %v7950_v47  ;;  %v7962_v50 = vrot.slane %v7960_v48, 3  ;;  %v9515_v46 = vcombine.low %v8253_v29, %v13882_v33 }
 0x4c8   : > { %v5739_v10 = vrot.slane %v13742_v43, 1  ;;  %v5741_v63 = vrot.slane %v13749_v27, 1  ;;  %v14018_v25 = vsel %vm3286_vm4, %v7936_v12, %v7945_v8  ;;  %v8275_v18 = vrot.slane %v13887_v55, 3 }
 0x4c9   : > { %v14022_v23 = vsel %vm3286_vm4, %v7945_v8, %v7954_v30  ;;  %v14024_v7 = vor.u32 %v7962_v50, %v7959_v52  ;;  %v8274_v2 = vrot.slane %v9515_v46, 3  ;;  %v8277_v4 = vrot.slane %v13889_v44, 3 }
 0x4ca   : > { %10780 = vmatmul.mubr.bf16.gmra.mrb[32].mxu1 %v13644_v45  ;;  %v14538_v48 = vmov %v14537_v17  ;;  %v8279_v43 = vrot.slane %v13891_v35, 3  ;;  %v8281_v27 = vrot.slane %v13895_v60, 3  ;;  %v8283_v47 = vrot.slane %v13902_v24, 3  ;;  %v12013_v17 = vld [vmem:[#allocation8 + $0xc8] sm:$0xff]  }
 0x4cb   : > { %10799 = vmatprep.mubr.bf16.mxu1 %v5736_v21  ;;  %v5738_v33 = vsel %vm1213_vm1, %v14538_v48, %v5737_v9  ;;  %v14035_v15 = vsel %vm3286_vm4, %v7954_v30, %v14024_v7  ;;  %v14038_v29 = vsel %vm3757_vm5, %v8274_v2, %v8275_v18  ;;  %v14041_v12 = vsel %vm3757_vm5, %v8275_v18, %v8277_v4  ;;  %v14054_v30 = vld [vmem:[#allocation2 + $0xa0] ss:$0 sps:$4 sm:$0x77]  }
 0x4cc   : > { %v8285_v56 = vrot.slane %v13908_v62, 3  ;;  %v5740_v28 = vsel %vm1213_vm1, %v5737_v9, %v5739_v10  ;;  %v14046_v21 = vsel %vm3757_vm5, %v8277_v4, %v8279_v43  ;;  %v14049_v8 = vsel %vm3757_vm5, %v8279_v43, %v8281_v27 }
 0x4cd   : > { %14539 = vst [vmem:[#allocation73_spill] sm:$0xff] %v14049_v8  ;;  %v14052_v52 = vsel %vm3757_vm5, %v8281_v27, %v8283_v47  ;;  %v8287_v46 = vrot.slane %v13914_v53, 3  ;;  %v8289_v18 = vrot.slane %v13916_v38, 3  ;;  %v8291_v9 = vrot.slane %v13921_v36, 3 }
 0x4ce   : > { %14540 = vst [vmem:[#allocation74_spill] sm:$0xff] %v14052_v52  ;;  %v14057_v50 = vsel %vm3757_vm5, %v8283_v47, %v8285_v56  ;;  %v8293_v2 = vrot.slane %v13931_v49, 3  ;;  %v8295_v4 = vrot.slane %v13940_v57, 3  ;;  %v8297_v48 = vrot.slane %v13947_v26, 3  ;;  %v12014_v52 = vld [vmem:[#allocation8 + $0xd0] sm:$0xff]  }
 0x4cf   : > { %14541 = vst [vmem:[#allocation75_spill] sm:$0xff] %v14057_v50  ;;  %v8299_v43 = vrot.slane %v13953_v32, 3  ;;  %v14068_v27 = vsel %vm3757_vm5, %v8285_v56, %v8287_v46  ;;  %v14071_v47 = vsel %vm3757_vm5, %v8287_v46, %v8289_v18  ;;  %v14074_v50 = vsel %vm3757_vm5, %v8289_v18, %v8291_v9 }
 0x4d0   : > { %14542 = vst [vmem:[#allocation76_spill] sm:$0xff] %v14071_v47  ;;  %14543 = vst [vmem:[#allocation77_spill] sm:$0xff] %v14074_v50  ;;  %v14078_v8 = vsel %vm3757_vm5, %v8291_v9, %v8293_v2  ;;  %v8303_v18 = vrot.slane %v13967_v19, 3  ;;  %v8305_v50 = vrot.slane %v13974_v1, 3  ;;  %v8307_v47 = vrot.slane %v13984_v3, 3  ;;  %v12130_v9 = vld [vmem:[#allocation2 + $0x28] sm:$0xff]  }
 0x4d1   : > { %14544 = vst [vmem:[#allocation78_spill] sm:$0xff] %v14078_v8  ;;  %v14087_v56 = vsel %vm3757_vm5, %v8297_v48, %v8299_v43  ;;  %v5743_v8 = vrot.slane %v12130_v9, 1 }
 0x4d2   : > { %10800 = vmatmul.mubr.bf16.vlgmr.msra.gmra.mrb[0].mxu1 %v5738_v33  ;;  %v8301_v33 = vrot.slane %v13957_v16, 3  ;;  %14546 = vst [vmem:[#allocation80_spill] sm:$0xff] %v14087_v56 }
 0x4d3   : > { %10803 = vmatprep.mubr.bf16.mxu1 %v5740_v28  ;;  %10836 = vmatpush3.bf16.msra.mxu1 %v13839_v13  ;;  %v14081_v28 = vsel %vm3757_vm5, %v8293_v2, %v8295_v4  ;;  %v14084_v13 = vsel %vm3757_vm5, %v8295_v4, %v8297_v48  ;;  %v8309_v2 = vrot.slane %v14054_v30, 3  ;;  %v14100_v48 = vsel %vm3757_vm5, %v8303_v18, %v8305_v50 }
 0x4d4   : > { %10837 = vmatprep.subr.bf16.mxu1 %v12013_v17  ;;  %14545 = vst [vmem:[#allocation79_spill] sm:$0xff] %v14084_v13  ;;  %v14090_v46 = vsel %vm3757_vm5, %v8299_v43, %v8301_v33  ;;  %v14097_v4 = vsel %vm3757_vm5, %v8301_v33, %v8303_v18  ;;  %14549 = vst [vmem:[#allocation83_spill] sm:$0xff] %v14100_v48  ;;  %v14103_v43 = vsel %vm3757_vm5, %v8305_v50, %v8307_v47  ;;  %v12131_v33 = vld [vmem:[#allocation2 + $0x30] sm:$0xff]   ;;  %v12132_v48 = vld [vmem:[#allocation2 + $0x38] sm:$0xff]  }
 0x4d5   : > { %14547 = vst [vmem:[#allocation81_spill] sm:$0xff] %v14090_v46  ;;  %14548 = vst [vmem:[#allocation82_spill] sm:$0xff] %v14097_v4  ;;  %v12015_v46 = vld [vmem:[#allocation8 + $0xd8] sm:$0xff]   ;;  %v14106_v56 = vsel %vm3757_vm5, %v8307_v47, %v8309_v2  ;;  %v5742_v13 = vsel %vm1213_vm1, %v5739_v10, %v5741_v63  ;;  %v5744_v9 = vsel %vm1213_vm1, %v5741_v63, %v5743_v8  ;;  %v5745_v18 = vrot.slane %v12131_v33, 1  ;;  %v12017_v50 = vld [vmem:[#allocation8 + $0xe8] sm:$0xff]  }
 0x4d6   : > { %14550 = vst [vmem:[#allocation84_spill] sm:$0xff] %v14103_v43  ;;  %v5747_v4 = vrot.slane %v12132_v48, 1  ;;  %v12018_v10 = vld [vmem:[#allocation8 + $0xf0] sm:$0xff]   ;;  %v12133_v63 = vld [vmem:[#allocation2 + $0x40] sm:$0xff]  }
 0x4d7   : > { %10838 = vmatpush3.bf16.msra.mxu1 %v12013_v17  ;;  %v12016_v17 = vld [vmem:[#allocation8 + $0xe0] sm:$0xff]   ;;  %v5746_v43 = vsel %vm1213_vm1, %v5743_v8, %v5745_v18  ;;  %v12136_v33 = vld [vmem:[#allocation2 + $0x58] sm:$0xff]  }
 0x4d8   : > { %10839 = vmatprep.subr.bf16.mxu1 %v12014_v52  ;;  %v5748_v47 = vsel %vm1213_vm1, %v5745_v18, %v5747_v4  ;;  %v12023_v8 = vld [vmem:[#allocation8 + $0x100] sm:$0xff]   ;;  %v5755_v18 = vrot.slane %v12136_v33, 1 }
 0x4da   : > { %10804 = vmatmul.mubr.bf16.gmra.mrb[4].mxu1 %v5742_v13  ;;  %v12134_v13 = vld [vmem:[#allocation2 + $0x48] sm:$0xff]  }
 0x4db   : > { %10807 = vmatprep.mubr.bf16.mxu1 %v5744_v9  ;;  %10840 = vmatpush3.bf16.msra.mxu1 %v12014_v52  ;;  %v5749_v52 = vrot.slane %v12133_v63, 1  ;;  %v5751_v2 = vrot.slane %v12134_v13, 1  ;;  %v12019_v9 = vld [vmem:[#allocation8 + $0xf8] sm:$0xff]   ;;  %v12138_v13 = vld [vmem:[#allocation2 + $0x68] sm:$0xff]  }
 0x4dc   : > { %10841 = vmatprep.subr.bf16.mxu1 %v12015_v46 }
 0x4dd   : > { %v5752_v48 = vsel %vm1213_vm1, %v5749_v52, %v5751_v2 }
 0x4df   : > { %10842 = vmatpush3.bf16.msra.mxu1 %v12015_v46  ;;  %v5750_v46 = vsel %vm1213_vm1, %v5747_v4, %v5749_v52  ;;  %v12137_v4 = vld [vmem:[#allocation2 + $0x60] sm:$0xff]   ;;  %v5759_v52 = vrot.slane %v12138_v13, 1  ;;  %v6197_v13 = vrot.slane %v13657_v54, 1  ;;  %v12030_v54 = vld [vmem:[#allocation8 + $0x110] sm:$0xff]  }
 0x4e0   : > { %10843 = vmatprep.subr.bf16.mxu1 %v12016_v17  ;;  %v5757_v63 = vrot.slane %v12137_v4, 1 }
 0x4e2   : > { %10808 = vmatmul.mubr.bf16.gmra.mrb[8].mxu1 %v5746_v43  ;;  %v12135_v43 = vld [vmem:[#allocation2 + $0x50] sm:$0xff]  }
 0x4e3   : > { %10811 = vmatprep.mubr.bf16.mxu1 %v5748_v47  ;;  %10844 = vmatpush3.bf16.msra.mxu1 %v12016_v17  ;;  %v5753_v17 = vrot.slane %v12135_v43, 1 }
 0x4e4   : > { %10845 = vmatprep.subr.bf16.mxu1 %v12017_v50 }
 0x4e5   : > { %v5754_v47 = vsel %vm1213_vm1, %v5751_v2, %v5753_v17 }
 0x4e7   : > { %10846 = vmatpush3.bf16.msra.mxu1 %v12017_v50  ;;  %v5756_v50 = vsel %vm1213_vm1, %v5753_v17, %v5755_v18 }
 0x4e8   : > { %10847 = vmatprep.subr.bf16.mxu1 %v12018_v10 }
 0x4ea   : > { %10812 = vmatmul.mubr.bf16.gmra.mrb[12].mxu1 %v5750_v46  ;;  %v5760_v46 = vsel %vm1213_vm1, %v5757_v63, %v5759_v52 }
 0x4eb   : > { %10815 = vmatprep.mubr.bf16.mxu1 %v5752_v48  ;;  %10848 = vmatpush3.bf16.msra.mxu1 %v12018_v10  ;;  %v5758_v10 = vsel %vm1213_vm1, %v5755_v18, %v5757_v63  ;;  %v12139_v48 = vld [vmem:[#allocation2 + $0x70] sm:$0xff]   ;;  %v5769_v63 = vrot.slane %v13647_v6, 1 }
 0x4ec   : > { %10849 = vmatprep.subr.bf16.mxu1 %v12019_v9  ;;  %v5761_v43 = vrot.slane %v12139_v48, 1  ;;  %v12027_v48 = vld [vmem:[#allocation8 + $0x108] sm:$0xff]  }
 0x4ee   : > { %v5762_v2 = vsel %vm1213_vm1, %v5759_v52, %v5761_v43  ;;  %v6198_v52 = vrot.slane %v13659_v39, 1  ;;  %v6204_v39 = vrot.slane %v13666_v37, 1  ;;  %v12039_v37 = vld [vmem:[#allocation8 + $0x128] sm:$0xff]  }
 0x4ef   : > { %10850 = vmatpush3.bf16.msra.mxu1 %v12019_v9  ;;  %v12140_v9 = vld [vmem:[#allocation2 + $0x78] sm:$0xff]  }
 0x4f0   : > { %10887 = vmatprep.subr.bf16.mxu1 %v12023_v8  ;;  %v5763_v33 = vrot.slane %v12140_v9, 1  ;;  %v6206_v9 = vrot.slane %v13669_v61, 1 }
 0x4f2   : > { %10816 = vmatmul.mubr.bf16.gmra.mrb[16].mxu1 %v5754_v47  ;;  %v5764_v17 = vsel %vm1213_vm1, %v5761_v43, %v5763_v33  ;;  %v5765_v47 = vrot.slane %v13632_v34, 1  ;;  %v6200_v34 = vrot.slane %v13661_v14, 1 }
 0x4f3   : > { %10819 = vmatprep.mubr.bf16.mxu1 %v5756_v50  ;;  %v5767_v50 = vrot.slane %v13644_v45, 1  ;;  %v6202_v45 = vrot.slane %v13664_v51, 1  ;;  %v6207_v51 = vsel %vm1213_vm1, %v6204_v39, %v6206_v9 }
 0x4f4   : > { %v5766_v18 = vsel %vm1213_vm1, %v5763_v33, %v5765_v47  ;;  %v6201_v43 = vsel %vm1213_vm1, %v6198_v52, %v6200_v34  ;;  %v12033_v33 = vld [vmem:[#allocation8 + $0x118] sm:$0xff]  }
 0x4f5   : > { %v5768_v4 = vsel %vm1213_vm1, %v5765_v47, %v5767_v50  ;;  %v6203_v6 = vsel %vm1213_vm1, %v6200_v34, %v6202_v45  ;;  %v6205_v14 = vsel %vm1213_vm1, %v6202_v45, %v6204_v39  ;;  %v6222_v34 = vrot.slane %v13723_v11, 1  ;;  %v14552_v39 = vld [vmem:[#allocation28_spill] sm:$0xff] }
 0x4fa   : > { %10820 = vmatmul.mubr.bf16.gmra.mrb[20].mxu1 %v5758_v10  ;;  %v5770_v10 = vsel %vm1213_vm1, %v5767_v50, %v5769_v63  ;;  %v12042_v50 = vld [vmem:[#allocation8 + $0x130] sm:$0xff]  }
 0x4fb   : > { %10823 = vmatprep.mubr.bf16.mxu1 %v5760_v46  ;;  %v6199_v46 = vsel %vm1213_vm1, %v6197_v13, %v6198_v52  ;;  %v12047_v13 = vld [vmem:[#allocation8 + $0x140] sm:$0xff]   ;;  %v6216_v52 = vrot.slane %v13702_v59, 1  ;;  %v6224_v59 = vrot.slane %v13738_v40, 1 }
 0x502   : > { %10824 = vmatmul.mubr.bf16.gmra.mrb[24].mxu1 %v5762_v2  ;;  %v12036_v2 = vld [vmem:[#allocation8 + $0x120] sm:$0xff]  }
 0x503   : > { %10827 = vmatprep.mubr.bf16.mxu1 %v5764_v17  ;;  %v6210_v17 = vrot.slane %v13682_v31, 1 }
 0x50a   : > { %10828 = vmatmul.mubr.bf16.gmra.mrb[28].mxu1 %v5766_v18  ;;  %v6212_v18 = vrot.slane %v13686_v20, 1 }
 0x50b   : > { %10831 = vmatprep.mubr.bf16.mxu1 %v5768_v4  ;;  %v6214_v4 = vrot.slane %v13692_v5, 1 }
 0x50c   : > { %v6213_v31 = vsel %vm1213_vm1, %v6210_v17, %v6212_v18 }
 0x50d   : > { %v6215_v63 = vsel %vm1213_vm1, %v6212_v18, %v6214_v4  ;;  %v6217_v20 = vsel %vm1213_vm1, %v6214_v4, %v6216_v52  ;;  %v14557_v18 = vld [vmem:[#allocation23_spill] sm:$0xff]  ;;  %v14558_v4 = vld [vmem:[#allocation24_spill] sm:$0xff] }
 0x512   : > { %10832 = vmatmul.mubr.bf16.gmra.mrb[32].mxu1 %v5770_v10  ;;  %v6218_v10 = vrot.slane %v13714_v0, 1  ;;  %v14551_v0 = vld [vmem:[#allocation27_spill] sm:$0xff] }
 0x513   : > { %10851 = vmatprep.mubr.bf16.mxu1 %v6199_v46  ;;  %v6220_v46 = vrot.slane %v13719_v22, 1  ;;  %v6228_v22 = vrot.slane %v14552_v39, 1 }
 0x514   : > { %v6219_v5 = vsel %vm1213_vm1, %v6216_v52, %v6218_v10  ;;  %v14560_v52 = vld [vmem:[#allocation26_spill] sm:$0xff] }
 0x515   : > { %v6221_v45 = vsel %vm1213_vm1, %v6218_v10, %v6220_v46  ;;  %v12054_v10 = vld [vmem:[#allocation8 + $0x178] sm:$0xff]  }
 0x51a   : > { %10852 = vmatmul.mubr.bf16.vlgmr.msra.gmra.mrb[0].mxu1 %v6201_v43  ;;  %v6226_v43 = vrot.slane %v14551_v0, 1  ;;  %v14567_v0 = vld [vmem:[#allocation36_spill] sm:$0xff] }
 0x51b   : > { %10855 = vmatprep.mubr.bf16.mxu1 %v6203_v6  ;;  %10888 = vmatpush3.bf16.msra.mxu1 %v12023_v8  ;;  %v6208_v8 = vrot.slane %v13677_v41, 1  ;;  %v12045_v41 = vld [vmem:[#allocation8 + $0x138] sm:$0xff]   ;;  %v6225_v6 = vsel %vm1213_vm1, %v6222_v34, %v6224_v59 }
 0x51c   : > { %10889 = vmatprep.subr.bf16.mxu1 %v12027_v48 }
 0x51d   : > { %v6209_v61 = vsel %vm1213_vm1, %v6206_v9, %v6208_v8  ;;  %v6211_v47 = vsel %vm1213_vm1, %v6208_v8, %v6210_v17  ;;  %v14553_v9 = vld [vmem:[#allocation31_spill] sm:$0xff]  ;;  %v14554_v8 = vld [vmem:[#allocation20_spill] sm:$0xff] }
 0x51e   : > { %v6230_v11 = vrot.slane %v14553_v9, 1  ;;  %v12048_v17 = vld [vmem:[#allocation8 + $0x148] sm:$0xff]  }
 0x51f   : > { %10890 = vmatpush3.bf16.msra.mxu1 %v12027_v48  ;;  %v6223_v48 = vsel %vm1213_vm1, %v6220_v46, %v6222_v34  ;;  %v12057_v46 = vld [vmem:[#allocation8 + $0x180] sm:$0xff]  }
 0x520   : > { %10891 = vmatprep.subr.bf16.mxu1 %v12030_v54  ;;  %v14563_v34 = vld [vmem:[#allocation32_spill] sm:$0xff] }
 0x522   : > { %10856 = vmatmul.mubr.bf16.gmra.mrb[4].mxu1 %v6205_v14  ;;  %v12046_v14 = vld [vmem:[#allocation2 + $0x98] ss:$0 sps:$4 sm:$0x11]  }
 0x523   : > { %10859 = vmatprep.mubr.bf16.mxu1 %v6207_v51  ;;  %10892 = vmatpush3.bf16.msra.mxu1 %v12030_v54  ;;  %v6227_v54 = vsel %vm1213_vm1, %v6224_v59, %v6226_v43  ;;  %v6231_v51 = vsel %vm1213_vm1, %v6228_v22, %v6230_v11  ;;  %v6232_v40 = vrot.slane %v12046_v14, 1  ;;  %v14566_v59 = vld [vmem:[#allocation35_spill] sm:$0xff] }
 0x524   : > { %10893 = vmatprep.subr.bf16.mxu1 %v12033_v33 }
 0x527   : > { %10894 = vmatpush3.bf16.msra.mxu1 %v12033_v33  ;;  %v6229_v33 = vsel %vm1213_vm1, %v6226_v43, %v6228_v22  ;;  %v14568_v43 = vld [vmem:[#allocation37_spill] sm:$0xff] }
 0x528   : > { %10895 = vmatprep.subr.bf16.mxu1 %v12036_v2 }
 0x52a   : > { %10860 = vmatmul.mubr.bf16.gmra.mrb[8].mxu1 %v6209_v61  ;;  %v14556_v61 = vld [vmem:[#allocation22_spill] sm:$0xff] }
 0x52b   : > { %10863 = vmatprep.mubr.bf16.mxu1 %v6211_v47  ;;  %10896 = vmatpush3.bf16.msra.mxu1 %v12036_v2  ;;  %v6233_v2 = vsel %vm1213_vm1, %v6230_v11, %v6232_v40  ;;  %v12049_v47 = vld [vmem:[#allocation8 + $0x150] sm:$0xff]   ;;  %v14570_v11 = vld [vmem:[#allocation39_spill] sm:$0xff] }
 0x52c   : > { %10897 = vmatprep.subr.bf16.mxu1 %v12039_v37 }
 0x52f   : > { %10898 = vmatpush3.bf16.msra.mxu1 %v12039_v37  ;;  %v14555_v37 = vld [vmem:[#allocation21_spill] sm:$0xff] }
 0x530   : > { %10899 = vmatprep.subr.bf16.mxu1 %v12042_v50 }
 0x532   : > { %10864 = vmatmul.mubr.bf16.gmra.mrb[12].mxu1 %v6213_v31  ;;  %v12052_v31 = vld [vmem:[#allocation8 + $0x168] sm:$0xff]  }
 0x533   : > { %10867 = vmatprep.mubr.bf16.mxu1 %v6215_v63  ;;  %10900 = vmatpush3.bf16.msra.mxu1 %v12042_v50  ;;  %v12050_v50 = vld [vmem:[#allocation8 + $0x158] sm:$0xff]   ;;  %v14559_v63 = vld [vmem:[#allocation25_spill] sm:$0xff] }
 0x534   : > { %10901 = vmatprep.subr.bf16.mxu1 %v12045_v41 }
 0x537   : > { %10902 = vmatpush3.bf16.msra.mxu1 %v12045_v41  ;;  %v12051_v41 = vld [vmem:[#allocation8 + $0x160] sm:$0xff]  }
 0x538   : > { %10939 = vmatprep.subr.bf16.mxu1 %v12047_v13 }
 0x53a   : > { %10868 = vmatmul.mubr.bf16.gmra.mrb[16].mxu1 %v6217_v20  ;;  %v14561_v20 = vld [vmem:[#allocation29_spill] sm:$0xff] }
 0x53b   : > { %10871 = vmatprep.mubr.bf16.mxu1 %v6219_v5  ;;  %v14562_v5 = vld [vmem:[#allocation30_spill] sm:$0xff] }
 0x542   : > { %10872 = vmatmul.mubr.bf16.gmra.mrb[20].mxu1 %v6221_v45  ;;  %v14564_v45 = vld [vmem:[#allocation33_spill] sm:$0xff] }
 0x543   : > { %10875 = vmatprep.mubr.bf16.mxu1 %v6223_v48  ;;  %v14565_v48 = vld [vmem:[#allocation34_spill] sm:$0xff] }
 0x54a   : > { %10876 = vmatmul.mubr.bf16.gmra.mrb[24].mxu1 %v6225_v6  ;;  %v14569_v6 = vld [vmem:[#allocation45_spill] sm:$0xff] }
 0x54b   : > { %10879 = vmatprep.mubr.bf16.mxu1 %v6227_v54  ;;  %v6696_v54 = vshrl.u32 %v14569_v6, 16  ;;  %v6699_v39 = vshll.u32 %v14569_v6, 16  ;;  %v14589_v6 = vld [vmem:[#allocation58_spill] sm:$0xff] }
 0x54d   : > { %v6698_v22 = vrot.slane %v6696_v54, 1  ;;  %v6701_v9 = vrot.slane %v6699_v39, 2  ;;  %v7468_v54 = vrot.slane %v13887_v55, 2  ;;  %v14590_v39 = vld [vmem:[#allocation60_spill] sm:$0xff]  ;;  %v12075_v55 = vld [vmem:[#allocation8 + $0x1d0] sm:$0xff]  }
 0x54f   : > { %v6702_v14 = vor.u32 %v6701_v9, %v6698_v22  ;;  %v7467_v22 = vrot.slane %v14590_v39, 2  ;;  %v14591_v9 = vld [vmem:[#allocation59_spill] sm:$0xff]  ;;  %v14593_v39 = vld [vmem:[#allocation62_spill] sm:$0xff] }
 0x552   : > { %10880 = vmatmul.mubr.bf16.gmra.mrb[28].mxu1 %v6229_v33  ;;  %v14571_v33 = vld [vmem:[#allocation41_spill] sm:$0xff] }
 0x553   : > { %10883 = vmatprep.mubr.bf16.mxu1 %v6231_v51  ;;  %v14572_v51 = vld [vmem:[#allocation38_spill] sm:$0xff] }
 0x554   : > { %v6703_v40 = vsel %vm2014_vm2, %v14572_v51, %v6702_v14  ;;  %v7472_v14 = vrot.slane %v13891_v35, 2  ;;  %v12072_v51 = vld [vmem:[#allocation8 + $0x1c8] sm:$0xff]  }
 0x55a   : > { %10884 = vmatmul.mubr.bf16.gmra.mrb[32].mxu1 %v6233_v2  ;;  %v14573_v2 = vld [vmem:[#allocation42_spill] sm:$0xff] }
 0x55b   : > { %10903 = vmatprep.mubr.bf16.mxu1 %v14554_v8  ;;  %v12058_v8 = vld [vmem:[#allocation8 + $0x188] sm:$0xff]  }
 0x562   : > { %10904 = vmatmul.mubr.bf16.vlgmr.msra.gmra.mrb[0].mxu1 %v14555_v37  ;;  %v14575_v37 = vld [vmem:[#allocation43_spill] sm:$0xff] }
 0x563   : > { %10907 = vmatprep.mubr.bf16.mxu1 %v14556_v61  ;;  %10940 = vmatpush3.bf16.msra.mxu1 %v12047_v13  ;;  %v12053_v13 = vld [vmem:[#allocation8 + $0x170] sm:$0xff]  }
 0x564   : > { %10941 = vmatprep.subr.bf16.mxu1 %v12048_v17  ;;  %v12059_v61 = vld [vmem:[#allocation8 + $0x190] sm:$0xff]  }
 0x567   : > { %10942 = vmatpush3.bf16.msra.mxu1 %v12048_v17  ;;  %v14574_v17 = vld [vmem:[#allocation40_spill] sm:$0xff] }
 0x568   : > { %10943 = vmatprep.subr.bf16.mxu1 %v12049_v47 }
 0x56a   : > { %10908 = vmatmul.mubr.bf16.gmra.mrb[4].mxu1 %v14557_v18  ;;  %v14577_v18 = vld [vmem:[#allocation46_spill] sm:$0xff] }
 0x56b   : > { %10911 = vmatprep.mubr.bf16.mxu1 %v14558_v4  ;;  %10944 = vmatpush3.bf16.msra.mxu1 %v12049_v47  ;;  %v12060_v47 = vld [vmem:[#allocation8 + $0x198] sm:$0xff]   ;;  %v12061_v4 = vld [vmem:[#allocation8 + $0x1a0] sm:$0xff]  }
 0x56c   : > { %10945 = vmatprep.subr.bf16.mxu1 %v12050_v50 }
 0x56f   : > { %10946 = vmatpush3.bf16.msra.mxu1 %v12050_v50  ;;  %v14576_v50 = vld [vmem:[#allocation44_spill] sm:$0xff] }
 0x570   : > { %10947 = vmatprep.subr.bf16.mxu1 %v12051_v41 }
 0x572   : > { %10912 = vmatmul.mubr.bf16.gmra.mrb[8].mxu1 %v14559_v63  ;;  %v14579_v63 = vld [vmem:[#allocation48_spill] sm:$0xff] }
 0x573   : > { %10915 = vmatprep.mubr.bf16.mxu1 %v14560_v52  ;;  %10948 = vmatpush3.bf16.msra.mxu1 %v12051_v41  ;;  %v12062_v41 = vld [vmem:[#allocation8 + $0x1a8] sm:$0xff]   ;;  %v12063_v52 = vld [vmem:[#allocation8 + $0x1b0] sm:$0xff]  }
 0x574   : > { %10949 = vmatprep.subr.bf16.mxu1 %v12052_v31 }
 0x577   : > { %10950 = vmatpush3.bf16.msra.mxu1 %v12052_v31  ;;  %v14578_v31 = vld [vmem:[#allocation47_spill] sm:$0xff] }
 0x578   : > { %10951 = vmatprep.subr.bf16.mxu1 %v12053_v13 }
 0x57a   : > { %10916 = vmatmul.mubr.bf16.gmra.mrb[12].mxu1 %v14561_v20  ;;  %v14581_v20 = vld [vmem:[#allocation50_spill] sm:$0xff] }
 0x57b   : > { %10919 = vmatprep.mubr.bf16.mxu1 %v14562_v5  ;;  %10952 = vmatpush3.bf16.msra.mxu1 %v12053_v13  ;;  %v12064_v13 = vld [vmem:[#allocation8 + $0x1b8] sm:$0xff]   ;;  %v12068_v5 = vld [vmem:[#allocation8 + $0x1c0] sm:$0xff]  }
 0x57c   : > { %10953 = vmatprep.subr.bf16.mxu1 %v12054_v10 }
 0x57f   : > { %10954 = vmatpush3.bf16.msra.mxu1 %v12054_v10  ;;  %v14580_v10 = vld [vmem:[#allocation49_spill] sm:$0xff] }
 0x580   : > { %10991 = vmatprep.subr.bf16.mxu1 %v12057_v46 }
 0x582   : > { %10920 = vmatmul.mubr.bf16.gmra.mrb[16].mxu1 %v14563_v34  ;;  %v14583_v34 = vld [vmem:[#allocation52_spill] sm:$0xff] }
 0x583   : > { %10923 = vmatprep.mubr.bf16.mxu1 %v14564_v45  ;;  %v14584_v45 = vld [vmem:[#allocation53_spill] sm:$0xff] }
 0x58a   : > { %10924 = vmatmul.mubr.bf16.gmra.mrb[20].mxu1 %v14565_v48  ;;  %v14585_v48 = vld [vmem:[#allocation54_spill] sm:$0xff] }
 0x58b   : > { %10927 = vmatprep.mubr.bf16.mxu1 %v14566_v59  ;;  %v14586_v59 = vld [vmem:[#allocation55_spill] sm:$0xff] }
 0x592   : > { %10928 = vmatmul.mubr.bf16.gmra.mrb[24].mxu1 %v14567_v0  ;;  %v14587_v0 = vld [vmem:[#allocation56_spill] sm:$0xff] }
 0x593   : > { %10931 = vmatprep.mubr.bf16.mxu1 %v14568_v43  ;;  %v14588_v43 = vld [vmem:[#allocation57_spill] sm:$0xff] }
 0x59a   : > { %10932 = vmatmul.mubr.bf16.gmra.mrb[28].mxu1 %v14570_v11  ;;  %v7469_v11 = vsel %vm2485_vm3, %v7467_v22, %v7468_v54  ;;  %v14594_v22 = vld [vmem:[#allocation63_spill] sm:$0xff] }
 0x59b   : > { %10935 = vmatprep.mubr.bf16.mxu1 %v14571_v33  ;;  %v7470_v33 = vrot.slane %v13889_v44, 2 }
 0x5a2   : > { %10936 = vmatmul.mubr.bf16.gmra.mrb[32].mxu1 %v6703_v40  ;;  %v7471_v40 = vsel %vm2485_vm3, %v7468_v54, %v7470_v33  ;;  %v12093_v54 = vld [vmem:[#allocation8 + $0x208] sm:$0xff]  }
 0x5a3   : > { %10955 = vmatprep.mubr.bf16.mxu1 %v14573_v2  ;;  %v7473_v2 = vsel %vm2485_vm3, %v7470_v33, %v7472_v14  ;;  %v12096_v33 = vld [vmem:[#allocation8 + $0x220] sm:$0xff]  }
 0x5aa   : > { %10956 = vmatmul.mubr.bf16.vlgmr.msra.gmra.mrb[0].mxu1 %v14574_v17  ;;  %v7476_v17 = vrot.slane %v13902_v24, 2 }
 0x5ab   : > { %10959 = vmatprep.mubr.bf16.mxu1 %v14575_v37  ;;  %10992 = vmatpush3.bf16.msra.mxu1 %v12057_v46  ;;  %v14582_v46 = vld [vmem:[#allocation51_spill] sm:$0xff] }
 0x5ac   : > { %10993 = vmatprep.subr.bf16.mxu1 %v12058_v8  ;;  %v12078_v37 = vld [vmem:[#allocation8 + $0x1d8] sm:$0xff]  }
 0x5af   : > { %10994 = vmatpush3.bf16.msra.mxu1 %v12058_v8  ;;  %v7474_v8 = vrot.slane %v13895_v60, 2  ;;  %v12084_v60 = vld [vmem:[#allocation8 + $0x1e8] sm:$0xff]  }
 0x5b0   : > { %10995 = vmatprep.subr.bf16.mxu1 %v12059_v61 }
 0x5b1   : > { %v7475_v44 = vsel %vm2485_vm3, %v7472_v14, %v7474_v8  ;;  %v7477_v35 = vsel %vm2485_vm3, %v7474_v8, %v7476_v17  ;;  %v12097_v14 = vld [vmem:[#allocation8 + $0x228] sm:$0xff]  }
 0x5b2   : > { %10960 = vmatmul.mubr.bf16.gmra.mrb[4].mxu1 %v14576_v50  ;;  %v7480_v50 = vrot.slane %v13914_v53, 2  ;;  %v14599_v8 = vld [vmem:[#allocation68_spill] sm:$0xff] }
 0x5b3   : > { %10963 = vmatprep.mubr.bf16.mxu1 %v14577_v18  ;;  %10996 = vmatpush3.bf16.msra.mxu1 %v12059_v61  ;;  %v12081_v61 = vld [vmem:[#allocation8 + $0x1e0] sm:$0xff]  }
 0x5b4   : > { %10997 = vmatprep.subr.bf16.mxu1 %v12060_v47 }
 0x5b7   : > { %10998 = vmatpush3.bf16.msra.mxu1 %v12060_v47  ;;  %v7478_v47 = vrot.slane %v13908_v62, 2  ;;  %v12090_v62 = vld [vmem:[#allocation8 + $0x1f8] sm:$0xff]  }
 0x5b8   : > { %10999 = vmatprep.subr.bf16.mxu1 %v12061_v4 }
 0x5b9   : > { %v7479_v24 = vsel %vm2485_vm3, %v7476_v17, %v7478_v47  ;;  %v7481_v18 = vsel %vm2485_vm3, %v7478_v47, %v7480_v50  ;;  %v14600_v17 = vld [vmem:[#allocation69_spill] sm:$0xff]  ;;  %v7969_v47 = vshll.u32 %v14054_v30, 16 }
 0x5ba   : > { %10964 = vmatmul.mubr.bf16.gmra.mrb[8].mxu1 %v14578_v31  ;;  %v7484_v31 = vrot.slane %v13921_v36, 2 }
 0x5bb   : > { %10967 = vmatprep.mubr.bf16.mxu1 %v14579_v63  ;;  %11000 = vmatpush3.bf16.msra.mxu1 %v12061_v4  ;;  %v12087_v4 = vld [vmem:[#allocation8 + $0x1f0] sm:$0xff]  }
 0x5bc   : > { %11001 = vmatprep.subr.bf16.mxu1 %v12062_v41 }
 0x5bf   : > { %11002 = vmatpush3.bf16.msra.mxu1 %v12062_v41  ;;  %v7482_v41 = vrot.slane %v13916_v38, 2 }
 0x5c0   : > { %11003 = vmatprep.subr.bf16.mxu1 %v12063_v52 }
 0x5c1   : > { %v7483_v53 = vsel %vm2485_vm3, %v7480_v50, %v7482_v41  ;;  %v7485_v63 = vsel %vm2485_vm3, %v7482_v41, %v7484_v31  ;;  %v12141_v41 = vld [vmem:[%s12705_s11 + $0x10] sm:$0xff]  }
 0x5c2   : > { %10968 = vmatmul.mubr.bf16.gmra.mrb[12].mxu1 %v14580_v10  ;;  %v7488_v10 = vrot.slane %v13940_v57, 2  ;;  %v7496_v57 = vrot.slane %v13967_v19, 2 }
 0x5c3   : > { %10971 = vmatprep.mubr.bf16.mxu1 %v14581_v20  ;;  %11004 = vmatpush3.bf16.msra.mxu1 %v12063_v52  ;;  %v12092_v52 = vld [vmem:[#allocation8 + $0x200] sm:$0xff]   ;;  %v7490_v20 = vrot.slane %v13947_v26, 2  ;;  %v7498_v26 = vrot.slane %v13974_v1, 2  ;;  %v12094_v1 = vld [vmem:[#allocation8 + $0x210] sm:$0xff]  }
 0x5c4   : > { %11005 = vmatprep.subr.bf16.mxu1 %v12064_v13 }
 0x5c7   : > { %11006 = vmatpush3.bf16.msra.mxu1 %v12064_v13  ;;  %v7486_v13 = vrot.slane %v13931_v49, 2  ;;  %v7494_v49 = vrot.slane %v13957_v16, 2 }
 0x5c8   : > { %11043 = vmatprep.subr.bf16.mxu1 %v12068_v5 }
 0x5c9   : > { %v7487_v38 = vsel %vm2485_vm3, %v7484_v31, %v7486_v13  ;;  %v7489_v36 = vsel %vm2485_vm3, %v7486_v13, %v7488_v10  ;;  %v8592_v31 = vunpack.c.l.bf16 %v12141_v41  ;;  %v12144_v13 = vld [vmem:[%s12705_s11 + $0x18] sm:$0xff]  }
 0x5ca   : > { %10972 = vmatmul.mubr.bf16.gmra.mrb[16].mxu1 %v14582_v46  ;;  %v7491_v46 = vsel %vm2485_vm3, %v7488_v10, %v7490_v20  ;;  %v8594_v10 = vunpack.c.l.bf16 %v12144_v13 }
 0x5cb   : > { %10975 = vmatprep.mubr.bf16.mxu1 %v14583_v34 }
 0x5d2   : > { %10976 = vmatmul.mubr.bf16.gmra.mrb[20].mxu1 %v14584_v45 }
 0x5d3   : > { %10979 = vmatprep.mubr.bf16.mxu1 %v14585_v48  ;;  %v7497_v48 = vsel %vm2485_vm3, %v7494_v49, %v7496_v57 }
 0x5da   : > { %10980 = vmatmul.mubr.bf16.gmra.mrb[24].mxu1 %v14586_v59  ;;  %v7499_v59 = vsel %vm2485_vm3, %v7496_v57, %v7498_v26 }
 0x5db   : > { %10983 = vmatprep.mubr.bf16.mxu1 %v14587_v0  ;;  %v12091_v0 = vld [vmem:[#allocation2 + $0xa0] ss:$0 sps:$4 sm:$0x33]  }
 0x5dc   : > { %v7502_v16 = vrot.slane %v12091_v0, 2  ;;  %v8595_v0 = vunpack.c.h.bf16 %v12144_v13 }
 0x5e2   : > { %10984 = vmatmul.mubr.bf16.gmra.mrb[28].mxu1 %v14588_v43 }
 0x5e3   : > { %10987 = vmatprep.mubr.bf16.mxu1 %v14589_v6  ;;  %v14592_v6 = vld [vmem:[#allocation61_spill] sm:$0xff] }
 0x5ea   : > { %10988 = vmatmul.mubr.bf16.gmra.mrb[32].mxu1 %v14591_v9  ;;  %v14595_v9 = vld [vmem:[#allocation64_spill] sm:$0xff] }
 0x5eb   : > { %11007 = vmatprep.mubr.bf16.mxu1 %v7469_v11  ;;  %v14596_v11 = vld [vmem:[#allocation65_spill] sm:$0xff] }
 0x5f2   : > { %11008 = vmatmul.mubr.bf16.vlgmr.msra.gmra.mrb[0].mxu1 %v7471_v40  ;;  %v14598_v40 = vld [vmem:[#allocation67_spill] sm:$0xff] }
 0x5f3   : > { %11011 = vmatprep.mubr.bf16.mxu1 %v7473_v2  ;;  %11044 = vmatpush3.bf16.msra.mxu1 %v12068_v5  ;;  %v7492_v5 = vrot.slane %v13953_v32, 2  ;;  %v7500_v32 = vrot.slane %v13984_v3, 2  ;;  %v12095_v3 = vld [vmem:[#allocation8 + $0x218] sm:$0xff]   ;;  %v12098_v2 = vld [vmem:[#allocation8 + $0x230] sm:$0xff]  }
 0x5f4   : > { %11045 = vmatprep.subr.bf16.mxu1 %v12072_v51 }
 0x5f5   : > { %v7493_v34 = vsel %vm2485_vm3, %v7490_v20, %v7492_v5  ;;  %v7495_v45 = vsel %vm2485_vm3, %v7492_v5, %v7494_v49  ;;  %v7501_v43 = vsel %vm2485_vm3, %v7498_v26, %v7500_v32  ;;  %v7503_v19 = vsel %vm2485_vm3, %v7500_v32, %v7502_v16  ;;  %v12145_v49 = vld [vmem:[%s12705_s11 + $0x20] sm:$0xff]  }
 0x5f6   : > { %v8597_v57 = vunpack.c.h.bf16 %v12145_v49 }
 0x5f7   : > { %11046 = vmatpush3.bf16.msra.mxu1 %v12072_v51  ;;  %v14597_v51 = vld [vmem:[#allocation66_spill] sm:$0xff] }
 0x5f8   : > { %11047 = vmatprep.subr.bf16.mxu1 %v12075_v55 }
 0x5fa   : > { %11012 = vmatmul.mubr.bf16.gmra.mrb[4].mxu1 %v7475_v44  ;;  %v14602_v44 = vld [vmem:[#allocation71_spill] sm:$0xff] }
 0x5fb   : > { %11015 = vmatprep.mubr.bf16.mxu1 %v7477_v35  ;;  %11048 = vmatpush3.bf16.msra.mxu1 %v12075_v55  ;;  %v12099_v55 = vld [vmem:[#allocation8 + $0x238] sm:$0xff]   ;;  %v14603_v35 = vld [vmem:[#allocation72_spill] sm:$0xff] }
 0x5fc   : > { %11049 = vmatprep.subr.bf16.mxu1 %v12078_v37 }
 0x5ff   : > { %11050 = vmatpush3.bf16.msra.mxu1 %v12078_v37  ;;  %v14601_v37 = vld [vmem:[#allocation70_spill] sm:$0xff] }
 0x600   : > { %11051 = vmatprep.subr.bf16.mxu1 %v12081_v61 }
 0x602   : > { %11016 = vmatmul.mubr.bf16.gmra.mrb[8].mxu1 %v7479_v24 }
 0x603   : > { %11019 = vmatprep.mubr.bf16.mxu1 %v7481_v18  ;;  %11052 = vmatpush3.bf16.msra.mxu1 %v12081_v61  ;;  %v7966_v61 = vshrl.u32 %v14054_v30, 16  ;;  %v14606_v30 = vld [vmem:[#allocation75_spill] sm:$0xff]  ;;  %v14613_v18 = vld [vmem:[#allocation82_spill] sm:$0xff] }
 0x604   : > { %11053 = vmatprep.subr.bf16.mxu1 %v12084_v60 }
 0x605   : > { %v7968_v50 = vrot.slane %v7966_v61, 2 }
 0x607   : > { %11054 = vmatpush3.bf16.msra.mxu1 %v12084_v60  ;;  %v7971_v60 = vrot.slane %v7969_v47, 3 }
 0x608   : > { %11055 = vmatprep.subr.bf16.mxu1 %v12087_v4 }
 0x609   : > { %v7972_v24 = vor.u32 %v7971_v60, %v7968_v50 }
 0x60a   : > { %11020 = vmatmul.mubr.bf16.gmra.mrb[12].mxu1 %v7483_v53  ;;  %v12142_v53 = vld [vmem:[%s12705_s11 + $0x8] sm:$0xe] }
 0x60b   : > { %11023 = vmatprep.mubr.bf16.mxu1 %v7485_v63  ;;  %11056 = vmatpush3.bf16.msra.mxu1 %v12087_v4  ;;  %v14614_v4 = vld [vmem:[#allocation83_spill] sm:$0xff] }
 0x60c   : > { %11057 = vmatprep.subr.bf16.mxu1 %v12090_v62  ;;  %v12143_v63 = vld [vmem:[%s12705_s11 + $0xc] sm:$0xf] }
 0x60f   : > { %11058 = vmatpush3.bf16.msra.mxu1 %v12090_v62  ;;  %v8593_v62 = vunpack.c.h.bf16 %v12141_v41 }
 0x610   : > { %11095 = vmatprep.subr.bf16.mxu1 %v12092_v52 }
 0x612   : > { %11024 = vmatmul.mubr.bf16.gmra.mrb[16].mxu1 %v7487_v38  ;;  %v8711_v38 = vrot.slane %v8592_v31, 3 }
 0x613   : > { %11027 = vmatprep.mubr.bf16.mxu1 %v7489_v36  ;;  %v8713_v36 = vrot.slane %v8593_v62, 3 }
 0x61a   : > { %11028 = vmatmul.mubr.bf16.gmra.mrb[20].mxu1 %v7491_v46  ;;  %v14280_v46 = vld [vmem:[#allocation11] ss:$0 sm:$0xff] }
 0x61b   : > { %11031 = vmatprep.mubr.bf16.mxu1 %v7493_v34  ;;  %v8715_v34 = vrot.slane %v8594_v10, 3 }
 0x622   : > { %11032 = vmatmul.mubr.bf16.gmra.mrb[24].mxu1 %v7495_v45 }
 0x623   : > { %11035 = vmatprep.mubr.bf16.mxu1 %v7497_v48  ;;  %v8714_v48 = vsel %vm3757_vm5, %v8711_v38, %v8713_v36 }
 0x62a   : > { %11036 = vmatmul.mubr.bf16.gmra.mrb[28].mxu1 %v7499_v59 }
 0x62b   : > { %11039 = vmatprep.mubr.bf16.mxu1 %v7501_v43 }
 0x632   : > { %11040 = vmatmul.mubr.bf16.gmra.mrb[32].mxu1 %v7503_v19  ;;  %v8716_v19 = vsel %vm3757_vm5, %v8713_v36, %v8715_v34 }
 0x633   : > { %11059 = vmatprep.mubr.bf16.mxu1 %v14592_v6 }
 0x63a   : > { %11060 = vmatmul.mubr.bf16.vlgmr.msra.gmra.mrb[0].mxu1 %v14593_v39 }
 0x63b   : > { %11063 = vmatprep.mubr.bf16.mxu1 %v14594_v22  ;;  %11096 = vmatpush3.bf16.msra.mxu1 %v12092_v52  ;;  %v8591_v52 = vunpack.c.l.bf16 %v12143_v63 }
 0x63c   : > { %11097 = vmatprep.subr.bf16.mxu1 %v12093_v54 }
 0x63d   : > { %v8709_v5 = vrot.slane %v8591_v52, 3 }
 0x63f   : > { %11098 = vmatpush3.bf16.msra.mxu1 %v12093_v54  ;;  %v8712_v6 = vsel %vm3757_vm5, %v8709_v5, %v8711_v38  ;;  %v12146_v54 = vld [vmem:[%s12705_s11 + $0x28] sm:$0xff]  }
 0x640   : > { %11099 = vmatprep.subr.bf16.mxu1 %v12094_v1  ;;  %v8598_v39 = vunpack.c.l.bf16 %v12146_v54 }
 0x642   : > { %11064 = vmatmul.mubr.bf16.gmra.mrb[4].mxu1 %v14595_v9 }
 0x643   : > { %11067 = vmatprep.mubr.bf16.mxu1 %v14596_v11  ;;  %11100 = vmatpush3.bf16.msra.mxu1 %v12094_v1  ;;  %v8721_v11 = vrot.slane %v8597_v57, 3 }
 0x644   : > { %11101 = vmatprep.subr.bf16.mxu1 %v12095_v3 }
 0x647   : > { %11102 = vmatpush3.bf16.msra.mxu1 %v12095_v3 }
 0x648   : > { %11103 = vmatprep.subr.bf16.mxu1 %v12096_v33 }
 0x64a   : > { %11068 = vmatmul.mubr.bf16.gmra.mrb[8].mxu1 %v14597_v51 }
 0x64b   : > { %11071 = vmatprep.mubr.bf16.mxu1 %v14598_v40  ;;  %11104 = vmatpush3.bf16.msra.mxu1 %v12096_v33  ;;  %v8717_v40 = vrot.slane %v8595_v0, 3 }
 0x64c   : > { %11105 = vmatprep.subr.bf16.mxu1 %v12097_v14 }
 0x64f   : > { %11106 = vmatpush3.bf16.msra.mxu1 %v12097_v14 }
 0x650   : > { %11107 = vmatprep.subr.bf16.mxu1 %v12098_v2 }
 0x652   : > { %11072 = vmatmul.mubr.bf16.gmra.mrb[12].mxu1 %v14599_v8 }
 0x653   : > { %11075 = vmatprep.mubr.bf16.mxu1 %v14600_v17  ;;  %11108 = vmatpush3.bf16.msra.mxu1 %v12098_v2 }
 0x654   : > { %11109 = vmatprep.subr.bf16.mxu1 %v12099_v55 }
 0x657   : > { %11110 = vmatpush3.bf16.msra.mxu1 %v12099_v55  ;;  %v8723_v55 = vrot.slane %v8598_v39, 3  ;;  %v12150_v39 = vld [vmem:[%s12705_s11 + $0x48] sm:$0xff]  }
 0x65a   : > { %11076 = vmatmul.mubr.bf16.gmra.mrb[16].mxu1 %v14601_v37 }
 0x65b   : > { %11079 = vmatprep.mubr.bf16.mxu1 %v14602_v44  ;;  %v12147_v44 = vld [vmem:[%s12705_s11 + $0x30] sm:$0xff]  }
 0x65c   : > { %v8601_v60 = vunpack.c.h.bf16 %v12147_v44 }
 0x662   : > { %11080 = vmatmul.mubr.bf16.gmra.mrb[20].mxu1 %v13998_v42  ;;  %v7973_v42 = vsel %vm3286_vm4, %v14024_v7, %v7972_v24  ;;  %v14608_v7 = vld [vmem:[#allocation77_spill] sm:$0xff]  ;;  %v8599_v24 = vunpack.c.h.bf16 %v12146_v54 }
 0x663   : > { %11083 = vmatprep.mubr.bf16.mxu1 %v14603_v35  ;;  %v8600_v35 = vunpack.c.l.bf16 %v12147_v44 }
 0x664   : > { %v8725_v63 = vrot.slane %v8599_v24, 3 }
 0x665   : > { %v8727_v31 = vrot.slane %v8600_v35, 3  ;;  %v12151_v35 = vld [vmem:[%s12705_s11 + $0x50] sm:$0xff]  }
 0x666   : > { %v8609_v24 = vunpack.c.h.bf16 %v12151_v35 }
 0x667   : > { %v8728_v54 = vsel %vm3757_vm5, %v8725_v63, %v8727_v31 }
 0x66a   : > { %11084 = vmatmul.mubr.bf16.gmra.mrb[24].mxu1 %v14012_v58  ;;  %v14605_v58 = vld [vmem:[#allocation74_spill] sm:$0xff] }
 0x66b   : > { %11087 = vmatprep.mubr.bf16.mxu1 %v14018_v25  ;;  %v14604_v25 = vld [vmem:[#allocation73_spill] sm:$0xff] }
 0x672   : > { %11088 = vmatmul.mubr.bf16.gmra.mrb[28].mxu1 %v14022_v23  ;;  %v14607_v23 = vld [vmem:[#allocation76_spill] sm:$0xff] }
 0x673   : > { %11091 = vmatprep.mubr.bf16.mxu1 %v14035_v15  ;;  %v14609_v15 = vld [vmem:[#allocation78_spill] sm:$0xff] }
 0x67a   : > { %11092 = vmatmul.mubr.bf16.gmra.mrb[32].mxu1 %v7973_v42 }
 0x67b   : > { %11111 = vmatprep.mubr.bf16.mxu1 %v14038_v29  ;;  %v14610_v29 = vld [vmem:[#allocation79_spill] sm:$0xff] }
 0x682   : > { %11112 = vmatmul.mubr.bf16.vlgmr.msra.gmra.mrb[0].mxu1 %v14041_v12  ;;  %v14611_v12 = vld [vmem:[#allocation80_spill] sm:$0xff] }
 0x683   : > { %11115 = vmatprep.mubr.bf16.mxu1 %v14046_v21  ;;  %v14612_v21 = vld [vmem:[#allocation81_spill] sm:$0xff] }
 0x68a   : > { %11116 = vmatmul.mubr.bf16.gmra.mrb[4].mxu1 %v14604_v25 }
 0x68b   : > { %11119 = vmatprep.mubr.bf16.mxu1 %v14605_v58 }
 0x692   : > { %11120 = vmatmul.mubr.bf16.gmra.mrb[8].mxu1 %v14606_v30  ;;  %v8718_v30 = vsel %vm3757_vm5, %v8715_v34, %v8717_v40 }
 0x693   : > { %11123 = vmatprep.mubr.bf16.mxu1 %v14068_v27  ;;  %v14615_v27 = vld [vmem:[#allocation84_spill] sm:$0xff] }
 0x69a   : > { %11124 = vmatmul.mubr.bf16.gmra.mrb[12].mxu1 %v14607_v23  ;;  %v12148_v23 = vld [vmem:[%s12705_s11 + $0x38] sm:$0xff]  }
 0x69b   : > { %11127 = vmatprep.mubr.bf16.mxu1 %v14608_v7  ;;  %v8602_v7 = vunpack.c.l.bf16 %v12148_v23 }
 0x69d   : > { %v8731_v13 = vrot.slane %v8602_v7, 3  ;;  %v12152_v7 = vld [vmem:[%s12705_s11 + $0x58] sm:$0xff]  }
 0x6a2   : > { %11128 = vmatmul.mubr.bf16.gmra.mrb[16].mxu1 %v14609_v15 }
 0x6a3   : > { %11131 = vmatprep.mubr.bf16.mxu1 %v14081_v28  ;;  %v8590_v28 = vunpack.c.l.bf16 %v12142_v53 }
 0x6a5   : > { %v8708_v20 = vrot.slane %v8590_v28, 3  ;;  %v8729_v28 = vrot.slane %v8601_v60, 3 }
 0x6a7   : > { %v8710_v59 = vsel %vm3757_vm5, %v8708_v20, %v8709_v5  ;;  %v12149_v20 = vld [vmem:[%s12705_s11 + $0x40] sm:$0xff]   ;;  %v8732_v0 = vsel %vm3757_vm5, %v8729_v28, %v8731_v13 }
 0x6a8   : > { %v8604_v5 = vunpack.c.l.bf16 %v12149_v20  ;;  %v8605_v34 = vunpack.c.h.bf16 %v12149_v20 }
 0x6aa   : > { %11132 = vmatmul.mubr.bf16.gmra.mrb[20].mxu1 %v14610_v29 }
 0x6ab   : > { %11135 = vmatprep.mubr.bf16.mxu1 %v14611_v12 }
 0x6b2   : > { %11136 = vmatmul.mubr.bf16.gmra.mrb[24].mxu1 %v14612_v21  ;;  %v8724_v21 = vsel %vm3757_vm5, %v8721_v11, %v8723_v55 }
 0x6b3   : > { %11139 = vmatprep.mubr.bf16.mxu1 %v14613_v18 }
 0x6ba   : > { %11140 = vmatmul.mubr.bf16.gmra.mrb[28].mxu1 %v14614_v4 }
 0x6bb   : > { %11143 = vmatprep.mubr.bf16.mxu1 %v14615_v27 }
 0x6c2   : > { %11144 = vmatmul.mubr.bf16.gmra.mrb[32].mxu1 %v14106_v56  ;;  %v8596_v56 = vunpack.c.l.bf16 %v12145_v49 }
 0x6c4   : > { %v8719_v9 = vrot.slane %v8596_v56, 3 }
 0x6c6   : > { %v8722_v37 = vsel %vm3757_vm5, %v8719_v9, %v8721_v11  ;;  %v8720_v41 = vsel %vm3757_vm5, %v8717_v40, %v8719_v9  ;;  %v8735_v11 = vrot.slane %v8604_v5, 3  ;;  %v12153_v5 = vld [vmem:[%s12705_s11 + $0x60] sm:$0xff]  }
 0x755   : > { %v11113_v45 = vpop.f32.mrb[0].mxu1 }
 0x756   : > { %v8636_v26 = vadd.f32 %v11113_v45, %v14280_v46  ;;  %v8411_v32 = vpop.f32.mrb[1].mxu1  ;;  %v8730_v45 = vsel %vm3757_vm5, %v8727_v31, %v8729_v28 }
 0x757   : > { %v8634_v43 = vadd.f32 %v14280_v46, %v8411_v32  ;;  %v11114_v16 = vpop.f32.mrb[2].mxu1 }
 0x758   : > { %v8819_v22 = vadd.f32 %v8714_v48, %v8636_v26  ;;  %v8637_v1 = vadd.f32 %v11114_v16, %v14280_v46  ;;  %v8414_v3 = vpop.f32.mrb[3].mxu1  ;;  %v8726_v48 = vsel %vm3757_vm5, %v8723_v55, %v8725_v63  ;;  %v8745_v63 = vrot.slane %v8609_v24, 3 }
 0x759   : > { %v8817_v33 = vadd.f32 %v8710_v59, %v8634_v43  ;;  %v8635_v14 = vadd.f32 %v14280_v46, %v8414_v3  ;;  %v8603_v43 = vunpack.c.h.bf16 %v12148_v23 }
 0x75a   : > { %v8820_v51 = vadd.f32 %v8716_v19, %v8637_v1  ;;  %v8855_v8 = vmax.f32 %v8819_v22, 0.0  ;;  %v8606_v22 = vunpack.c.l.bf16 %v12150_v39 }
 0x75b   : > { %v8818_v2 = vadd.f32 %v8712_v6, %v8635_v14  ;;  %v8853_v61 = vmax.f32 %v8817_v33, 0.0  ;;  %v8737_v33 = vrot.slane %v8605_v34, 3  ;;  %v8612_v34 = vunpack.c.l.bf16 %v12153_v5 }
 0x75c   : > { %v8856_v17 = vmax.f32 %v8820_v51, 0.0 }
 0x75d   : > { %v8854_v47 = vmax.f32 %v8818_v2, 0.0  ;;  %v11117_v50 = vpop.f32.mrb[4].mxu1  ;;  %v8733_v2 = vrot.slane %v8603_v43, 3  ;;  %v8738_v44 = vsel %vm3757_vm5, %v8735_v11, %v8737_v33 }
 0x75e   : > { %v9644_v42 = vpack.c.bf16 %v8856_v17, %v8855_v8  ;;  %v8640_v25 = vadd.f32 %v11117_v50, %v14280_v46  ;;  %v8427_v58 = vpop.f32.mrb[5].mxu1  ;;  %v8739_v8 = vrot.slane %v8606_v22, 3  ;;  %v12154_v22 = vld [vmem:[%s12705_s11 + $0x68] sm:$0xff]  }
 0x75f   : > { %v9639_v15 = vpack.c.bf16 %v8854_v47, %v8853_v61  ;;  %v8638_v29 = vadd.f32 %v14280_v46, %v8427_v58  ;;  %v11118_v12 = vpop.f32.mrb[6].mxu1  ;;  %v8608_v61 = vunpack.c.l.bf16 %v12151_v35  ;;  %v8734_v23 = vsel %vm3757_vm5, %v8731_v13, %v8733_v2 }
 0x760   : > { %9726 = vst [vmem:[%s14300_s7 + $0x8] sm:$0xff] %v9644_v42   ;;  %v8823_v18 = vadd.f32 %v8722_v37, %v8640_v25  ;;  %v8641_v4 = vadd.f32 %v11118_v12, %v14280_v46  ;;  %v8430_v27 = vpop.f32.mrb[7].mxu1  ;;  %v8607_v42 = vunpack.c.h.bf16 %v12150_v39  ;;  %v8736_v31 = vsel %vm3757_vm5, %v8733_v2, %v8735_v11 }
 0x761   : > { %9640 = vst [vmem:[%s14300_s7] sm:$0xff] %v9639_v15   ;;  %v8821_v62 = vadd.f32 %v8718_v30, %v8638_v29  ;;  %v8639_v53 = vadd.f32 %v14280_v46, %v8430_v27  ;;  %v8610_v15 = vunpack.c.l.bf16 %v12152_v7 }
 0x762   : > { %v8824_v52 = vadd.f32 %v8724_v21, %v8641_v4  ;;  %v8859_v38 = vmax.f32 %v8823_v18, 0.0  ;;  %v8740_v18 = vsel %vm3757_vm5, %v8737_v33, %v8739_v8  ;;  %v8751_v33 = vrot.slane %v8612_v34, 3  ;;  %v12157_v34 = vld [vmem:[%s12705_s11 + $0x80] sm:$0xff]  }
 0x763   : > { %v8822_v10 = vadd.f32 %v8720_v41, %v8639_v53  ;;  %v8857_v49 = vmax.f32 %v8821_v62, 0.0  ;;  %v8743_v62 = vrot.slane %v8608_v61, 3  ;;  %v12155_v61 = vld [vmem:[%s12705_s11 + $0x70] sm:$0xff]  }
 0x764   : > { %v8860_v36 = vmax.f32 %v8824_v52, 0.0  ;;  %v8741_v52 = vrot.slane %v8607_v42, 3  ;;  %v8617_v42 = vunpack.c.h.bf16 %v12155_v61 }
 0x765   : > { %v8858_v56 = vmax.f32 %v8822_v10, 0.0  ;;  %v11121_v57 = vpop.f32.mrb[8].mxu1  ;;  %v8747_v10 = vrot.slane %v8610_v15, 3  ;;  %v12156_v15 = vld [vmem:[%s12705_s11 + $0x78] sm:$0xff]  }
 0x766   : > { %v9654_v26 = vpack.c.bf16 %v8860_v36, %v8859_v38  ;;  %v8644_v32 = vadd.f32 %v11121_v57, %v14280_v46  ;;  %v8443_v59 = vpop.f32.mrb[9].mxu1  ;;  %v8744_v39 = vsel %vm3757_vm5, %v8741_v52, %v8743_v62 }
 0x767   : > { %v9649_v16 = vpack.c.bf16 %v8858_v56, %v8857_v49  ;;  %v8642_v19 = vadd.f32 %v14280_v46, %v8443_v59  ;;  %v11122_v6 = vpop.f32.mrb[10].mxu1  ;;  %v8613_v49 = vunpack.c.h.bf16 %v12153_v5  ;;  %v8748_v43 = vsel %vm3757_vm5, %v8745_v63, %v8747_v10 }
 0x768   : > { %9728 = vst [vmem:[%s14300_s7 + $0x18] sm:$0xff] %v9654_v26   ;;  %v8827_v1 = vadd.f32 %v8730_v45, %v8644_v32  ;;  %v8645_v3 = vadd.f32 %v11122_v6, %v14280_v46  ;;  %v8446_v9 = vpop.f32.mrb[11].mxu1  ;;  %v8742_v26 = vsel %vm3757_vm5, %v8739_v8, %v8741_v52  ;;  %v8761_v52 = vrot.slane %v8617_v42, 3 }
 0x769   : > { %9727 = vst [vmem:[%s14300_s7 + $0x10] sm:$0xff] %v9649_v16   ;;  %v8825_v14 = vadd.f32 %v8726_v48, %v8642_v19  ;;  %v8643_v51 = vadd.f32 %v14280_v46, %v8446_v9  ;;  %v8746_v48 = vsel %vm3757_vm5, %v8743_v62, %v8745_v63  ;;  %v8611_v16 = vunpack.c.h.bf16 %v12152_v7 }
 0x76a   : > { %v8828_v40 = vadd.f32 %v8732_v0, %v8645_v3  ;;  %v8863_v17 = vmax.f32 %v8827_v1, 0.0  ;;  %v8614_v1 = vunpack.c.l.bf16 %v12154_v22 }
 0x76b   : > { %v8826_v55 = vadd.f32 %v8728_v54, %v8643_v51  ;;  %v8861_v47 = vmax.f32 %v8825_v14, 0.0  ;;  %v8753_v14 = vrot.slane %v8613_v49, 3  ;;  %v8620_v49 = vunpack.c.l.bf16 %v12157_v34 }
 0x76c   : > { %v8864_v37 = vmax.f32 %v8828_v40, 0.0 }
 0x76d   : > { %v8862_v50 = vmax.f32 %v8826_v55, 0.0  ;;  %v11125_v60 = vpop.f32.mrb[12].mxu1  ;;  %v8749_v55 = vrot.slane %v8611_v16, 3  ;;  %v8754_v35 = vsel %vm3757_vm5, %v8751_v33, %v8753_v14 }
 0x76e   : > { %v9664_v25 = vpack.c.bf16 %v8864_v37, %v8863_v17  ;;  %v8648_v58 = vadd.f32 %v11125_v60, %v14280_v46  ;;  %v8459_v30 = vpop.f32.mrb[13].mxu1  ;;  %v8755_v17 = vrot.slane %v8614_v1, 3  ;;  %v12158_v1 = vld [vmem:[%s12705_s11 + $0x88] sm:$0xff]  }
 0x76f   : > { %v9659_v29 = vpack.c.bf16 %v8862_v50, %v8861_v47  ;;  %v8646_v12 = vadd.f32 %v14280_v46, %v8459_v30  ;;  %v11126_v21 = vpop.f32.mrb[14].mxu1  ;;  %v8616_v47 = vunpack.c.l.bf16 %v12155_v61  ;;  %v8750_v7 = vsel %vm3757_vm5, %v8747_v10, %v8749_v55 }
 0x770   : > { %9730 = vst [vmem:[%s14300_s7 + $0x28] sm:$0xff] %v9664_v25   ;;  %v8831_v4 = vadd.f32 %v8738_v44, %v8648_v58  ;;  %v8649_v27 = vadd.f32 %v11126_v21, %v14280_v46  ;;  %v8462_v41 = vpop.f32.mrb[15].mxu1  ;;  %v8615_v25 = vunpack.c.h.bf16 %v12154_v22  ;;  %v8752_v62 = vsel %vm3757_vm5, %v8749_v55, %v8751_v33 }
 0x771   : > { %9729 = vst [vmem:[%s14300_s7 + $0x20] sm:$0xff] %v9659_v29   ;;  %v8829_v53 = vadd.f32 %v8734_v23, %v8646_v12  ;;  %v8647_v28 = vadd.f32 %v14280_v46, %v8462_v41  ;;  %v8618_v29 = vunpack.c.l.bf16 %v12156_v15 }
 0x772   : > { %v8832_v13 = vadd.f32 %v8740_v18, %v8649_v27  ;;  %v8867_v36 = vmax.f32 %v8831_v4, 0.0  ;;  %v8756_v4 = vsel %vm3757_vm5, %v8753_v14, %v8755_v17  ;;  %v8767_v14 = vrot.slane %v8620_v49, 3 }
 0x773   : > { %v8830_v38 = vadd.f32 %v8736_v31, %v8647_v28  ;;  %v8865_v56 = vmax.f32 %v8829_v53, 0.0  ;;  %v8759_v53 = vrot.slane %v8616_v47, 3 }
 0x774   : > { %v8868_v20 = vmax.f32 %v8832_v13, 0.0  ;;  %v8757_v13 = vrot.slane %v8615_v25, 3 }
 0x775   : > { %v8866_v57 = vmax.f32 %v8830_v38, 0.0  ;;  %v11129_v45 = vpop.f32.mrb[16].mxu1  ;;  %v8763_v38 = vrot.slane %v8618_v29, 3 }
 0x776   : > { %v9674_v32 = vpack.c.bf16 %v8868_v20, %v8867_v36  ;;  %v8652_v59 = vadd.f32 %v11129_v45, %v14280_v46  ;;  %v8475_v0 = vpop.f32.mrb[17].mxu1  ;;  %v8760_v22 = vsel %vm3757_vm5, %v8757_v13, %v8759_v53 }
 0x777   : > { %v9669_v19 = vpack.c.bf16 %v8866_v57, %v8865_v56  ;;  %v8650_v6 = vadd.f32 %v14280_v46, %v8475_v0  ;;  %v11130_v54 = vpop.f32.mrb[18].mxu1  ;;  %v8621_v56 = vunpack.c.h.bf16 %v12157_v34  ;;  %v8764_v16 = vsel %vm3757_vm5, %v8761_v52, %v8763_v38 }
 0x778   : > { %9732 = vst [vmem:[%s14300_s7 + $0x38] sm:$0xff] %v9674_v32   ;;  %v8835_v3 = vadd.f32 %v8746_v48, %v8652_v59  ;;  %v8653_v9 = vadd.f32 %v11130_v54, %v14280_v46  ;;  %v8478_v11 = vpop.f32.mrb[19].mxu1  ;;  %v8758_v32 = vsel %vm3757_vm5, %v8755_v17, %v8757_v13 }
 0x779   : > { %9731 = vst [vmem:[%s14300_s7 + $0x30] sm:$0xff] %v9669_v19   ;;  %v8833_v51 = vadd.f32 %v8742_v26, %v8650_v6  ;;  %v8651_v40 = vadd.f32 %v14280_v46, %v8478_v11  ;;  %v8762_v26 = vsel %vm3757_vm5, %v8759_v53, %v8761_v52  ;;  %v8619_v19 = vunpack.c.h.bf16 %v12156_v15 }
 0x77a   : > { %v8836_v2 = vadd.f32 %v8748_v43, %v8653_v9  ;;  %v8871_v37 = vmax.f32 %v8835_v3, 0.0  ;;  %v8622_v3 = vunpack.c.l.bf16 %v12158_v1  ;;  %v8623_v15 = vunpack.c.h.bf16 %v12158_v1 }
 0x77b   : > { %v8834_v8 = vadd.f32 %v8744_v39, %v8651_v40  ;;  %v8869_v50 = vmax.f32 %v8833_v51, 0.0  ;;  %v8769_v51 = vrot.slane %v8621_v56, 3 }
 0x77c   : > { %v8872_v44 = vmax.f32 %v8836_v2, 0.0 }
 0x77d   : > { %v8870_v60 = vmax.f32 %v8834_v8, 0.0  ;;  %v11133_v24 = vpop.f32.mrb[20].mxu1  ;;  %v8765_v8 = vrot.slane %v8619_v19, 3  ;;  %v8770_v61 = vsel %vm3757_vm5, %v8767_v14, %v8769_v51 }
 0x77e   : > { %v9684_v58 = vpack.c.bf16 %v8872_v44, %v8871_v37  ;;  %v8656_v30 = vadd.f32 %v11133_v24, %v14280_v46  ;;  %v8491_v23 = vpop.f32.mrb[21].mxu1  ;;  %v8771_v37 = vrot.slane %v8622_v3, 3  ;;  %v12159_v24 = vld [vmem:[%s12705_s11 + $0x90] sm:$0xff]  }
 0x77f   : > { %v9679_v12 = vpack.c.bf16 %v8870_v60, %v8869_v50  ;;  %v8654_v21 = vadd.f32 %v14280_v46, %v8491_v23  ;;  %v11134_v18 = vpop.f32.mrb[22].mxu1  ;;  %v8624_v42 = vunpack.c.l.bf16 %v12159_v24  ;;  %v8625_v25 = vunpack.c.h.bf16 %v12159_v24 }
 0x780   : > { %9734 = vst [vmem:[%s14300_s7 + $0x48] sm:$0xff] %v9684_v58   ;;  %v8839_v27 = vadd.f32 %v8754_v35, %v8656_v30  ;;  %v8657_v41 = vadd.f32 %v11134_v18, %v14280_v46  ;;  %v8494_v31 = vpop.f32.mrb[23].mxu1  ;;  %v8772_v18 = vsel %vm3757_vm5, %v8769_v51, %v8771_v37  ;;  %v8768_v53 = vsel %vm3757_vm5, %v8765_v8, %v8767_v14 }
 0x781   : > { %9733 = vst [vmem:[%s14300_s7 + $0x40] sm:$0xff] %v9679_v12   ;;  %v8837_v28 = vadd.f32 %v8750_v7, %v8654_v21  ;;  %v8655_v63 = vadd.f32 %v14280_v46, %v8494_v31  ;;  %v8766_v7 = vsel %vm3757_vm5, %v8763_v38, %v8765_v8  ;;  %v8775_v52 = vrot.slane %v8624_v42, 3 }
 0x782   : > { %v8840_v10 = vadd.f32 %v8756_v4, %v8657_v41  ;;  %v8875_v20 = vmax.f32 %v8839_v27, 0.0  ;;  %v12160_v4 = vld [vmem:[%s12705_s11 + $0x98] sm:$0x3]  ;;  %v8777_v13 = vrot.slane %v8625_v25, 3  ;;  %v8773_v38 = vrot.slane %v8623_v15, 3 }
 0x783   : > { %v8838_v36 = vadd.f32 %v8752_v62, %v8655_v63  ;;  %v8873_v57 = vmax.f32 %v8837_v28, 0.0  ;;  %v8626_v27 = vunpack.c.l.bf16 %v12160_v4 }
 0x784   : > { %v8876_v5 = vmax.f32 %v8840_v10, 0.0 }
 0x785   : > { %v8874_v45 = vmax.f32 %v8838_v36, 0.0  ;;  %v11137_v48 = vpop.f32.mrb[24].mxu1 }
 0x786   : > { %v9694_v59 = vpack.c.bf16 %v8876_v5, %v8875_v20  ;;  %v8660_v0 = vadd.f32 %v11137_v48, %v14280_v46  ;;  %v8507_v43 = vpop.f32.mrb[25].mxu1  ;;  %v8779_v20 = vrot.slane %v8626_v27, 3 }
 0x787   : > { %v9689_v6 = vpack.c.bf16 %v8874_v45, %v8873_v57  ;;  %v8658_v54 = vadd.f32 %v14280_v46, %v8507_v43  ;;  %v11138_v39 = vpop.f32.mrb[26].mxu1  ;;  %v8778_v45 = vsel %vm3757_vm5, %v8775_v52, %v8777_v13 }
 0x788   : > { %9736 = vst [vmem:[%s14300_s7 + $0x58] sm:$0xff] %v9694_v59   ;;  %v8843_v9 = vadd.f32 %v8762_v26, %v8660_v0  ;;  %v8661_v11 = vadd.f32 %v11138_v39, %v14280_v46  ;;  %v8510_v33 = vpop.f32.mrb[27].mxu1  ;;  %v8774_v59 = vsel %vm3757_vm5, %v8771_v37, %v8773_v38  ;;  %v8780_v19 = vsel %vm3757_vm5, %v8777_v13, %v8779_v20 }
 0x789   : > { %9735 = vst [vmem:[%s14300_s7 + $0x50] sm:$0xff] %v9689_v6   ;;  %v8841_v40 = vadd.f32 %v8758_v32, %v8658_v54  ;;  %v8659_v2 = vadd.f32 %v14280_v46, %v8510_v33 }
 0x78a   : > { %v8844_v55 = vadd.f32 %v8764_v16, %v8661_v11  ;;  %v8879_v44 = vmax.f32 %v8843_v9, 0.0 }
 0x78b   : > { %v8842_v17 = vadd.f32 %v8760_v22, %v8659_v2  ;;  %v8877_v47 = vmax.f32 %v8841_v40, 0.0  ;;  %v8776_v22 = vsel %vm3757_vm5, %v8773_v38, %v8775_v52 }
 0x78c   : > { %v8880_v35 = vmax.f32 %v8844_v55, 0.0 }
 0x78d   : > { %v8878_v50 = vmax.f32 %v8842_v17, 0.0  ;;  %v11141_v60 = vpop.f32.mrb[28].mxu1 }
 0x78e   : > { %v9704_v58 = vpack.c.bf16 %v8880_v35, %v8879_v44  ;;  %v8664_v30 = vadd.f32 %v11141_v60, %v14280_v46  ;;  %v8523_v23 = vpop.f32.mrb[29].mxu1 }
 0x78f   : > { %v9699_v29 = vpack.c.bf16 %v8878_v50, %v8877_v47  ;;  %v8662_v12 = vadd.f32 %v14280_v46, %v8523_v23  ;;  %v11142_v21 = vpop.f32.mrb[30].mxu1 }
 0x790   : > { %9738 = vst [vmem:[%s14300_s7 + $0x68] sm:$0xff] %v9704_v58   ;;  %v8847_v41 = vadd.f32 %v8770_v61, %v8664_v30  ;;  %v8665_v31 = vadd.f32 %v11142_v21, %v14280_v46  ;;  %v8526_v62 = vpop.f32.mrb[31].mxu1 }
 0x791   : > { %9737 = vst [vmem:[%s14300_s7 + $0x60] sm:$0xff] %v9699_v29   ;;  %v8845_v28 = vadd.f32 %v8766_v7, %v8662_v12  ;;  %v8663_v63 = vadd.f32 %v14280_v46, %v8526_v62 }
 0x792   : > { %v8848_v10 = vadd.f32 %v8772_v18, %v8665_v31  ;;  %v8883_v5 = vmax.f32 %v8847_v41, 0.0 }
 0x793   : > { %v8846_v36 = vadd.f32 %v8768_v53, %v8663_v63  ;;  %v8881_v49 = vmax.f32 %v8845_v28, 0.0 }
 0x794   : > { %v8884_v34 = vmax.f32 %v8848_v10, 0.0 }
 0x795   : > { %v8882_v56 = vmax.f32 %v8846_v36, 0.0  ;;  %v11145_v57 = vpop.f32.mrb[32].mxu1 }
 0x796   : > { %v9714_v48 = vpack.c.bf16 %v8884_v34, %v8883_v5  ;;  %v8668_v26 = vadd.f32 %v11145_v57, %v14280_v46  ;;  %v8539_v32 = vpop.f32.mrb[33].mxu1 }
 0x797   : > { %v9709_v0 = vpack.c.bf16 %v8882_v56, %v8881_v49  ;;  %v8666_v43 = vadd.f32 %v14280_v46, %v8539_v32  ;;  %v11146_v16 = vpop.f32.mrb[34].mxu1 }
 0x798   : > { %9740 = vst [vmem:[%s14300_s7 + $0x78] sm:$0xff] %v9714_v48   ;;  %v8851_v6 = vadd.f32 %v8778_v45, %v8668_v26  ;;  %v8669_v54 = vadd.f32 %v11146_v16, %v14280_v46  ;;  %v8542_v39 = vpop.f32.mrb[35].mxu1 }
 0x799   : > { %9739 = vst [vmem:[%s14300_s7 + $0x70] sm:$0xff] %v9709_v0   ;;  %v8849_v1 = vadd.f32 %v8774_v59, %v8666_v43  ;;  %v8667_v3 = vadd.f32 %v14280_v46, %v8542_v39 }
 0x79a   : > { %v8852_v9 = vadd.f32 %v8780_v19, %v8669_v54  ;;  %v8887_v33 = vmax.f32 %v8851_v6, 0.0 }
 0x79b   : > { %v8850_v11 = vadd.f32 %v8776_v22, %v8667_v3  ;;  %v8885_v51 = vmax.f32 %v8849_v1, 0.0 }
 0x79c   : > { %v8888_v14 = vmax.f32 %v8852_v9, 0.0 }
 0x79d   : > { %v8886_v40 = vmax.f32 %v8850_v11, 0.0 }
 0x79e   : > { %v9724_v2 = vpack.c.bf16 %v8888_v14, %v8887_v33 }
 0x79f   : > { %v9719_v55 = vpack.c.bf16 %v8886_v40, %v8885_v51 }
 0x7a0   : > { %9742 = vst [vmem:[%s14300_s7 + $0x88] sm:$0xff] %v9724_v2  }
 0x7a1   : > { %9741 = vst [vmem:[%s14300_s7 + $0x80] sm:$0xff] %v9719_v55  }
 0x7a2   : > { %12344 = shalt.err (!%p12341_p8)
}
 0x7a3   : > { %s12345_s18 = scalar_lea.hbm %s14394_s13, 2304  ;;  %s12349_s28 = scalar_lea.hbm %s14448_s6, 4608 }
 0x7a4   : > { %p12346_p6 = scmp.ne.s32.totalorder %s14394_s13, %s12345_s18  ;;  %p12350_p0 = scmp.lt.u32.totalorder %s14394_s13, %s14448_s6 }
 0x7a5   : > { %p12351_p5 = scmp.lt.u32.totalorder %s12349_s28, %s12345_s18  ;;  %p12353_p7 = scmp.lt.u32.totalorder %s12345_s18, %s14394_s13 }
 0x7a6   : > { %p12347_p10 = pnand %p12346_p6, %p14616_p4 }
 0x7a7   : > { %p12352_p9 = por %p12351_p5, %p12350_p0 }
 0x7a8   : > { %p12348_p11 = pneg %p12347_p10 }
 0x7a9   : > { %p12354_p12 = por %p12353_p7, %p12352_p9 }
 0x7ab   : > { %p12355_p13 = pnand %p12354_p12, %p12348_p11 }
 0x7ad   : > { %12358 = shalt.err (!%p12355_p13)
}
 0x7ae   : > { %s12423_s26 = smov 64   ;;  %s12424_s25 = smov 4  }
 0x7af   : > { %11750 = dma.vmem_to_hbm [thread:$0]  (%p14616_p4), %s14396_s9, 2304, %s14394_s13, %s9070_s27, %s12423_s26, %s12423_s26, %s12424_s25  }
 0x7b0 PF: > { %s9098_s16 = sand.u32 1, %s12397_s21   ;;  %p14617_p1 = scmp.ne.s32.totalorder %s14467_s12, 0 }
 0x7b1   : > { %p14618_p3 = scmp.ge.s32.totalorder %s12409_s24, 2  ;;  %s9099_s19 = scalar_lea.sflag [#allocation5], %s9098_s16 }
 0x7b3   : > { %p11773_p2 = pnand %p14618_p3, %p14617_p1 }
 0x7b5   : > { %12392 = dma.done.wait (!%p11773_p2), %s9099_s19, 2304  }
 0x7b6   : > { %12394 = vsyncadd (!%p11773_p2), %s9099_s19, 4294964992  ;;  %p22_p8 = scmp.ge.s32.totalorder %s12625_s17, 4   ;;  %s14619_s21 = smov %s12401_s22 }
 0x7b7   : > { %s14620_s22 = smov %s12405_s23  ;;  %s14621_s23 = smov %s12637_s10 }
 0x7b8   : > { %s14622_s24 = smov %s12625_s17  ;;  %24 = sbr.rel (!%p22_p8) target bundleno = 8 (0x8), region = 125 }
 0x7bf   :  { %9104 = vsyncpa [#allocation4], 1 }
 0x7c0   :  { %9106 = vsyncpa [#allocation4 + $0x1], 1 }
 0x7c1   :  { %9107 = vsyncpa [#allocation7], 1 }
 0x7c2   :  { %9108 = vsyncpa [#allocation10], 1 }
 0x7c3   :  { %9109 = vsyncpa [#allocation13], 1 }
 0x7c4   :  { %9110 = vsyncpa [#allocation5], 1 }
 0x7c5   :  { %9112 = vsyncpa [#allocation5 + $0x1], 1 }

</bundles_post_ra>
